<compile_context>
chip_gen: v5e
topology: v5e:2x2
jax: 0.10.0
libtpu: 0.0.40
codegen_flags: <defaults>
</compile_context>

<pallas_src>
import jax
import jax.numpy as jnp
from jax.experimental import pallas as pl

# ---------------- model config (small, structure-faithful) ----------------
IMG = 32          # interpolate target size (224 in the reference module)
PATCH = 8         # patch size (16 in vit_small_patch16_224)
IN_CH = 3
EMBED = 32        # 384 in vit_small
DEPTH = 2         # 12 in vit_small
HEADS = 4         # 6 in vit_small
MLP_RATIO = 4
NUM_CLASSES = 10
HEAD_PAD = 128    # lane-dense padded width for the head output
EPS = 1e-6        # timm ViT LayerNorm eps

T = (IMG // PATCH) ** 2 + 1          # 17 tokens per image (cls + patches)
T_PAD = ((T + 7) // 8) * 8           # 24: sublane-aligned per-image row count

# rows of the per-block packed parameter slab (D, 10, 128)
(V_LN1_G, V_LN1_B, V_BQ, V_BK, V_BV, V_BPROJ,
 V_LN2_G, V_LN2_B, V_BFC1, V_BFC2) = range(10)


# ------------------------------ fused kernel ------------------------------
def _vit_fused_kernel(
    patches_ref,    # (M, Cpp)        bf16  patch pixels (cls/pad rows = 0)
    w_patch_ref,    # (Cpp, E)        bf16  patch-embed weight
    tok_bias_ref,   # (M, E)          f32   cls + pos + patch bias (pad rows 0)
    attn_bias_ref,  # (M, M)          f32   0 / -1e30 block-diagonal key mask
    w_qkvp_ref,     # (D, 4, E, E)    bf16  [Wq*scale, Wk, Wv, Wproj]
    w_fc1_ref,      # (D, E, 4E)      bf16
    w_fc2_ref,      # (D, 4E, E)      bf16
    vec_ref,        # (D, 10, 128)    f32   packed LN params + biases
    head_w_ref,     # (E, HEAD_PAD)   bf16  zero-padded head weight
    fin_ref,        # (3, HEAD_PAD)   f32   [lnf_g, lnf_b, head_b] padded
    o_ref,          # (B, HEAD_PAD)   f32   logits (lane-dense padded)
):
    M = patches_ref.shape[0]
    n_img = M // T_PAD
    E = EMBED
    Dh = E // HEADS
    H4 = MLP_RATIO * EMBED
    f32 = jnp.float32
    bf16 = jnp.bfloat16

    def layernorm(x, g, b):
        mean = jnp.mean(x, axis=-1, keepdims=True)
        var = jnp.mean((x - mean) ** 2, axis=-1, keepdims=True)
        return (x - mean) * jax.lax.rsqrt(var + EPS) * g + b

    # Per-head lane-selection masks over the E=32 feature lanes (built once,
    # reused across blocks/heads). These replace the former 8-lane value
    # slices (no XLU lane rotates; head separation is a VPU select).
    lane = jax.lax.broadcasted_iota(jnp.int32, (1, E), 1)
    head_sel = [(lane >= h * Dh) & (lane < (h + 1) * Dh) for h in range(HEADS)]

    attn_bias = attn_bias_ref[...]                                  # (M, M)

    # ---- patch embed + cls token + positional embedding (one matmul) ----
    tok = jnp.dot(patches_ref[...], w_patch_ref[...],
                  preferred_element_type=f32) + tok_bias_ref[...]    # (M, E) f32

    # ---- transformer blocks (pre-norm), fully unrolled ----
    for d in range(DEPTH):
        ln1_g = vec_ref[d, V_LN1_G:V_LN1_G + 1, 0:E]
        ln1_b = vec_ref[d, V_LN1_B:V_LN1_B + 1, 0:E]
        bq = vec_ref[d, V_BQ:V_BQ + 1, 0:E]
        bk = vec_ref[d, V_BK:V_BK + 1, 0:E]
        bv = vec_ref[d, V_BV:V_BV + 1, 0:E]
        bproj = vec_ref[d, V_BPROJ:V_BPROJ + 1, 0:E]
        ln2_g = vec_ref[d, V_LN2_G:V_LN2_G + 1, 0:E]
        ln2_b = vec_ref[d, V_LN2_B:V_LN2_B + 1, 0:E]
        b_fc1 = vec_ref[d, V_BFC1:V_BFC1 + 1, 0:H4]
        b_fc2 = vec_ref[d, V_BFC2:V_BFC2 + 1, 0:E]

        # --- multi-head self-attention ---
        h1 = layernorm(tok, ln1_g, ln1_b).astype(bf16)
        # scale is pre-folded into Wq / bq in the wrapper
        q = jnp.dot(h1, w_qkvp_ref[d, 0], preferred_element_type=f32) + bq
        k = jnp.dot(h1, w_qkvp_ref[d, 1], preferred_element_type=f32) + bk
        v = jnp.dot(h1, w_qkvp_ref[d, 2], preferred_element_type=f32) + bv
        kb = k.astype(bf16)
        vb = v.astype(bf16)

        # per-head score/softmax/AV; head outputs land in disjoint lane
        # groups of `av`, so the sum IS the head concatenation and the output
        # projection collapses to one K=E matmul.
        av = jnp.zeros((M, E), f32)
        for h in range(HEADS):
            qh = jnp.where(head_sel[h], q, 0.0).astype(bf16)     # only head-h lanes
            s = jax.lax.dot_general(qh, kb, (((1,), (1,)), ((), ())),
                                    preferred_element_type=f32)  # (M, M)
            s = s + attn_bias                                    # block-diag mask
            s = s - jnp.max(s, axis=-1, keepdims=True)
            p = jnp.exp(s)
            p = p * pl.reciprocal(jnp.sum(p, axis=-1, keepdims=True), approx=True)
            pv = jnp.dot(p.astype(bf16), vb, preferred_element_type=f32)
            av = av + jnp.where(head_sel[h], pv, 0.0)
        attn = jnp.dot(av.astype(bf16), w_qkvp_ref[d, 3],
                       preferred_element_type=f32) + bproj
        tok = tok + attn

        # --- MLP ---
        h2 = layernorm(tok, ln2_g, ln2_b).astype(bf16)
        h2 = jnp.dot(h2, w_fc1_ref[d], preferred_element_type=f32) + b_fc1
        # TODO(synk): timm uses exact (erf) GELU; tanh approximation used here.
        h2 = jax.nn.gelu(h2, approximate=True)
        h2 = jnp.dot(h2.astype(bf16), w_fc2_ref[d],
                     preferred_element_type=f32) + b_fc2
        tok = tok + h2

    # ---- final norm + classification head, cls rows only ----
    cls = jnp.concatenate(
        [tok[b * T_PAD:b * T_PAD + 1, :] for b in range(n_img)], axis=0)  # (B, E)
    lnf_g = fin_ref[0:1, 0:E]
    lnf_b = fin_ref[1:2, 0:E]
    head_b = fin_ref[2:3, :]
    cls = layernorm(cls, lnf_g, lnf_b).astype(bf16)
    logits = jnp.dot(cls, head_w_ref[...], preferred_element_type=f32) + head_b
    o_ref[...] = logits.astype(o_ref.dtype)                       # (B, HEAD_PAD)


# ------------------------------ glue (plain JAX) ------------------------------
def interpolate_nearest(x, out_h, out_w):
    # Matches F.interpolate(mode='nearest', the PyTorch default): src = floor(dst*in/out)
    B, C, H, W = x.shape
    if out_h % H == 0 and out_w % W == 0:
        # integral ratio -> structural repeat (identical result, no gather)
        x = jnp.repeat(x, out_h // H, axis=2)
        return jnp.repeat(x, out_w // W, axis=3)
    rows = (jnp.arange(out_h) * H // out_h).astype(jnp.int32)
    cols = (jnp.arange(out_w) * W // out_w).astype(jnp.int32)
    return x[:, :, rows[:, None], cols[None, :]]


def init_params(key):
    keys = jax.random.split(key, 64)
    ctr = iter(range(64))

    def nrm(shape, std=0.02):
        return jax.random.normal(keys[next(ctr)], shape, jnp.float32) * std

    params = {
        "patch_w": nrm((EMBED, IN_CH, PATCH, PATCH)),   # conv weight (out,in,kh,kw)
        "patch_b": jnp.zeros((EMBED,), jnp.float32),
        "cls": nrm((1, 1, EMBED)),
        "pos": nrm((1, T, EMBED)),
        "ln_g": jnp.ones((EMBED,), jnp.float32),
        "ln_b": jnp.zeros((EMBED,), jnp.float32),
        "head_w": nrm((EMBED, NUM_CLASSES)),
        "head_b": jnp.zeros((NUM_CLASSES,), jnp.float32),
        "blocks": [],
    }
    for _ in range(DEPTH):
        params["blocks"].append({
            "ln1_g": jnp.ones((EMBED,), jnp.float32),
            "ln1_b": jnp.zeros((EMBED,), jnp.float32),
            "qkv_w": nrm((EMBED, 3 * EMBED)),
            "qkv_b": jnp.zeros((3 * EMBED,), jnp.float32),
            "proj_w": nrm((EMBED, EMBED)),
            "proj_b": jnp.zeros((EMBED,), jnp.float32),
            "ln2_g": jnp.ones((EMBED,), jnp.float32),
            "ln2_b": jnp.zeros((EMBED,), jnp.float32),
            "fc1_w": nrm((EMBED, MLP_RATIO * EMBED)),
            "fc1_b": jnp.zeros((MLP_RATIO * EMBED,), jnp.float32),
            "fc2_w": nrm((MLP_RATIO * EMBED, EMBED)),
            "fc2_b": jnp.zeros((EMBED,), jnp.float32),
        })
    return params


def vit_forward(params, x):
    B = x.shape[0]
    Hp = Wp = IMG // PATCH
    Np = Hp * Wp
    Cpp = IN_CH * PATCH * PATCH
    M = B * T_PAD
    f32 = jnp.float32
    bf16 = jnp.bfloat16

    # 1) F.interpolate(x, size=(IMG, IMG))  -- nearest, NCHW
    x = interpolate_nearest(x, IMG, IMG)

    # 2) patch extraction (conv(k=stride=PATCH) == patch reshape + matmul).
    #    Each image occupies T_PAD rows: row 0 = cls (zero patch), rows
    #    1..T-1 = patches, rows T..T_PAD-1 = zero padding (so M = B*T_PAD is
    #    a multiple of 8 and per-image slices are sublane-aligned).
    patches = x.reshape(B, IN_CH, Hp, PATCH, Wp, PATCH)
    patches = patches.transpose(0, 2, 4, 1, 3, 5).reshape(B, Np, Cpp)
    p_ext = jnp.zeros((B, T_PAD, Cpp), f32).at[:, 1:T, :].set(patches)
    patches_flat = p_ext.reshape(M, Cpp).astype(bf16)

    # 3) token bias rows: cls token + positional embedding (+ patch-conv bias)
    tb = jnp.zeros((T_PAD, EMBED), f32)
    tb = tb.at[0].set(params["cls"][0, 0] + params["pos"][0, 0])
    tb = tb.at[1:T].set(params["pos"][0, 1:] + params["patch_b"])
    tok_bias = jnp.tile(tb, (B, 1))                                  # (M, E)

    # 4) additive attention mask: queries may only attend to valid (non-pad)
    #    keys of their own image.
    idx = jnp.arange(M, dtype=jnp.int32)
    img = idx // T_PAD
    valid_key = (idx % T_PAD) < T
    attn_bias = jnp.where((img[:, None] == img[None, :]) & valid_key[None, :],
                          0.0, -1e30).astype(f32)                    # (M, M)

    # 5) pack parameters into a few dense slabs (bf16 at the MXU boundary)
    scale = float(EMBED // HEADS) ** -0.5

    def stack(name):
        return jnp.stack([blk[name] for blk in params["blocks"]], axis=0)

    qkv_w = stack("qkv_w")                                           # (D, E, 3E)
    qkv_b = stack("qkv_b")                                           # (D, 3E)
    # fold the 1/sqrt(Dh) attention scale into Wq AND bq (constant rewrite)
    wq = qkv_w[:, :, :EMBED] * scale
    wk = qkv_w[:, :, EMBED:2 * EMBED]
    wv = qkv_w[:, :, 2 * EMBED:]
    w_qkvp = jnp.stack([wq, wk, wv, stack("proj_w")], axis=1).astype(bf16)
    w_fc1 = stack("fc1_w").astype(bf16)                              # (D, E, 4E)
    w_fc2 = stack("fc2_w").astype(bf16)                              # (D, 4E, E)

    def pad_lanes(v):                                                # (D, n)->(D,128)
        return jnp.pad(v, ((0, 0), (0, 128 - v.shape[-1])))

    vec_slab = jnp.stack([
        pad_lanes(stack("ln1_g")), pad_lanes(stack("ln1_b")),
        pad_lanes(qkv_b[:, :EMBED] * scale),                         # bq (scaled)
        pad_lanes(qkv_b[:, EMBED:2 * EMBED]),                        # bk
        pad_lanes(qkv_b[:, 2 * EMBED:]),                             # bv
        pad_lanes(stack("proj_b")),
        pad_lanes(stack("ln2_g")), pad_lanes(stack("ln2_b")),
        pad_lanes(stack("fc1_b")),                                   # (D, 4E=128)
        pad_lanes(stack("fc2_b")),
    ], axis=1).astype(f32)                                           # (D, 10, 128)

    head_w = jnp.zeros((EMBED, HEAD_PAD), f32).at[:, :NUM_CLASSES].set(
        params["head_w"]).astype(bf16)
    fin = jnp.zeros((3, HEAD_PAD), f32)
    fin = fin.at[0, :EMBED].set(params["ln_g"])
    fin = fin.at[1, :EMBED].set(params["ln_b"])
    fin = fin.at[2, :NUM_CLASSES].set(params["head_b"])

    w_patch = params["patch_w"].reshape(EMBED, Cpp).T.astype(bf16)   # (Cpp, E)

    # Single grid-less call: everything VMEM-resident, one kernel invocation.
    out = pl.pallas_call(
        _vit_fused_kernel,
        out_shape=jax.ShapeDtypeStruct((B, HEAD_PAD), f32),
    )(patches_flat, w_patch, tok_bias, attn_bias,
      w_qkvp, w_fc1, w_fc2, vec_slab, head_w, fin)

    return out[:, :NUM_CLASSES]


if __name__ == "__main__":
    key = jax.random.PRNGKey(0)
    pkey, xkey = jax.random.split(key)
    params = init_params(pkey)
    x = jax.random.normal(xkey, (2, IN_CH, 16, 16), jnp.float32)   # NCHW input

    logits = jax.jit(vit_forward)(params, x)
    jax.block_until_ready(logits)
    assert logits.shape == (2, NUM_CLASSES) and logits.dtype == jnp.float32
    print("KERNEL_OK")
</pallas_src>

<mosaic_0001>
module attributes {stable_mosaic.version = 11 : i64} {
  func.func @_vit_fused_kernel(%arg0: memref<48x192xbf16, #tpu.memory_space<vmem>>, %arg1: memref<192x32xbf16, #tpu.memory_space<vmem>>, %arg2: memref<48x32xf32, #tpu.memory_space<vmem>>, %arg3: memref<48x48xf32, #tpu.memory_space<vmem>>, %arg4: memref<2x4x32x32xbf16, #tpu.memory_space<vmem>>, %arg5: memref<2x32x128xbf16, #tpu.memory_space<vmem>>, %arg6: memref<2x128x32xbf16, #tpu.memory_space<vmem>>, %arg7: memref<2x10x128xf32, #tpu.memory_space<vmem>>, %arg8: memref<32x128xbf16, #tpu.memory_space<vmem>>, %arg9: memref<3x128xf32, #tpu.memory_space<vmem>>, %arg10: memref<2x128xf32, #tpu.memory_space<vmem>>) attributes {dimension_semantics = [], scalar_prefetch = 0 : i64, scratch_operands = 0 : i64, tpu.core_type = #tpu.core_type<tc>} {
    %0 = tpu.iota {dimensions = array<i32: 1>} : vector<1x32xi32>
    %c0_i32 = arith.constant 0 : i32
    %1 = vector.broadcast %c0_i32 : i32 to vector<1x32xi32>
    %2 = arith.cmpi sge, %0, %1 : vector<1x32xi32>
    %c8_i32 = arith.constant 8 : i32
    %3 = vector.broadcast %c8_i32 : i32 to vector<1x32xi32>
    %4 = arith.cmpi slt, %0, %3 : vector<1x32xi32>
    %5 = arith.andi %2, %4 : vector<1x32xi1>
    %c8_i32_0 = arith.constant 8 : i32
    %6 = vector.broadcast %c8_i32_0 : i32 to vector<1x32xi32>
    %7 = arith.cmpi sge, %0, %6 : vector<1x32xi32>
    %c16_i32 = arith.constant 16 : i32
    %8 = vector.broadcast %c16_i32 : i32 to vector<1x32xi32>
    %9 = arith.cmpi slt, %0, %8 : vector<1x32xi32>
    %10 = arith.andi %7, %9 : vector<1x32xi1>
    %c16_i32_1 = arith.constant 16 : i32
    %11 = vector.broadcast %c16_i32_1 : i32 to vector<1x32xi32>
    %12 = arith.cmpi sge, %0, %11 : vector<1x32xi32>
    %c24_i32 = arith.constant 24 : i32
    %13 = vector.broadcast %c24_i32 : i32 to vector<1x32xi32>
    %14 = arith.cmpi slt, %0, %13 : vector<1x32xi32>
    %15 = arith.andi %12, %14 : vector<1x32xi1>
    %c24_i32_2 = arith.constant 24 : i32
    %16 = vector.broadcast %c24_i32_2 : i32 to vector<1x32xi32>
    %17 = arith.cmpi sge, %0, %16 : vector<1x32xi32>
    %c32_i32 = arith.constant 32 : i32
    %18 = vector.broadcast %c32_i32 : i32 to vector<1x32xi32>
    %19 = arith.cmpi slt, %0, %18 : vector<1x32xi32>
    %20 = arith.andi %17, %19 : vector<1x32xi1>
    %c0 = arith.constant 0 : index
    %c0_3 = arith.constant 0 : index
    %21 = vector.load %arg3[%c0, %c0_3] : memref<48x48xf32, #tpu.memory_space<vmem>>, vector<48x48xf32>
    %c0_4 = arith.constant 0 : index
    %c0_5 = arith.constant 0 : index
    %22 = vector.load %arg0[%c0_4, %c0_5] : memref<48x192xbf16, #tpu.memory_space<vmem>>, vector<48x192xbf16>
    %c0_6 = arith.constant 0 : index
    %c0_7 = arith.constant 0 : index
    %23 = vector.load %arg1[%c0_6, %c0_7] : memref<192x32xbf16, #tpu.memory_space<vmem>>, vector<192x32xbf16>
    %cst = arith.constant dense<0.000000e+00> : vector<48x32xf32>
    %24 = tpu.matmul %22, %23, %cst {dimension_numbers = #tpu.dot_dimension_numbers<[1], [0], [0], [1], [0, 0, 1, 1], [], []>} : vector<48x192xbf16>, vector<192x32xbf16>, vector<48x32xf32> -> vector<48x32xf32>
    %c0_8 = arith.constant 0 : index
    %c0_9 = arith.constant 0 : index
    %25 = vector.load %arg2[%c0_8, %c0_9] : memref<48x32xf32, #tpu.memory_space<vmem>>, vector<48x32xf32>
    %26 = arith.addf %24, %25 : vector<48x32xf32>
    %c0_10 = arith.constant 0 : index
    %c0_11 = arith.constant 0 : index
    %c0_12 = arith.constant 0 : index
    %27 = vector.load %arg7[%c0_10, %c0_11, %c0_12] : memref<2x10x128xf32, #tpu.memory_space<vmem>>, vector<1x1x32xf32>
    %28 = vector.shape_cast %27 : vector<1x1x32xf32> to vector<1x32xf32>
    %c0_13 = arith.constant 0 : index
    %c1 = arith.constant 1 : index
    %c0_14 = arith.constant 0 : index
    %29 = vector.load %arg7[%c0_13, %c1, %c0_14] : memref<2x10x128xf32, #tpu.memory_space<vmem>>, vector<1x1x32xf32>
    %30 = vector.shape_cast %29 : vector<1x1x32xf32> to vector<1x32xf32>
    %c0_15 = arith.constant 0 : index
    %c2 = arith.constant 2 : index
    %c0_16 = arith.constant 0 : index
    %31 = vector.load %arg7[%c0_15, %c2, %c0_16] : memref<2x10x128xf32, #tpu.memory_space<vmem>>, vector<1x1x32xf32>
    %32 = vector.shape_cast %31 : vector<1x1x32xf32> to vector<1x32xf32>
    %c0_17 = arith.constant 0 : index
    %c3 = arith.constant 3 : index
    %c0_18 = arith.constant 0 : index
    %33 = vector.load %arg7[%c0_17, %c3, %c0_18] : memref<2x10x128xf32, #tpu.memory_space<vmem>>, vector<1x1x32xf32>
    %34 = vector.shape_cast %33 : vector<1x1x32xf32> to vector<1x32xf32>
    %c0_19 = arith.constant 0 : index
    %c4 = arith.constant 4 : index
    %c0_20 = arith.constant 0 : index
    %35 = vector.load %arg7[%c0_19, %c4, %c0_20] : memref<2x10x128xf32, #tpu.memory_space<vmem>>, vector<1x1x32xf32>
    %36 = vector.shape_cast %35 : vector<1x1x32xf32> to vector<1x32xf32>
    %c0_21 = arith.constant 0 : index
    %c5 = arith.constant 5 : index
    %c0_22 = arith.constant 0 : index
    %37 = vector.load %arg7[%c0_21, %c5, %c0_22] : memref<2x10x128xf32, #tpu.memory_space<vmem>>, vector<1x1x32xf32>
    %38 = vector.shape_cast %37 : vector<1x1x32xf32> to vector<1x32xf32>
    %c0_23 = arith.constant 0 : index
    %c6 = arith.constant 6 : index
    %c0_24 = arith.constant 0 : index
    %39 = vector.load %arg7[%c0_23, %c6, %c0_24] : memref<2x10x128xf32, #tpu.memory_space<vmem>>, vector<1x1x32xf32>
    %40 = vector.shape_cast %39 : vector<1x1x32xf32> to vector<1x32xf32>
    %c0_25 = arith.constant 0 : index
    %c7 = arith.constant 7 : index
    %c0_26 = arith.constant 0 : index
    %41 = vector.load %arg7[%c0_25, %c7, %c0_26] : memref<2x10x128xf32, #tpu.memory_space<vmem>>, vector<1x1x32xf32>
    %42 = vector.shape_cast %41 : vector<1x1x32xf32> to vector<1x32xf32>
    %c0_27 = arith.constant 0 : index
    %c8 = arith.constant 8 : index
    %c0_28 = arith.constant 0 : index
    %43 = vector.load %arg7[%c0_27, %c8, %c0_28] : memref<2x10x128xf32, #tpu.memory_space<vmem>>, vector<1x1x128xf32>
    %44 = vector.shape_cast %43 : vector<1x1x128xf32> to vector<1x128xf32>
    %c0_29 = arith.constant 0 : index
    %c9 = arith.constant 9 : index
    %c0_30 = arith.constant 0 : index
    %45 = vector.load %arg7[%c0_29, %c9, %c0_30] : memref<2x10x128xf32, #tpu.memory_space<vmem>>, vector<1x1x32xf32>
    %46 = vector.shape_cast %45 : vector<1x1x32xf32> to vector<1x32xf32>
    %cst_31 = arith.constant dense<0.000000e+00> : vector<48xf32>
    %47 = vector.multi_reduction <add>, %26, %cst_31 [1] : vector<48x32xf32> to vector<48xf32>
    %48 = vector.shape_cast %47 : vector<48xf32> to vector<48x1xf32>
    %cst_32 = arith.constant 3.200000e+01 : f32
    %49 = vector.broadcast %cst_32 : f32 to vector<48x1xf32>
    %50 = arith.divf %48, %49 : vector<48x1xf32>
    %51 = vector.broadcast %50 : vector<48x1xf32> to vector<48x32xf32>
    %52 = arith.subf %26, %51 : vector<48x32xf32>
    %53 = arith.mulf %52, %52 : vector<48x32xf32>
    %cst_33 = arith.constant dense<0.000000e+00> : vector<48xf32>
    %54 = vector.multi_reduction <add>, %53, %cst_33 [1] : vector<48x32xf32> to vector<48xf32>
    %55 = vector.shape_cast %54 : vector<48xf32> to vector<48x1xf32>
    %cst_34 = arith.constant 3.200000e+01 : f32
    %56 = vector.broadcast %cst_34 : f32 to vector<48x1xf32>
    %57 = arith.divf %55, %56 : vector<48x1xf32>
    %58 = vector.broadcast %50 : vector<48x1xf32> to vector<48x32xf32>
    %59 = arith.subf %26, %58 : vector<48x32xf32>
    %cst_35 = arith.constant 9.99999997E-7 : f32
    %60 = vector.broadcast %cst_35 : f32 to vector<48x1xf32>
    %61 = arith.addf %57, %60 : vector<48x1xf32>
    %62 = math.rsqrt %61 : vector<48x1xf32>
    %63 = vector.broadcast %62 : vector<48x1xf32> to vector<48x32xf32>
    %64 = arith.mulf %59, %63 : vector<48x32xf32>
    %65 = vector.broadcast %28 : vector<1x32xf32> to vector<48x32xf32>
    %66 = arith.mulf %64, %65 : vector<48x32xf32>
    %67 = vector.broadcast %30 : vector<1x32xf32> to vector<48x32xf32>
    %68 = arith.addf %66, %67 : vector<48x32xf32>
    %69 = arith.truncf %68 : vector<48x32xf32> to vector<48x32xbf16>
    %c0_36 = arith.constant 0 : index
    %c0_37 = arith.constant 0 : index
    %c0_38 = arith.constant 0 : index
    %c0_39 = arith.constant 0 : index
    %70 = vector.load %arg4[%c0_36, %c0_37, %c0_38, %c0_39] : memref<2x4x32x32xbf16, #tpu.memory_space<vmem>>, vector<1x1x32x32xbf16>
    %71 = vector.shape_cast %70 : vector<1x1x32x32xbf16> to vector<32x32xbf16>
    %cst_40 = arith.constant dense<0.000000e+00> : vector<48x32xf32>
    %72 = tpu.matmul %69, %71, %cst_40 {dimension_numbers = #tpu.dot_dimension_numbers<[1], [0], [0], [1], [0, 0, 1, 1], [], []>} : vector<48x32xbf16>, vector<32x32xbf16>, vector<48x32xf32> -> vector<48x32xf32>
    %73 = vector.broadcast %32 : vector<1x32xf32> to vector<48x32xf32>
    %74 = arith.addf %72, %73 : vector<48x32xf32>
    %c0_41 = arith.constant 0 : index
    %c1_42 = arith.constant 1 : index
    %c0_43 = arith.constant 0 : index
    %c0_44 = arith.constant 0 : index
    %75 = vector.load %arg4[%c0_41, %c1_42, %c0_43, %c0_44] : memref<2x4x32x32xbf16, #tpu.memory_space<vmem>>, vector<1x1x32x32xbf16>
    %76 = vector.shape_cast %75 : vector<1x1x32x32xbf16> to vector<32x32xbf16>
    %cst_45 = arith.constant dense<0.000000e+00> : vector<48x32xf32>
    %77 = tpu.matmul %69, %76, %cst_45 {dimension_numbers = #tpu.dot_dimension_numbers<[1], [0], [0], [1], [0, 0, 1, 1], [], []>} : vector<48x32xbf16>, vector<32x32xbf16>, vector<48x32xf32> -> vector<48x32xf32>
    %78 = vector.broadcast %34 : vector<1x32xf32> to vector<48x32xf32>
    %79 = arith.addf %77, %78 : vector<48x32xf32>
    %c0_46 = arith.constant 0 : index
    %c2_47 = arith.constant 2 : index
    %c0_48 = arith.constant 0 : index
    %c0_49 = arith.constant 0 : index
    %80 = vector.load %arg4[%c0_46, %c2_47, %c0_48, %c0_49] : memref<2x4x32x32xbf16, #tpu.memory_space<vmem>>, vector<1x1x32x32xbf16>
    %81 = vector.shape_cast %80 : vector<1x1x32x32xbf16> to vector<32x32xbf16>
    %cst_50 = arith.constant dense<0.000000e+00> : vector<48x32xf32>
    %82 = tpu.matmul %69, %81, %cst_50 {dimension_numbers = #tpu.dot_dimension_numbers<[1], [0], [0], [1], [0, 0, 1, 1], [], []>} : vector<48x32xbf16>, vector<32x32xbf16>, vector<48x32xf32> -> vector<48x32xf32>
    %83 = vector.broadcast %36 : vector<1x32xf32> to vector<48x32xf32>
    %84 = arith.addf %82, %83 : vector<48x32xf32>
    %85 = arith.truncf %79 : vector<48x32xf32> to vector<48x32xbf16>
    %86 = arith.truncf %84 : vector<48x32xf32> to vector<48x32xbf16>
    %cst_51 = arith.constant 0.000000e+00 : f32
    %87 = vector.broadcast %cst_51 : f32 to vector<48x32xf32>
    %cst_52 = arith.constant 0.000000e+00 : f32
    %88 = vector.shape_cast %5 : vector<1x32xi1> to vector<1x32xi1>
    %89 = vector.broadcast %88 : vector<1x32xi1> to vector<48x32xi1>
    %90 = vector.broadcast %cst_52 : f32 to vector<48x32xf32>
    %91 = arith.select %89, %74, %90 : vector<48x32xi1>, vector<48x32xf32>
    %92 = arith.truncf %91 : vector<48x32xf32> to vector<48x32xbf16>
    %cst_53 = arith.constant dense<0.000000e+00> : vector<48x48xf32>
    %93 = tpu.matmul %92, %85, %cst_53 {dimension_numbers = #tpu.dot_dimension_numbers<[1], [1], [0], [0], [0, 0, 1, 0], [], []>} : vector<48x32xbf16>, vector<48x32xbf16>, vector<48x48xf32> -> vector<48x48xf32>
    %94 = arith.addf %93, %21 : vector<48x48xf32>
    %cst_54 = arith.constant dense<0xFF800000> : vector<48xf32>
    %95 = vector.multi_reduction <maximumf>, %94, %cst_54 [1] : vector<48x48xf32> to vector<48xf32>
    %96 = vector.shape_cast %95 : vector<48xf32> to vector<48x1xf32>
    %97 = vector.broadcast %96 : vector<48x1xf32> to vector<48x48xf32>
    %98 = arith.subf %94, %97 : vector<48x48xf32>
    %99 = math.exp %98 : vector<48x48xf32>
    %cst_55 = arith.constant dense<0.000000e+00> : vector<48xf32>
    %100 = vector.multi_reduction <add>, %99, %cst_55 [1] : vector<48x48xf32> to vector<48xf32>
    %101 = vector.shape_cast %100 : vector<48xf32> to vector<48x1xf32>
    %102 = tpu.reciprocal %101 {approx = true} : vector<48x1xf32> -> vector<48x1xf32>
    %103 = vector.broadcast %102 : vector<48x1xf32> to vector<48x48xf32>
    %104 = arith.mulf %99, %103 : vector<48x48xf32>
    %105 = arith.truncf %104 : vector<48x48xf32> to vector<48x48xbf16>
    %cst_56 = arith.constant dense<0.000000e+00> : vector<48x32xf32>
    %106 = tpu.matmul %105, %86, %cst_56 {dimension_numbers = #tpu.dot_dimension_numbers<[1], [0], [0], [1], [0, 0, 1, 1], [], []>} : vector<48x48xbf16>, vector<48x32xbf16>, vector<48x32xf32> -> vector<48x32xf32>
    %cst_57 = arith.constant 0.000000e+00 : f32
    %107 = vector.shape_cast %5 : vector<1x32xi1> to vector<1x32xi1>
    %108 = vector.broadcast %107 : vector<1x32xi1> to vector<48x32xi1>
    %109 = vector.broadcast %cst_57 : f32 to vector<48x32xf32>
    %110 = arith.select %108, %106, %109 : vector<48x32xi1>, vector<48x32xf32>
    %111 = arith.addf %87, %110 : vector<48x32xf32>
    %cst_58 = arith.constant 0.000000e+00 : f32
    %112 = vector.shape_cast %10 : vector<1x32xi1> to vector<1x32xi1>
    %113 = vector.broadcast %112 : vector<1x32xi1> to vector<48x32xi1>
    %114 = vector.broadcast %cst_58 : f32 to vector<48x32xf32>
    %115 = arith.select %113, %74, %114 : vector<48x32xi1>, vector<48x32xf32>
    %116 = arith.truncf %115 : vector<48x32xf32> to vector<48x32xbf16>
    %cst_59 = arith.constant dense<0.000000e+00> : vector<48x48xf32>
    %117 = tpu.matmul %116, %85, %cst_59 {dimension_numbers = #tpu.dot_dimension_numbers<[1], [1], [0], [0], [0, 0, 1, 0], [], []>} : vector<48x32xbf16>, vector<48x32xbf16>, vector<48x48xf32> -> vector<48x48xf32>
    %118 = arith.addf %117, %21 : vector<48x48xf32>
    %cst_60 = arith.constant dense<0xFF800000> : vector<48xf32>
    %119 = vector.multi_reduction <maximumf>, %118, %cst_60 [1] : vector<48x48xf32> to vector<48xf32>
    %120 = vector.shape_cast %119 : vector<48xf32> to vector<48x1xf32>
    %121 = vector.broadcast %120 : vector<48x1xf32> to vector<48x48xf32>
    %122 = arith.subf %118, %121 : vector<48x48xf32>
    %123 = math.exp %122 : vector<48x48xf32>
    %cst_61 = arith.constant dense<0.000000e+00> : vector<48xf32>
    %124 = vector.multi_reduction <add>, %123, %cst_61 [1] : vector<48x48xf32> to vector<48xf32>
    %125 = vector.shape_cast %124 : vector<48xf32> to vector<48x1xf32>
    %126 = tpu.reciprocal %125 {approx = true} : vector<48x1xf32> -> vector<48x1xf32>
    %127 = vector.broadcast %126 : vector<48x1xf32> to vector<48x48xf32>
    %128 = arith.mulf %123, %127 : vector<48x48xf32>
    %129 = arith.truncf %128 : vector<48x48xf32> to vector<48x48xbf16>
    %cst_62 = arith.constant dense<0.000000e+00> : vector<48x32xf32>
    %130 = tpu.matmul %129, %86, %cst_62 {dimension_numbers = #tpu.dot_dimension_numbers<[1], [0], [0], [1], [0, 0, 1, 1], [], []>} : vector<48x48xbf16>, vector<48x32xbf16>, vector<48x32xf32> -> vector<48x32xf32>
    %cst_63 = arith.constant 0.000000e+00 : f32
    %131 = vector.shape_cast %10 : vector<1x32xi1> to vector<1x32xi1>
    %132 = vector.broadcast %131 : vector<1x32xi1> to vector<48x32xi1>
    %133 = vector.broadcast %cst_63 : f32 to vector<48x32xf32>
    %134 = arith.select %132, %130, %133 : vector<48x32xi1>, vector<48x32xf32>
    %135 = arith.addf %111, %134 : vector<48x32xf32>
    %cst_64 = arith.constant 0.000000e+00 : f32
    %136 = vector.shape_cast %15 : vector<1x32xi1> to vector<1x32xi1>
    %137 = vector.broadcast %136 : vector<1x32xi1> to vector<48x32xi1>
    %138 = vector.broadcast %cst_64 : f32 to vector<48x32xf32>
    %139 = arith.select %137, %74, %138 : vector<48x32xi1>, vector<48x32xf32>
    %140 = arith.truncf %139 : vector<48x32xf32> to vector<48x32xbf16>
    %cst_65 = arith.constant dense<0.000000e+00> : vector<48x48xf32>
    %141 = tpu.matmul %140, %85, %cst_65 {dimension_numbers = #tpu.dot_dimension_numbers<[1], [1], [0], [0], [0, 0, 1, 0], [], []>} : vector<48x32xbf16>, vector<48x32xbf16>, vector<48x48xf32> -> vector<48x48xf32>
    %142 = arith.addf %141, %21 : vector<48x48xf32>
    %cst_66 = arith.constant dense<0xFF800000> : vector<48xf32>
    %143 = vector.multi_reduction <maximumf>, %142, %cst_66 [1] : vector<48x48xf32> to vector<48xf32>
    %144 = vector.shape_cast %143 : vector<48xf32> to vector<48x1xf32>
    %145 = vector.broadcast %144 : vector<48x1xf32> to vector<48x48xf32>
    %146 = arith.subf %142, %145 : vector<48x48xf32>
    %147 = math.exp %146 : vector<48x48xf32>
    %cst_67 = arith.constant dense<0.000000e+00> : vector<48xf32>
    %148 = vector.multi_reduction <add>, %147, %cst_67 [1] : vector<48x48xf32> to vector<48xf32>
    %149 = vector.shape_cast %148 : vector<48xf32> to vector<48x1xf32>
    %150 = tpu.reciprocal %149 {approx = true} : vector<48x1xf32> -> vector<48x1xf32>
    %151 = vector.broadcast %150 : vector<48x1xf32> to vector<48x48xf32>
    %152 = arith.mulf %147, %151 : vector<48x48xf32>
    %153 = arith.truncf %152 : vector<48x48xf32> to vector<48x48xbf16>
    %cst_68 = arith.constant dense<0.000000e+00> : vector<48x32xf32>
    %154 = tpu.matmul %153, %86, %cst_68 {dimension_numbers = #tpu.dot_dimension_numbers<[1], [0], [0], [1], [0, 0, 1, 1], [], []>} : vector<48x48xbf16>, vector<48x32xbf16>, vector<48x32xf32> -> vector<48x32xf32>
    %cst_69 = arith.constant 0.000000e+00 : f32
    %155 = vector.shape_cast %15 : vector<1x32xi1> to vector<1x32xi1>
    %156 = vector.broadcast %155 : vector<1x32xi1> to vector<48x32xi1>
    %157 = vector.broadcast %cst_69 : f32 to vector<48x32xf32>
    %158 = arith.select %156, %154, %157 : vector<48x32xi1>, vector<48x32xf32>
    %159 = arith.addf %135, %158 : vector<48x32xf32>
    %cst_70 = arith.constant 0.000000e+00 : f32
    %160 = vector.shape_cast %20 : vector<1x32xi1> to vector<1x32xi1>
    %161 = vector.broadcast %160 : vector<1x32xi1> to vector<48x32xi1>
    %162 = vector.broadcast %cst_70 : f32 to vector<48x32xf32>
    %163 = arith.select %161, %74, %162 : vector<48x32xi1>, vector<48x32xf32>
    %164 = arith.truncf %163 : vector<48x32xf32> to vector<48x32xbf16>
    %cst_71 = arith.constant dense<0.000000e+00> : vector<48x48xf32>
    %165 = tpu.matmul %164, %85, %cst_71 {dimension_numbers = #tpu.dot_dimension_numbers<[1], [1], [0], [0], [0, 0, 1, 0], [], []>} : vector<48x32xbf16>, vector<48x32xbf16>, vector<48x48xf32> -> vector<48x48xf32>
    %166 = arith.addf %165, %21 : vector<48x48xf32>
    %cst_72 = arith.constant dense<0xFF800000> : vector<48xf32>
    %167 = vector.multi_reduction <maximumf>, %166, %cst_72 [1] : vector<48x48xf32> to vector<48xf32>
    %168 = vector.shape_cast %167 : vector<48xf32> to vector<48x1xf32>
    %169 = vector.broadcast %168 : vector<48x1xf32> to vector<48x48xf32>
    %170 = arith.subf %166, %169 : vector<48x48xf32>
    %171 = math.exp %170 : vector<48x48xf32>
    %cst_73 = arith.constant dense<0.000000e+00> : vector<48xf32>
    %172 = vector.multi_reduction <add>, %171, %cst_73 [1] : vector<48x48xf32> to vector<48xf32>
    %173 = vector.shape_cast %172 : vector<48xf32> to vector<48x1xf32>
    %174 = tpu.reciprocal %173 {approx = true} : vector<48x1xf32> -> vector<48x1xf32>
    %175 = vector.broadcast %174 : vector<48x1xf32> to vector<48x48xf32>
    %176 = arith.mulf %171, %175 : vector<48x48xf32>
    %177 = arith.truncf %176 : vector<48x48xf32> to vector<48x48xbf16>
    %cst_74 = arith.constant dense<0.000000e+00> : vector<48x32xf32>
    %178 = tpu.matmul %177, %86, %cst_74 {dimension_numbers = #tpu.dot_dimension_numbers<[1], [0], [0], [1], [0, 0, 1, 1], [], []>} : vector<48x48xbf16>, vector<48x32xbf16>, vector<48x32xf32> -> vector<48x32xf32>
    %cst_75 = arith.constant 0.000000e+00 : f32
    %179 = vector.shape_cast %20 : vector<1x32xi1> to vector<1x32xi1>
    %180 = vector.broadcast %179 : vector<1x32xi1> to vector<48x32xi1>
    %181 = vector.broadcast %cst_75 : f32 to vector<48x32xf32>
    %182 = arith.select %180, %178, %181 : vector<48x32xi1>, vector<48x32xf32>
    %183 = arith.addf %159, %182 : vector<48x32xf32>
    %184 = arith.truncf %183 : vector<48x32xf32> to vector<48x32xbf16>
    %c0_76 = arith.constant 0 : index
    %c3_77 = arith.constant 3 : index
    %c0_78 = arith.constant 0 : index
    %c0_79 = arith.constant 0 : index
    %185 = vector.load %arg4[%c0_76, %c3_77, %c0_78, %c0_79] : memref<2x4x32x32xbf16, #tpu.memory_space<vmem>>, vector<1x1x32x32xbf16>
    %186 = vector.shape_cast %185 : vector<1x1x32x32xbf16> to vector<32x32xbf16>
    %cst_80 = arith.constant dense<0.000000e+00> : vector<48x32xf32>
    %187 = tpu.matmul %184, %186, %cst_80 {dimension_numbers = #tpu.dot_dimension_numbers<[1], [0], [0], [1], [0, 0, 1, 1], [], []>} : vector<48x32xbf16>, vector<32x32xbf16>, vector<48x32xf32> -> vector<48x32xf32>
    %188 = vector.broadcast %38 : vector<1x32xf32> to vector<48x32xf32>
    %189 = arith.addf %187, %188 : vector<48x32xf32>
    %190 = arith.addf %26, %189 : vector<48x32xf32>
    %cst_81 = arith.constant dense<0.000000e+00> : vector<48xf32>
    %191 = vector.multi_reduction <add>, %190, %cst_81 [1] : vector<48x32xf32> to vector<48xf32>
    %192 = vector.shape_cast %191 : vector<48xf32> to vector<48x1xf32>
    %cst_82 = arith.constant 3.200000e+01 : f32
    %193 = vector.broadcast %cst_82 : f32 to vector<48x1xf32>
    %194 = arith.divf %192, %193 : vector<48x1xf32>
    %195 = vector.broadcast %194 : vector<48x1xf32> to vector<48x32xf32>
    %196 = arith.subf %190, %195 : vector<48x32xf32>
    %197 = arith.mulf %196, %196 : vector<48x32xf32>
    %cst_83 = arith.constant dense<0.000000e+00> : vector<48xf32>
    %198 = vector.multi_reduction <add>, %197, %cst_83 [1] : vector<48x32xf32> to vector<48xf32>
    %199 = vector.shape_cast %198 : vector<48xf32> to vector<48x1xf32>
    %cst_84 = arith.constant 3.200000e+01 : f32
    %200 = vector.broadcast %cst_84 : f32 to vector<48x1xf32>
    %201 = arith.divf %199, %200 : vector<48x1xf32>
    %202 = vector.broadcast %194 : vector<48x1xf32> to vector<48x32xf32>
    %203 = arith.subf %190, %202 : vector<48x32xf32>
    %cst_85 = arith.constant 9.99999997E-7 : f32
    %204 = vector.broadcast %cst_85 : f32 to vector<48x1xf32>
    %205 = arith.addf %201, %204 : vector<48x1xf32>
    %206 = math.rsqrt %205 : vector<48x1xf32>
    %207 = vector.broadcast %206 : vector<48x1xf32> to vector<48x32xf32>
    %208 = arith.mulf %203, %207 : vector<48x32xf32>
    %209 = vector.broadcast %40 : vector<1x32xf32> to vector<48x32xf32>
    %210 = arith.mulf %208, %209 : vector<48x32xf32>
    %211 = vector.broadcast %42 : vector<1x32xf32> to vector<48x32xf32>
    %212 = arith.addf %210, %211 : vector<48x32xf32>
    %213 = arith.truncf %212 : vector<48x32xf32> to vector<48x32xbf16>
    %c0_86 = arith.constant 0 : index
    %c0_87 = arith.constant 0 : index
    %c0_88 = arith.constant 0 : index
    %214 = vector.load %arg5[%c0_86, %c0_87, %c0_88] : memref<2x32x128xbf16, #tpu.memory_space<vmem>>, vector<1x32x128xbf16>
    %215 = vector.shape_cast %214 : vector<1x32x128xbf16> to vector<32x128xbf16>
    %cst_89 = arith.constant dense<0.000000e+00> : vector<48x128xf32>
    %216 = tpu.matmul %213, %215, %cst_89 {dimension_numbers = #tpu.dot_dimension_numbers<[1], [0], [0], [1], [0, 0, 1, 1], [], []>} : vector<48x32xbf16>, vector<32x128xbf16>, vector<48x128xf32> -> vector<48x128xf32>
    %217 = vector.broadcast %44 : vector<1x128xf32> to vector<48x128xf32>
    %218 = arith.addf %216, %217 : vector<48x128xf32>
    %219 = arith.mulf %218, %218 : vector<48x128xf32>
    %220 = arith.mulf %218, %219 : vector<48x128xf32>
    %cst_90 = arith.constant 4.471500e-02 : f32
    %221 = vector.broadcast %cst_90 : f32 to vector<48x128xf32>
    %222 = arith.mulf %221, %220 : vector<48x128xf32>
    %223 = arith.addf %218, %222 : vector<48x128xf32>
    %cst_91 = arith.constant 0.797884583 : f32
    %224 = vector.broadcast %cst_91 : f32 to vector<48x128xf32>
    %225 = arith.mulf %224, %223 : vector<48x128xf32>
    %226 = math.tanh %225 : vector<48x128xf32>
    %cst_92 = arith.constant 1.000000e+00 : f32
    %227 = vector.broadcast %cst_92 : f32 to vector<48x128xf32>
    %228 = arith.addf %227, %226 : vector<48x128xf32>
    %cst_93 = arith.constant 5.000000e-01 : f32
    %229 = vector.broadcast %cst_93 : f32 to vector<48x128xf32>
    %230 = arith.mulf %229, %228 : vector<48x128xf32>
    %231 = arith.mulf %218, %230 : vector<48x128xf32>
    %232 = arith.truncf %231 : vector<48x128xf32> to vector<48x128xbf16>
    %c0_94 = arith.constant 0 : index
    %c0_95 = arith.constant 0 : index
    %c0_96 = arith.constant 0 : index
    %233 = vector.load %arg6[%c0_94, %c0_95, %c0_96] : memref<2x128x32xbf16, #tpu.memory_space<vmem>>, vector<1x128x32xbf16>
    %234 = vector.shape_cast %233 : vector<1x128x32xbf16> to vector<128x32xbf16>
    %cst_97 = arith.constant dense<0.000000e+00> : vector<48x32xf32>
    %235 = tpu.matmul %232, %234, %cst_97 {dimension_numbers = #tpu.dot_dimension_numbers<[1], [0], [0], [1], [0, 0, 1, 1], [], []>} : vector<48x128xbf16>, vector<128x32xbf16>, vector<48x32xf32> -> vector<48x32xf32>
    %236 = vector.broadcast %46 : vector<1x32xf32> to vector<48x32xf32>
    %237 = arith.addf %235, %236 : vector<48x32xf32>
    %238 = arith.addf %190, %237 : vector<48x32xf32>
    %c1_98 = arith.constant 1 : index
    %c0_99 = arith.constant 0 : index
    %c0_100 = arith.constant 0 : index
    %239 = vector.load %arg7[%c1_98, %c0_99, %c0_100] : memref<2x10x128xf32, #tpu.memory_space<vmem>>, vector<1x1x32xf32>
    %240 = vector.shape_cast %239 : vector<1x1x32xf32> to vector<1x32xf32>
    %c1_101 = arith.constant 1 : index
    %c1_102 = arith.constant 1 : index
    %c0_103 = arith.constant 0 : index
    %241 = vector.load %arg7[%c1_101, %c1_102, %c0_103] : memref<2x10x128xf32, #tpu.memory_space<vmem>>, vector<1x1x32xf32>
    %242 = vector.shape_cast %241 : vector<1x1x32xf32> to vector<1x32xf32>
    %c1_104 = arith.constant 1 : index
    %c2_105 = arith.constant 2 : index
    %c0_106 = arith.constant 0 : index
    %243 = vector.load %arg7[%c1_104, %c2_105, %c0_106] : memref<2x10x128xf32, #tpu.memory_space<vmem>>, vector<1x1x32xf32>
    %244 = vector.shape_cast %243 : vector<1x1x32xf32> to vector<1x32xf32>
    %c1_107 = arith.constant 1 : index
    %c3_108 = arith.constant 3 : index
    %c0_109 = arith.constant 0 : index
    %245 = vector.load %arg7[%c1_107, %c3_108, %c0_109] : memref<2x10x128xf32, #tpu.memory_space<vmem>>, vector<1x1x32xf32>
    %246 = vector.shape_cast %245 : vector<1x1x32xf32> to vector<1x32xf32>
    %c1_110 = arith.constant 1 : index
    %c4_111 = arith.constant 4 : index
    %c0_112 = arith.constant 0 : index
    %247 = vector.load %arg7[%c1_110, %c4_111, %c0_112] : memref<2x10x128xf32, #tpu.memory_space<vmem>>, vector<1x1x32xf32>
    %248 = vector.shape_cast %247 : vector<1x1x32xf32> to vector<1x32xf32>
    %c1_113 = arith.constant 1 : index
    %c5_114 = arith.constant 5 : index
    %c0_115 = arith.constant 0 : index
    %249 = vector.load %arg7[%c1_113, %c5_114, %c0_115] : memref<2x10x128xf32, #tpu.memory_space<vmem>>, vector<1x1x32xf32>
    %250 = vector.shape_cast %249 : vector<1x1x32xf32> to vector<1x32xf32>
    %c1_116 = arith.constant 1 : index
    %c6_117 = arith.constant 6 : index
    %c0_118 = arith.constant 0 : index
    %251 = vector.load %arg7[%c1_116, %c6_117, %c0_118] : memref<2x10x128xf32, #tpu.memory_space<vmem>>, vector<1x1x32xf32>
    %252 = vector.shape_cast %251 : vector<1x1x32xf32> to vector<1x32xf32>
    %c1_119 = arith.constant 1 : index
    %c7_120 = arith.constant 7 : index
    %c0_121 = arith.constant 0 : index
    %253 = vector.load %arg7[%c1_119, %c7_120, %c0_121] : memref<2x10x128xf32, #tpu.memory_space<vmem>>, vector<1x1x32xf32>
    %254 = vector.shape_cast %253 : vector<1x1x32xf32> to vector<1x32xf32>
    %c1_122 = arith.constant 1 : index
    %c8_123 = arith.constant 8 : index
    %c0_124 = arith.constant 0 : index
    %255 = vector.load %arg7[%c1_122, %c8_123, %c0_124] : memref<2x10x128xf32, #tpu.memory_space<vmem>>, vector<1x1x128xf32>
    %256 = vector.shape_cast %255 : vector<1x1x128xf32> to vector<1x128xf32>
    %c1_125 = arith.constant 1 : index
    %c9_126 = arith.constant 9 : index
    %c0_127 = arith.constant 0 : index
    %257 = vector.load %arg7[%c1_125, %c9_126, %c0_127] : memref<2x10x128xf32, #tpu.memory_space<vmem>>, vector<1x1x32xf32>
    %258 = vector.shape_cast %257 : vector<1x1x32xf32> to vector<1x32xf32>
    %cst_128 = arith.constant dense<0.000000e+00> : vector<48xf32>
    %259 = vector.multi_reduction <add>, %238, %cst_128 [1] : vector<48x32xf32> to vector<48xf32>
    %260 = vector.shape_cast %259 : vector<48xf32> to vector<48x1xf32>
    %cst_129 = arith.constant 3.200000e+01 : f32
    %261 = vector.broadcast %cst_129 : f32 to vector<48x1xf32>
    %262 = arith.divf %260, %261 : vector<48x1xf32>
    %263 = vector.broadcast %262 : vector<48x1xf32> to vector<48x32xf32>
    %264 = arith.subf %238, %263 : vector<48x32xf32>
    %265 = arith.mulf %264, %264 : vector<48x32xf32>
    %cst_130 = arith.constant dense<0.000000e+00> : vector<48xf32>
    %266 = vector.multi_reduction <add>, %265, %cst_130 [1] : vector<48x32xf32> to vector<48xf32>
    %267 = vector.shape_cast %266 : vector<48xf32> to vector<48x1xf32>
    %cst_131 = arith.constant 3.200000e+01 : f32
    %268 = vector.broadcast %cst_131 : f32 to vector<48x1xf32>
    %269 = arith.divf %267, %268 : vector<48x1xf32>
    %270 = vector.broadcast %262 : vector<48x1xf32> to vector<48x32xf32>
    %271 = arith.subf %238, %270 : vector<48x32xf32>
    %cst_132 = arith.constant 9.99999997E-7 : f32
    %272 = vector.broadcast %cst_132 : f32 to vector<48x1xf32>
    %273 = arith.addf %269, %272 : vector<48x1xf32>
    %274 = math.rsqrt %273 : vector<48x1xf32>
    %275 = vector.broadcast %274 : vector<48x1xf32> to vector<48x32xf32>
    %276 = arith.mulf %271, %275 : vector<48x32xf32>
    %277 = vector.broadcast %240 : vector<1x32xf32> to vector<48x32xf32>
    %278 = arith.mulf %276, %277 : vector<48x32xf32>
    %279 = vector.broadcast %242 : vector<1x32xf32> to vector<48x32xf32>
    %280 = arith.addf %278, %279 : vector<48x32xf32>
    %281 = arith.truncf %280 : vector<48x32xf32> to vector<48x32xbf16>
    %c1_133 = arith.constant 1 : index
    %c0_134 = arith.constant 0 : index
    %c0_135 = arith.constant 0 : index
    %c0_136 = arith.constant 0 : index
    %282 = vector.load %arg4[%c1_133, %c0_134, %c0_135, %c0_136] : memref<2x4x32x32xbf16, #tpu.memory_space<vmem>>, vector<1x1x32x32xbf16>
    %283 = vector.shape_cast %282 : vector<1x1x32x32xbf16> to vector<32x32xbf16>
    %cst_137 = arith.constant dense<0.000000e+00> : vector<48x32xf32>
    %284 = tpu.matmul %281, %283, %cst_137 {dimension_numbers = #tpu.dot_dimension_numbers<[1], [0], [0], [1], [0, 0, 1, 1], [], []>} : vector<48x32xbf16>, vector<32x32xbf16>, vector<48x32xf32> -> vector<48x32xf32>
    %285 = vector.broadcast %244 : vector<1x32xf32> to vector<48x32xf32>
    %286 = arith.addf %284, %285 : vector<48x32xf32>
    %c1_138 = arith.constant 1 : index
    %c1_139 = arith.constant 1 : index
    %c0_140 = arith.constant 0 : index
    %c0_141 = arith.constant 0 : index
    %287 = vector.load %arg4[%c1_138, %c1_139, %c0_140, %c0_141] : memref<2x4x32x32xbf16, #tpu.memory_space<vmem>>, vector<1x1x32x32xbf16>
    %288 = vector.shape_cast %287 : vector<1x1x32x32xbf16> to vector<32x32xbf16>
    %cst_142 = arith.constant dense<0.000000e+00> : vector<48x32xf32>
    %289 = tpu.matmul %281, %288, %cst_142 {dimension_numbers = #tpu.dot_dimension_numbers<[1], [0], [0], [1], [0, 0, 1, 1], [], []>} : vector<48x32xbf16>, vector<32x32xbf16>, vector<48x32xf32> -> vector<48x32xf32>
    %290 = vector.broadcast %246 : vector<1x32xf32> to vector<48x32xf32>
    %291 = arith.addf %289, %290 : vector<48x32xf32>
    %c1_143 = arith.constant 1 : index
    %c2_144 = arith.constant 2 : index
    %c0_145 = arith.constant 0 : index
    %c0_146 = arith.constant 0 : index
    %292 = vector.load %arg4[%c1_143, %c2_144, %c0_145, %c0_146] : memref<2x4x32x32xbf16, #tpu.memory_space<vmem>>, vector<1x1x32x32xbf16>
    %293 = vector.shape_cast %292 : vector<1x1x32x32xbf16> to vector<32x32xbf16>
    %cst_147 = arith.constant dense<0.000000e+00> : vector<48x32xf32>
    %294 = tpu.matmul %281, %293, %cst_147 {dimension_numbers = #tpu.dot_dimension_numbers<[1], [0], [0], [1], [0, 0, 1, 1], [], []>} : vector<48x32xbf16>, vector<32x32xbf16>, vector<48x32xf32> -> vector<48x32xf32>
    %295 = vector.broadcast %248 : vector<1x32xf32> to vector<48x32xf32>
    %296 = arith.addf %294, %295 : vector<48x32xf32>
    %297 = arith.truncf %291 : vector<48x32xf32> to vector<48x32xbf16>
    %298 = arith.truncf %296 : vector<48x32xf32> to vector<48x32xbf16>
    %cst_148 = arith.constant 0.000000e+00 : f32
    %299 = vector.broadcast %cst_148 : f32 to vector<48x32xf32>
    %cst_149 = arith.constant 0.000000e+00 : f32
    %300 = vector.shape_cast %5 : vector<1x32xi1> to vector<1x32xi1>
    %301 = vector.broadcast %300 : vector<1x32xi1> to vector<48x32xi1>
    %302 = vector.broadcast %cst_149 : f32 to vector<48x32xf32>
    %303 = arith.select %301, %286, %302 : vector<48x32xi1>, vector<48x32xf32>
    %304 = arith.truncf %303 : vector<48x32xf32> to vector<48x32xbf16>
    %cst_150 = arith.constant dense<0.000000e+00> : vector<48x48xf32>
    %305 = tpu.matmul %304, %297, %cst_150 {dimension_numbers = #tpu.dot_dimension_numbers<[1], [1], [0], [0], [0, 0, 1, 0], [], []>} : vector<48x32xbf16>, vector<48x32xbf16>, vector<48x48xf32> -> vector<48x48xf32>
    %306 = arith.addf %305, %21 : vector<48x48xf32>
    %cst_151 = arith.constant dense<0xFF800000> : vector<48xf32>
    %307 = vector.multi_reduction <maximumf>, %306, %cst_151 [1] : vector<48x48xf32> to vector<48xf32>
    %308 = vector.shape_cast %307 : vector<48xf32> to vector<48x1xf32>
    %309 = vector.broadcast %308 : vector<48x1xf32> to vector<48x48xf32>
    %310 = arith.subf %306, %309 : vector<48x48xf32>
    %311 = math.exp %310 : vector<48x48xf32>
    %cst_152 = arith.constant dense<0.000000e+00> : vector<48xf32>
    %312 = vector.multi_reduction <add>, %311, %cst_152 [1] : vector<48x48xf32> to vector<48xf32>
    %313 = vector.shape_cast %312 : vector<48xf32> to vector<48x1xf32>
    %314 = tpu.reciprocal %313 {approx = true} : vector<48x1xf32> -> vector<48x1xf32>
    %315 = vector.broadcast %314 : vector<48x1xf32> to vector<48x48xf32>
    %316 = arith.mulf %311, %315 : vector<48x48xf32>
    %317 = arith.truncf %316 : vector<48x48xf32> to vector<48x48xbf16>
    %cst_153 = arith.constant dense<0.000000e+00> : vector<48x32xf32>
    %318 = tpu.matmul %317, %298, %cst_153 {dimension_numbers = #tpu.dot_dimension_numbers<[1], [0], [0], [1], [0, 0, 1, 1], [], []>} : vector<48x48xbf16>, vector<48x32xbf16>, vector<48x32xf32> -> vector<48x32xf32>
    %cst_154 = arith.constant 0.000000e+00 : f32
    %319 = vector.shape_cast %5 : vector<1x32xi1> to vector<1x32xi1>
    %320 = vector.broadcast %319 : vector<1x32xi1> to vector<48x32xi1>
    %321 = vector.broadcast %cst_154 : f32 to vector<48x32xf32>
    %322 = arith.select %320, %318, %321 : vector<48x32xi1>, vector<48x32xf32>
    %323 = arith.addf %299, %322 : vector<48x32xf32>
    %cst_155 = arith.constant 0.000000e+00 : f32
    %324 = vector.shape_cast %10 : vector<1x32xi1> to vector<1x32xi1>
    %325 = vector.broadcast %324 : vector<1x32xi1> to vector<48x32xi1>
    %326 = vector.broadcast %cst_155 : f32 to vector<48x32xf32>
    %327 = arith.select %325, %286, %326 : vector<48x32xi1>, vector<48x32xf32>
    %328 = arith.truncf %327 : vector<48x32xf32> to vector<48x32xbf16>
    %cst_156 = arith.constant dense<0.000000e+00> : vector<48x48xf32>
    %329 = tpu.matmul %328, %297, %cst_156 {dimension_numbers = #tpu.dot_dimension_numbers<[1], [1], [0], [0], [0, 0, 1, 0], [], []>} : vector<48x32xbf16>, vector<48x32xbf16>, vector<48x48xf32> -> vector<48x48xf32>
    %330 = arith.addf %329, %21 : vector<48x48xf32>
    %cst_157 = arith.constant dense<0xFF800000> : vector<48xf32>
    %331 = vector.multi_reduction <maximumf>, %330, %cst_157 [1] : vector<48x48xf32> to vector<48xf32>
    %332 = vector.shape_cast %331 : vector<48xf32> to vector<48x1xf32>
    %333 = vector.broadcast %332 : vector<48x1xf32> to vector<48x48xf32>
    %334 = arith.subf %330, %333 : vector<48x48xf32>
    %335 = math.exp %334 : vector<48x48xf32>
    %cst_158 = arith.constant dense<0.000000e+00> : vector<48xf32>
    %336 = vector.multi_reduction <add>, %335, %cst_158 [1] : vector<48x48xf32> to vector<48xf32>
    %337 = vector.shape_cast %336 : vector<48xf32> to vector<48x1xf32>
    %338 = tpu.reciprocal %337 {approx = true} : vector<48x1xf32> -> vector<48x1xf32>
    %339 = vector.broadcast %338 : vector<48x1xf32> to vector<48x48xf32>
    %340 = arith.mulf %335, %339 : vector<48x48xf32>
    %341 = arith.truncf %340 : vector<48x48xf32> to vector<48x48xbf16>
    %cst_159 = arith.constant dense<0.000000e+00> : vector<48x32xf32>
    %342 = tpu.matmul %341, %298, %cst_159 {dimension_numbers = #tpu.dot_dimension_numbers<[1], [0], [0], [1], [0, 0, 1, 1], [], []>} : vector<48x48xbf16>, vector<48x32xbf16>, vector<48x32xf32> -> vector<48x32xf32>
    %cst_160 = arith.constant 0.000000e+00 : f32
    %343 = vector.shape_cast %10 : vector<1x32xi1> to vector<1x32xi1>
    %344 = vector.broadcast %343 : vector<1x32xi1> to vector<48x32xi1>
    %345 = vector.broadcast %cst_160 : f32 to vector<48x32xf32>
    %346 = arith.select %344, %342, %345 : vector<48x32xi1>, vector<48x32xf32>
    %347 = arith.addf %323, %346 : vector<48x32xf32>
    %cst_161 = arith.constant 0.000000e+00 : f32
    %348 = vector.shape_cast %15 : vector<1x32xi1> to vector<1x32xi1>
    %349 = vector.broadcast %348 : vector<1x32xi1> to vector<48x32xi1>
    %350 = vector.broadcast %cst_161 : f32 to vector<48x32xf32>
    %351 = arith.select %349, %286, %350 : vector<48x32xi1>, vector<48x32xf32>
    %352 = arith.truncf %351 : vector<48x32xf32> to vector<48x32xbf16>
    %cst_162 = arith.constant dense<0.000000e+00> : vector<48x48xf32>
    %353 = tpu.matmul %352, %297, %cst_162 {dimension_numbers = #tpu.dot_dimension_numbers<[1], [1], [0], [0], [0, 0, 1, 0], [], []>} : vector<48x32xbf16>, vector<48x32xbf16>, vector<48x48xf32> -> vector<48x48xf32>
    %354 = arith.addf %353, %21 : vector<48x48xf32>
    %cst_163 = arith.constant dense<0xFF800000> : vector<48xf32>
    %355 = vector.multi_reduction <maximumf>, %354, %cst_163 [1] : vector<48x48xf32> to vector<48xf32>
    %356 = vector.shape_cast %355 : vector<48xf32> to vector<48x1xf32>
    %357 = vector.broadcast %356 : vector<48x1xf32> to vector<48x48xf32>
    %358 = arith.subf %354, %357 : vector<48x48xf32>
    %359 = math.exp %358 : vector<48x48xf32>
    %cst_164 = arith.constant dense<0.000000e+00> : vector<48xf32>
    %360 = vector.multi_reduction <add>, %359, %cst_164 [1] : vector<48x48xf32> to vector<48xf32>
    %361 = vector.shape_cast %360 : vector<48xf32> to vector<48x1xf32>
    %362 = tpu.reciprocal %361 {approx = true} : vector<48x1xf32> -> vector<48x1xf32>
    %363 = vector.broadcast %362 : vector<48x1xf32> to vector<48x48xf32>
    %364 = arith.mulf %359, %363 : vector<48x48xf32>
    %365 = arith.truncf %364 : vector<48x48xf32> to vector<48x48xbf16>
    %cst_165 = arith.constant dense<0.000000e+00> : vector<48x32xf32>
    %366 = tpu.matmul %365, %298, %cst_165 {dimension_numbers = #tpu.dot_dimension_numbers<[1], [0], [0], [1], [0, 0, 1, 1], [], []>} : vector<48x48xbf16>, vector<48x32xbf16>, vector<48x32xf32> -> vector<48x32xf32>
    %cst_166 = arith.constant 0.000000e+00 : f32
    %367 = vector.shape_cast %15 : vector<1x32xi1> to vector<1x32xi1>
    %368 = vector.broadcast %367 : vector<1x32xi1> to vector<48x32xi1>
    %369 = vector.broadcast %cst_166 : f32 to vector<48x32xf32>
    %370 = arith.select %368, %366, %369 : vector<48x32xi1>, vector<48x32xf32>
    %371 = arith.addf %347, %370 : vector<48x32xf32>
    %cst_167 = arith.constant 0.000000e+00 : f32
    %372 = vector.shape_cast %20 : vector<1x32xi1> to vector<1x32xi1>
    %373 = vector.broadcast %372 : vector<1x32xi1> to vector<48x32xi1>
    %374 = vector.broadcast %cst_167 : f32 to vector<48x32xf32>
    %375 = arith.select %373, %286, %374 : vector<48x32xi1>, vector<48x32xf32>
    %376 = arith.truncf %375 : vector<48x32xf32> to vector<48x32xbf16>
    %cst_168 = arith.constant dense<0.000000e+00> : vector<48x48xf32>
    %377 = tpu.matmul %376, %297, %cst_168 {dimension_numbers = #tpu.dot_dimension_numbers<[1], [1], [0], [0], [0, 0, 1, 0], [], []>} : vector<48x32xbf16>, vector<48x32xbf16>, vector<48x48xf32> -> vector<48x48xf32>
    %378 = arith.addf %377, %21 : vector<48x48xf32>
    %cst_169 = arith.constant dense<0xFF800000> : vector<48xf32>
    %379 = vector.multi_reduction <maximumf>, %378, %cst_169 [1] : vector<48x48xf32> to vector<48xf32>
    %380 = vector.shape_cast %379 : vector<48xf32> to vector<48x1xf32>
    %381 = vector.broadcast %380 : vector<48x1xf32> to vector<48x48xf32>
    %382 = arith.subf %378, %381 : vector<48x48xf32>
    %383 = math.exp %382 : vector<48x48xf32>
    %cst_170 = arith.constant dense<0.000000e+00> : vector<48xf32>
    %384 = vector.multi_reduction <add>, %383, %cst_170 [1] : vector<48x48xf32> to vector<48xf32>
    %385 = vector.shape_cast %384 : vector<48xf32> to vector<48x1xf32>
    %386 = tpu.reciprocal %385 {approx = true} : vector<48x1xf32> -> vector<48x1xf32>
    %387 = vector.broadcast %386 : vector<48x1xf32> to vector<48x48xf32>
    %388 = arith.mulf %383, %387 : vector<48x48xf32>
    %389 = arith.truncf %388 : vector<48x48xf32> to vector<48x48xbf16>
    %cst_171 = arith.constant dense<0.000000e+00> : vector<48x32xf32>
    %390 = tpu.matmul %389, %298, %cst_171 {dimension_numbers = #tpu.dot_dimension_numbers<[1], [0], [0], [1], [0, 0, 1, 1], [], []>} : vector<48x48xbf16>, vector<48x32xbf16>, vector<48x32xf32> -> vector<48x32xf32>
    %cst_172 = arith.constant 0.000000e+00 : f32
    %391 = vector.shape_cast %20 : vector<1x32xi1> to vector<1x32xi1>
    %392 = vector.broadcast %391 : vector<1x32xi1> to vector<48x32xi1>
    %393 = vector.broadcast %cst_172 : f32 to vector<48x32xf32>
    %394 = arith.select %392, %390, %393 : vector<48x32xi1>, vector<48x32xf32>
    %395 = arith.addf %371, %394 : vector<48x32xf32>
    %396 = arith.truncf %395 : vector<48x32xf32> to vector<48x32xbf16>
    %c1_173 = arith.constant 1 : index
    %c3_174 = arith.constant 3 : index
    %c0_175 = arith.constant 0 : index
    %c0_176 = arith.constant 0 : index
    %397 = vector.load %arg4[%c1_173, %c3_174, %c0_175, %c0_176] : memref<2x4x32x32xbf16, #tpu.memory_space<vmem>>, vector<1x1x32x32xbf16>
    %398 = vector.shape_cast %397 : vector<1x1x32x32xbf16> to vector<32x32xbf16>
    %cst_177 = arith.constant dense<0.000000e+00> : vector<48x32xf32>
    %399 = tpu.matmul %396, %398, %cst_177 {dimension_numbers = #tpu.dot_dimension_numbers<[1], [0], [0], [1], [0, 0, 1, 1], [], []>} : vector<48x32xbf16>, vector<32x32xbf16>, vector<48x32xf32> -> vector<48x32xf32>
    %400 = vector.broadcast %250 : vector<1x32xf32> to vector<48x32xf32>
    %401 = arith.addf %399, %400 : vector<48x32xf32>
    %402 = arith.addf %238, %401 : vector<48x32xf32>
    %cst_178 = arith.constant dense<0.000000e+00> : vector<48xf32>
    %403 = vector.multi_reduction <add>, %402, %cst_178 [1] : vector<48x32xf32> to vector<48xf32>
    %404 = vector.shape_cast %403 : vector<48xf32> to vector<48x1xf32>
    %cst_179 = arith.constant 3.200000e+01 : f32
    %405 = vector.broadcast %cst_179 : f32 to vector<48x1xf32>
    %406 = arith.divf %404, %405 : vector<48x1xf32>
    %407 = vector.broadcast %406 : vector<48x1xf32> to vector<48x32xf32>
    %408 = arith.subf %402, %407 : vector<48x32xf32>
    %409 = arith.mulf %408, %408 : vector<48x32xf32>
    %cst_180 = arith.constant dense<0.000000e+00> : vector<48xf32>
    %410 = vector.multi_reduction <add>, %409, %cst_180 [1] : vector<48x32xf32> to vector<48xf32>
    %411 = vector.shape_cast %410 : vector<48xf32> to vector<48x1xf32>
    %cst_181 = arith.constant 3.200000e+01 : f32
    %412 = vector.broadcast %cst_181 : f32 to vector<48x1xf32>
    %413 = arith.divf %411, %412 : vector<48x1xf32>
    %414 = vector.broadcast %406 : vector<48x1xf32> to vector<48x32xf32>
    %415 = arith.subf %402, %414 : vector<48x32xf32>
    %cst_182 = arith.constant 9.99999997E-7 : f32
    %416 = vector.broadcast %cst_182 : f32 to vector<48x1xf32>
    %417 = arith.addf %413, %416 : vector<48x1xf32>
    %418 = math.rsqrt %417 : vector<48x1xf32>
    %419 = vector.broadcast %418 : vector<48x1xf32> to vector<48x32xf32>
    %420 = arith.mulf %415, %419 : vector<48x32xf32>
    %421 = vector.broadcast %252 : vector<1x32xf32> to vector<48x32xf32>
    %422 = arith.mulf %420, %421 : vector<48x32xf32>
    %423 = vector.broadcast %254 : vector<1x32xf32> to vector<48x32xf32>
    %424 = arith.addf %422, %423 : vector<48x32xf32>
    %425 = arith.truncf %424 : vector<48x32xf32> to vector<48x32xbf16>
    %c1_183 = arith.constant 1 : index
    %c0_184 = arith.constant 0 : index
    %c0_185 = arith.constant 0 : index
    %426 = vector.load %arg5[%c1_183, %c0_184, %c0_185] : memref<2x32x128xbf16, #tpu.memory_space<vmem>>, vector<1x32x128xbf16>
    %427 = vector.shape_cast %426 : vector<1x32x128xbf16> to vector<32x128xbf16>
    %cst_186 = arith.constant dense<0.000000e+00> : vector<48x128xf32>
    %428 = tpu.matmul %425, %427, %cst_186 {dimension_numbers = #tpu.dot_dimension_numbers<[1], [0], [0], [1], [0, 0, 1, 1], [], []>} : vector<48x32xbf16>, vector<32x128xbf16>, vector<48x128xf32> -> vector<48x128xf32>
    %429 = vector.broadcast %256 : vector<1x128xf32> to vector<48x128xf32>
    %430 = arith.addf %428, %429 : vector<48x128xf32>
    %431 = arith.mulf %430, %430 : vector<48x128xf32>
    %432 = arith.mulf %430, %431 : vector<48x128xf32>
    %cst_187 = arith.constant 4.471500e-02 : f32
    %433 = vector.broadcast %cst_187 : f32 to vector<48x128xf32>
    %434 = arith.mulf %433, %432 : vector<48x128xf32>
    %435 = arith.addf %430, %434 : vector<48x128xf32>
    %cst_188 = arith.constant 0.797884583 : f32
    %436 = vector.broadcast %cst_188 : f32 to vector<48x128xf32>
    %437 = arith.mulf %436, %435 : vector<48x128xf32>
    %438 = math.tanh %437 : vector<48x128xf32>
    %cst_189 = arith.constant 1.000000e+00 : f32
    %439 = vector.broadcast %cst_189 : f32 to vector<48x128xf32>
    %440 = arith.addf %439, %438 : vector<48x128xf32>
    %cst_190 = arith.constant 5.000000e-01 : f32
    %441 = vector.broadcast %cst_190 : f32 to vector<48x128xf32>
    %442 = arith.mulf %441, %440 : vector<48x128xf32>
    %443 = arith.mulf %430, %442 : vector<48x128xf32>
    %444 = arith.truncf %443 : vector<48x128xf32> to vector<48x128xbf16>
    %c1_191 = arith.constant 1 : index
    %c0_192 = arith.constant 0 : index
    %c0_193 = arith.constant 0 : index
    %445 = vector.load %arg6[%c1_191, %c0_192, %c0_193] : memref<2x128x32xbf16, #tpu.memory_space<vmem>>, vector<1x128x32xbf16>
    %446 = vector.shape_cast %445 : vector<1x128x32xbf16> to vector<128x32xbf16>
    %cst_194 = arith.constant dense<0.000000e+00> : vector<48x32xf32>
    %447 = tpu.matmul %444, %446, %cst_194 {dimension_numbers = #tpu.dot_dimension_numbers<[1], [0], [0], [1], [0, 0, 1, 1], [], []>} : vector<48x128xbf16>, vector<128x32xbf16>, vector<48x32xf32> -> vector<48x32xf32>
    %448 = vector.broadcast %258 : vector<1x32xf32> to vector<48x32xf32>
    %449 = arith.addf %447, %448 : vector<48x32xf32>
    %450 = arith.addf %402, %449 : vector<48x32xf32>
    %451 = vector.extract_strided_slice %450 {offsets = [0, 0], sizes = [1, 32], strides = [1, 1]} : vector<48x32xf32> to vector<1x32xf32>
    %452 = vector.extract_strided_slice %450 {offsets = [24, 0], sizes = [1, 32], strides = [1, 1]} : vector<48x32xf32> to vector<1x32xf32>
    %453 = tpu.concatenate %451, %452 in 0 : vector<1x32xf32>, vector<1x32xf32> -> vector<2x32xf32>
    %c0_195 = arith.constant 0 : index
    %c0_196 = arith.constant 0 : index
    %454 = vector.load %arg9[%c0_195, %c0_196] : memref<3x128xf32, #tpu.memory_space<vmem>>, vector<1x32xf32>
    %c1_197 = arith.constant 1 : index
    %c0_198 = arith.constant 0 : index
    %455 = vector.load %arg9[%c1_197, %c0_198] : memref<3x128xf32, #tpu.memory_space<vmem>>, vector<1x32xf32>
    %c2_199 = arith.constant 2 : index
    %c0_200 = arith.constant 0 : index
    %456 = vector.load %arg9[%c2_199, %c0_200] : memref<3x128xf32, #tpu.memory_space<vmem>>, vector<1x128xf32>
    %cst_201 = arith.constant dense<0.000000e+00> : vector<2xf32>
    %457 = vector.multi_reduction <add>, %453, %cst_201 [1] : vector<2x32xf32> to vector<2xf32>
    %458 = vector.shape_cast %457 : vector<2xf32> to vector<2x1xf32>
    %cst_202 = arith.constant 3.200000e+01 : f32
    %459 = vector.broadcast %cst_202 : f32 to vector<2x1xf32>
    %460 = arith.divf %458, %459 : vector<2x1xf32>
    %461 = vector.broadcast %460 : vector<2x1xf32> to vector<2x32xf32>
    %462 = arith.subf %453, %461 : vector<2x32xf32>
    %463 = arith.mulf %462, %462 : vector<2x32xf32>
    %cst_203 = arith.constant dense<0.000000e+00> : vector<2xf32>
    %464 = vector.multi_reduction <add>, %463, %cst_203 [1] : vector<2x32xf32> to vector<2xf32>
    %465 = vector.shape_cast %464 : vector<2xf32> to vector<2x1xf32>
    %cst_204 = arith.constant 3.200000e+01 : f32
    %466 = vector.broadcast %cst_204 : f32 to vector<2x1xf32>
    %467 = arith.divf %465, %466 : vector<2x1xf32>
    %468 = vector.broadcast %460 : vector<2x1xf32> to vector<2x32xf32>
    %469 = arith.subf %453, %468 : vector<2x32xf32>
    %cst_205 = arith.constant 9.99999997E-7 : f32
    %470 = vector.broadcast %cst_205 : f32 to vector<2x1xf32>
    %471 = arith.addf %467, %470 : vector<2x1xf32>
    %472 = math.rsqrt %471 : vector<2x1xf32>
    %473 = vector.broadcast %472 : vector<2x1xf32> to vector<2x32xf32>
    %474 = arith.mulf %469, %473 : vector<2x32xf32>
    %475 = vector.broadcast %454 : vector<1x32xf32> to vector<2x32xf32>
    %476 = arith.mulf %474, %475 : vector<2x32xf32>
    %477 = vector.broadcast %455 : vector<1x32xf32> to vector<2x32xf32>
    %478 = arith.addf %476, %477 : vector<2x32xf32>
    %479 = arith.truncf %478 : vector<2x32xf32> to vector<2x32xbf16>
    %c0_206 = arith.constant 0 : index
    %c0_207 = arith.constant 0 : index
    %480 = vector.load %arg8[%c0_206, %c0_207] : memref<32x128xbf16, #tpu.memory_space<vmem>>, vector<32x128xbf16>
    %cst_208 = arith.constant dense<0.000000e+00> : vector<2x128xf32>
    %481 = tpu.matmul %479, %480, %cst_208 {dimension_numbers = #tpu.dot_dimension_numbers<[1], [0], [0], [1], [0, 0, 1, 1], [], []>} : vector<2x32xbf16>, vector<32x128xbf16>, vector<2x128xf32> -> vector<2x128xf32>
    %482 = vector.broadcast %456 : vector<1x128xf32> to vector<2x128xf32>
    %483 = arith.addf %481, %482 : vector<2x128xf32>
    %c0_209 = arith.constant 0 : index
    %c0_210 = arith.constant 0 : index
    %484 = vector.load %arg10[%c0_209, %c0_210] : memref<2x128xf32, #tpu.memory_space<vmem>>, vector<2x128xf32>
    tpu.vector_store %arg10[%c0_209, %c0_210], %483 {strides = array<i32>} : memref<2x128xf32, #tpu.memory_space<vmem>>, vector<2x128xf32>,
    return
  }
}

</mosaic_0001>

<bundles_post_ra>
// kernel: vit_forward.1
= control target key start
LH: loop header
LB: loop body
LE: loop exit
PB: predicated region body
PF: predicated region fallthrough
CT: control target
= control target key end

     0   :  { %s5418_s0 = inlined_call_operand.vmem [shape: bf16[48,192], index: 0, kind: input, shape index: {}]   ;;  %s5419_s1 = inlined_call_operand.vmem [shape: bf16[192,32], index: 1, kind: input, shape index: {}]   ;;  %s5420_s2 = inlined_call_operand.vmem [shape: f32[48,32], index: 2, kind: input, shape index: {}]   ;;  %s5421_s3 = inlined_call_operand.vmem [shape: f32[48,48], index: 3, kind: input, shape index: {}]   ;;  %s5422_s4 = inlined_call_operand.vmem [shape: bf16[2,4,32,32], index: 4, kind: input, shape index: {}]   ;;  %s5423_s5 = inlined_call_operand.vmem [shape: bf16[2,32,128], index: 5, kind: input, shape index: {}]   ;;  %s5424_s6 = inlined_call_operand.vmem [shape: bf16[2,128,32], index: 6, kind: input, shape index: {}]   ;;  %s5425_s7 = inlined_call_operand.vmem [shape: f32[2,10,128], index: 7, kind: input, shape index: {}]   ;;  %s5426_s8 = inlined_call_operand.vmem [shape: bf16[32,128], index: 8, kind: input, shape index: {}]   ;;  %s5427_s9 = inlined_call_operand.vmem [shape: f32[3,128], index: 9, kind: input, shape index: {}]   ;;  %s5428_s10 = inlined_call_operand.hbm [shape: f32[2,128], index: 10, kind: output, shape index: {}]  }
   0x1   :  { %v3412_v0 = vld [vmem:[%s5419_s1 + $0x38] sm:$0xff]  ;;  %v3411_v2 = vld [vmem:[%s5419_s1 + $0x30] sm:$0xff]  ;;  %v3410_v4 = vld [vmem:[%s5419_s1 + $0x28] sm:$0xff] }
   0x2   :  { %v3416_v1 = vld [vmem:[%s5419_s1 + $0x58] sm:$0xff]  ;;  %202 = vmatpush.bf16.msra.mxu0 %v3412_v0  ;;  %v3415_v3 = vld [vmem:[%s5419_s1 + $0x50] sm:$0xff]  ;;  %v3414_v5 = vld [vmem:[%s5419_s1 + $0x48] sm:$0xff] }
   0x3   :  { %230 = vmatpush.bf16.msra.mxu1 %v3416_v1  ;;  %v3409_v6 = vld [vmem:[%s5419_s1 + $0x20] sm:$0xff]  ;;  %v3039_v9 = vld [vmem:[%s5418_s0 + $0x8] sm:$0xf0]  ;;  %v3408_v10 = vld [vmem:[%s5419_s1 + $0x18] sm:$0xff] }
   0x4   :  { %v3413_v7 = vld [vmem:[%s5419_s1 + $0x40] sm:$0xff] }
   0x5   :  { %v3399_v8 = vld [vmem:[%s5418_s0 + $0x4] sm:$0xf] }
   0x6   :  { %203 = vmatpush.bf16.msra.mxu0 %v3411_v2  ;;  %v3042_v11 = vor.u32 %v3399_v8, %v3039_v9 }
   0x7   :  { %231 = vmatpush.bf16.msra.mxu1 %v3415_v3 }
   0xa   :  { %204 = vmatpush.bf16.msra.mxu0 %v3410_v4 }
   0xb   :  { %232 = vmatpush.bf16.msra.mxu1 %v3414_v5 }
   0xe   :  { %205 = vmatpush.bf16.msra.mxu0 %v3409_v6 }
   0xf   :  { %15 = vsyncpa [#allocation3], 0  ;;  %233 = vmatpush.bf16.msra.mxu1 %v3413_v7  ;;  %vm192_vm0 = vcmask 523264   ;;  %v3407_v12 = vld [vmem:[%s5419_s1 + $0x10] sm:$0xff]  ;;  %v3406_v13 = vld [vmem:[%s5419_s1 + $0x8] sm:$0xff]  ;;  %vm260_vm1 = vcmask 261120  }
  0x10   :  { %v3405_v14 = vld [vmem:[%s5419_s1] sm:$0xff]  ;;  %v3400_v16 = vld [vmem:[%s5418_s0 + $0x4] sm:$0xf0]  ;;  %v3401_v17 = vld [vmem:[%s5418_s0 + $0x14] sm:$0xf]  ;;  %v3780_v2 = vmov 32.0  }
  0x11   :  { %v3037_v15 = vld [vmem:[%s5418_s0] sm:$0xf]  ;;  %v3047_v18 = vld [vmem:[%s5418_s0 + $0x18] sm:$0xf0]  ;;  %v3045_v21 = vld [vmem:[%s5418_s0 + $0x10] sm:$0xf]  ;;  %3480 = vrcp.f32 %v3780_v2 }
  0x12   :  { %206 = vmatpush.bf16.msra.mxu0 %v3408_v10  ;;  %3107 = vmatmul.msk.bf16.vlgmr.msra.gmra.mxu1 %vm192_vm0, %v3042_v11  ;;  %v3038_v19 = vor.u32 %v3400_v16, %v3037_v15  ;;  %v3050_v20 = vor.u32 %v3401_v17, %v3047_v18  ;;  %v3402_v22 = vld [vmem:[%s5418_s0 + $0x14] sm:$0xf0]  ;;  %v3403_v23 = vld [vmem:[%s5418_s0 + $0x24] sm:$0xf]  ;;  %v3055_v24 = vld [vmem:[%s5418_s0 + $0x28] sm:$0xf0] }
  0x13   :  { %v3046_v25 = vor.u32 %v3402_v22, %v3045_v21  ;;  %v3058_v26 = vor.u32 %v3403_v23, %v3055_v24  ;;  %v3053_v27 = vld [vmem:[%s5418_s0 + $0x20] sm:$0xf]  ;;  %v3404_v28 = vld [vmem:[%s5418_s0 + $0x24] sm:$0xf0]  ;;  %v89_v43 = vld [vmem:[%s5420_s2 + $0x10] sm:$0xff]  ;;  %s3781_s29 = smov [#allocation2]  }
  0x14   :  { %v3054_v29 = vor.u32 %v3404_v28, %v3053_v27  ;;  %v87_v31 = vld [vmem:[%s5420_s2] sm:$0xff]  ;;  %v88_v37 = vld [vmem:[%s5420_s2 + $0x8] sm:$0xff]  ;;  %v90_v49 = vld [vmem:[%s5420_s2 + $0x18] sm:$0xff]  ;;  %s3026_s12 = sshll.u32 %s5428_s10, 4  ;;  %s3027_s12 = int_to_ptr.hbm [resolvable:$true] %s3026_s12 }
  0x15   :  { %v91_v54 = vld [vmem:[%s5420_s2 + $0x20] sm:$0xff]  ;;  %v92_v60 = vld [vmem:[%s5420_s2 + $0x28] sm:$0xff]  ;;  %s3024_s2 = sshll.u32 %s3781_s29, 4  ;;  %s3025_s2 = int_to_ptr.vmem [resolvable:$true] %s3024_s2 }
  0x16   :  { %207 = vmatpush.bf16.msra.mxu0 %v3407_v12 }
  0x17   :  { %v3481_v3 = vpop.eup %3480 }
  0x18   :  { %v280_v4 = vmul.f32 32.0, %v3481_v3  ;;  %vm284_vm2 = vweird.f32 %v3481_v3 }
  0x1a   :  { %208 = vmatpush.bf16.msra.mxu0 %v3406_v13  ;;  %v281_v5 = vsub.f32 1.0, %v280_v4 }
  0x1c   :  { %v282_v6 = vmul.f32 %v3481_v3, %v281_v5 }
  0x1e   :  { %209 = vmatpush.bf16.msra.mxu0 %v3405_v14  ;;  %v283_v7 = vadd.f32 %v3481_v3, %v282_v6 }
  0x20   :  { %v3954_v8 = vsel %vm284_vm2, %v3481_v3, %v283_v7 }
  0x21   :  { %210 = vmatmul.bf16.vlgmr.msra.gmra.mxu0 %v3038_v19 }
  0x22   :  { %3108 = vmatmul.msk.bf16.gmra.mxu1 %vm192_vm0, %v3050_v20 }
  0x31   :  { %215 = vmatmul.bf16.gmra.mxu0 %v3046_v25 }
  0x32   :  { %3109 = vmatmul.msk.bf16.gmra.mxu1 %vm192_vm0, %v3058_v26 }
  0x41   :  { %220 = vmatmul.bf16.gmra.mxu0 %v3054_v29 }
  0x8f   :  { %v235_v30 = vpop.f32.mrf.mxu1 }
  0x97   :  { %v237_v34 = vpop.f32.mrf.mxu1 }
  0x9e   :  { %v211_v32 = vpop.f32.mrf.mxu0 }
  0x9f   :  { %v212_v33 = vadd.f32 %v211_v32, %v87_v31  ;;  %v240_v41 = vpop.f32.mrf.mxu1 }
  0xa1   :  { %v3915_v35 = vadd.f32 %v235_v30, %v212_v33 }
  0xa3   :  { %v261_v36 = vsel %vm260_vm1, %v3915_v35, 0.0 }
  0xa4   :  { %262 = vadd.xlane.f32.xlu0 %v261_v36 }
  0xa6   :  { %v213_v38 = vpop.f32.mrf.mxu0 }
  0xa7   :  { %v214_v39 = vadd.f32 %v213_v38, %v88_v37  ;;  %v242_v48 = vpop.f32.mrf.mxu1 }
  0xa9   :  { %v3922_v40 = vadd.f32 %v237_v34, %v214_v39 }
  0xab   :  { %v264_v42 = vsel %vm260_vm1, %v3922_v40, 0.0 }
  0xac   :  { %265 = vadd.xlane.f32.xlu0 %v264_v42  ;;  %v3420_v42 = vld [vmem:[%s5422_s4 + $0x18] sm:$0xff] }
  0xad   :  { %491 = vmatpush.bf16.msra.mxu3 %v3420_v42 }
  0xae   :  { %v216_v44 = vpop.f32.mrf.mxu0 }
  0xaf   :  { %v217_v45 = vadd.f32 %v216_v44, %v89_v43  ;;  %v245_v55 = vpop.f32.mrf.mxu1 }
  0xb1   :  { %v3929_v46 = vadd.f32 %v240_v41, %v217_v45  ;;  %v3418_v41 = vld [vmem:[%s5422_s4 + $0x8] sm:$0xff]  ;;  %v3417_v45 = vld [vmem:[%s5422_s4] sm:$0xff] }
  0xb2   :  { %449 = vmatpush.bf16.msra.mxu2 %v3418_v41 }
  0xb3   :  { %v267_v47 = vsel %vm260_vm1, %v3929_v46, 0.0 }
  0xb4   :  { %268 = vadd.xlane.f32.xlu1 %v267_v47  ;;  %v3419_v47 = vld [vmem:[%s5422_s4 + $0x10] sm:$0xff] }
  0xb5   :  { %492 = vmatpush.bf16.msra.mxu3 %v3419_v47 }
  0xb6   :  { %v218_v50 = vpop.f32.mrf.mxu0  ;;  %450 = vmatpush.bf16.msra.mxu2 %v3417_v45 }
  0xb7   :  { %v219_v51 = vadd.f32 %v218_v50, %v90_v49  ;;  %v247_v63 = vpop.f32.mrf.mxu1 }
  0xb9   :  { %v3936_v52 = vadd.f32 %v242_v48, %v219_v51 }
  0xbb   :  { %v270_v53 = vsel %vm260_vm1, %v3936_v52, 0.0 }
  0xbc   :  { %271 = vadd.xlane.f32.xlu1 %v270_v53 }
  0xbe   :  { %v221_v56 = vpop.f32.mrf.mxu0 }
  0xbf   :  { %v222_v57 = vadd.f32 %v221_v56, %v91_v54 }
  0xc1   :  { %v3943_v58 = vadd.f32 %v245_v55, %v222_v57 }
  0xc3   :  { %v273_v59 = vsel %vm260_vm1, %v3943_v58, 0.0 }
  0xc4   :  { %274 = vadd.xlane.f32.xlu2 %v273_v59 }
  0xc6   :  { %v223_v61 = vpop.f32.mrf.mxu0 }
  0xc7   :  { %v224_v62 = vadd.f32 %v223_v61, %v92_v60 }
  0xc9   :  { %v3950_v0 = vadd.f32 %v247_v63, %v224_v62 }
  0xcb   :  { %v276_v1 = vsel %vm260_vm1, %v3950_v0, 0.0 }
  0xcc   :  { %277 = vadd.xlane.f32.xlu2 %v276_v1 }
 0x117   :  { %v263_v9 = vpop.xlane.xlu0 %262 }
 0x118   :  { %v286_v10 = vmul.f32 %v3954_v8, %v263_v9 }
 0x11a   :  { %v3958_v11 = vsub.f32 %v3915_v35, %v286_v10 }
 0x11c   :  { %v298_v12 = vmul.f32 %v3958_v11, %v3958_v11 }
 0x11e   :  { %v304_v13 = vsel %vm260_vm1, %v298_v12, 0.0 }
 0x11f   :  { %305 = vadd.xlane.f32.xlu0 %v304_v13  ;;  %v266_v14 = vpop.xlane.xlu0 %265  ;;  %v4018_v13 = vld [vmem:[%s5425_s7] ss:$0 sm:$0xff] }
 0x120   :  { %v287_v15 = vmul.f32 %v3954_v8, %v266_v14 }
 0x122   :  { %v3965_v16 = vsub.f32 %v3922_v40, %v287_v15 }
 0x124   :  { %v299_v17 = vmul.f32 %v3965_v16, %v3965_v16 }
 0x126   :  { %v307_v18 = vsel %vm260_vm1, %v299_v17, 0.0 }
 0x127   :  { %v269_v19 = vpop.xlane.xlu1 %268  ;;  %308 = vadd.xlane.f32.xlu1 %v307_v18 }
 0x128   :  { %v288_v20 = vmul.f32 %v3954_v8, %v269_v19 }
 0x12a   :  { %v3972_v21 = vsub.f32 %v3929_v46, %v288_v20 }
 0x12c   :  { %v300_v22 = vmul.f32 %v3972_v21, %v3972_v21 }
 0x12e   :  { %v310_v23 = vsel %vm260_vm1, %v300_v22, 0.0 }
 0x12f   :  { %311 = vadd.xlane.f32.xlu2 %v310_v23  ;;  %v272_v24 = vpop.xlane.xlu1 %271 }
 0x130   :  { %v289_v25 = vmul.f32 %v3954_v8, %v272_v24 }
 0x132   :  { %v3979_v26 = vsub.f32 %v3936_v52, %v289_v25 }
 0x134   :  { %v301_v27 = vmul.f32 %v3979_v26, %v3979_v26 }
 0x136   :  { %v313_v28 = vsel %vm260_vm1, %v301_v27, 0.0 }
 0x137   :  { %v275_v29 = vpop.xlane.xlu2 %274  ;;  %314 = vadd.xlane.f32.xlu0 %v313_v28 }
 0x138   :  { %v290_v30 = vmul.f32 %v3954_v8, %v275_v29 }
 0x13a   :  { %v3986_v31 = vsub.f32 %v3943_v58, %v290_v30 }
 0x13c   :  { %v302_v32 = vmul.f32 %v3986_v31, %v3986_v31 }
 0x13e   :  { %v316_v33 = vsel %vm260_vm1, %v302_v32, 0.0 }
 0x13f   :  { %v278_v34 = vpop.xlane.xlu2 %277  ;;  %317 = vadd.xlane.f32.xlu1 %v316_v33 }
 0x140   :  { %v291_v36 = vmul.f32 %v3954_v8, %v278_v34 }
 0x142   :  { %v3993_v37 = vsub.f32 %v3950_v0, %v291_v36 }
 0x144   :  { %v303_v38 = vmul.f32 %v3993_v37, %v3993_v37 }
 0x146   :  { %v319_v39 = vsel %vm260_vm1, %v303_v38, 0.0  ;;  %v3422_v38 = vld [vmem:[%s5422_s4 + $0x28] sm:$0xff] }
 0x147   :  { %320 = vadd.xlane.f32.xlu2 %v319_v39  ;;  %533 = vmatpush.bf16.msrb.mxu2 %v3422_v38 }
 0x192   :  { %v306_v43 = vpop.xlane.xlu0 %305 }
 0x193   :  { %v322_v44 = vmul.f32 %v306_v43, %v3954_v8 }
 0x195   :  { %v328_v48 = vadd.f32 1e-06, %v322_v44  ;;  %v3421_v44 = vld [vmem:[%s5422_s4 + $0x20] sm:$0xff] }
 0x196   :  { %534 = vmatpush.bf16.msrb.mxu2 %v3421_v44 }
 0x197   :  { %3482 = vrsqrt.f32 %v328_v48  ;;  %vm340_vm4 = vweird.f32 %v328_v48 }
 0x19a   :  { %v309_v49 = vpop.xlane.xlu1 %308 }
 0x19b   :  { %v323_v50 = vmul.f32 %v309_v49, %v3954_v8 }
 0x19d   :  { %v3483_v51 = vpop.eup %3482  ;;  %v329_v53 = vadd.f32 1e-06, %v323_v50 }
 0x19e   :  { %v335_v54 = vmul.f32 %v3483_v51, %v328_v48  ;;  %vm341_vm3 = vweird.f32 %v3483_v51 }
 0x19f   :  { %3484 = vrsqrt.f32 %v329_v53  ;;  %vm342_vm5 = vmor %vm340_vm4, %vm341_vm3  ;;  %vm350_vm7 = vweird.f32 %v329_v53 }
 0x1a0   :  { %v336_v55 = vmul.f32 %v3483_v51, %v335_v54 }
 0x1a2   :  { %v337_v56 = vmul.f32 0.5, %v336_v55  ;;  %v312_v57 = vpop.xlane.xlu2 %311 }
 0x1a3   :  { %v324_v59 = vmul.f32 %v312_v57, %v3954_v8 }
 0x1a4   :  { %v338_v60 = vsub.f32 1.5, %v337_v56 }
 0x1a5   :  { %v3485_v61 = vpop.eup %3484  ;;  %v330_v62 = vadd.f32 1e-06, %v324_v59 }
 0x1a6   :  { %v339_v63 = vmul.f32 %v3483_v51, %v338_v60  ;;  %v345_v1 = vmul.f32 %v3485_v61, %v329_v53  ;;  %vm351_vm6 = vweird.f32 %v3485_v61 }
 0x1a7   :  { %3486 = vrsqrt.f32 %v330_v62  ;;  %vm352_vm8 = vmor %vm350_vm7, %vm351_vm6  ;;  %vm360_vm10 = vweird.f32 %v330_v62 }
 0x1a8   :  { %v346_v2 = vmul.f32 %v3485_v61, %v345_v1  ;;  %v343_v3 = vsel %vm342_vm5, %v3483_v51, %v339_v63 }
 0x1a9   :  { %v394_v10 = vmul.f32 %v343_v3, %v3958_v11  ;;  %v4025_v11 = vld [vmem:[%s5425_s7 + $0x1] ss:$0 sm:$0xff] }
 0x1aa   :  { %v347_v4 = vmul.f32 0.5, %v346_v2  ;;  %v315_v5 = vpop.xlane.xlu0 %314 }
 0x1ab   :  { %v325_v6 = vmul.f32 %v315_v5, %v3954_v8  ;;  %v401_v20 = vmul.f32 %v4018_v13, %v394_v10 }
 0x1ac   :  { %v348_v7 = vsub.f32 1.5, %v347_v4 }
 0x1ad   :  { %v3487_v9 = vpop.eup %3486  ;;  %v331_v12 = vadd.f32 1e-06, %v325_v6  ;;  %v408_v30 = vadd.f32 %v4025_v11, %v401_v20 }
 0x1ae   :  { %v349_v14 = vmul.f32 %v3485_v61, %v348_v7  ;;  %v355_v15 = vmul.f32 %v3487_v9, %v330_v62  ;;  %vm361_vm9 = vweird.f32 %v3487_v9 }
 0x1af   :  { %3488 = vrsqrt.f32 %v331_v12  ;;  %vm362_vm11 = vmor %vm360_vm10, %vm361_vm9  ;;  %vm370_vm13 = vweird.f32 %v331_v12 }
 0x1b0   :  { %v353_v17 = vsel %vm352_vm8, %v3485_v61, %v349_v14  ;;  %v356_v18 = vmul.f32 %v3487_v9, %v355_v15 }
 0x1b1   :  { %v395_v19 = vmul.f32 %v353_v17, %v3965_v16 }
 0x1b2   :  { %v357_v22 = vmul.f32 0.5, %v356_v18  ;;  %v318_v23 = vpop.xlane.xlu1 %317 }
 0x1b3   :  { %v326_v24 = vmul.f32 %v318_v23, %v3954_v8  ;;  %v402_v25 = vmul.f32 %v4018_v13, %v395_v19 }
 0x1b4   :  { %v358_v27 = vsub.f32 1.5, %v357_v22 }
 0x1b5   :  { %v3489_v28 = vpop.eup %3488  ;;  %v332_v29 = vadd.f32 1e-06, %v326_v24  ;;  %v409_v16 = vadd.f32 %v4025_v11, %v402_v25 }
 0x1b6   :  { %v359_v32 = vmul.f32 %v3487_v9, %v358_v27  ;;  %v365_v33 = vmul.f32 %v3489_v28, %v331_v12  ;;  %vm371_vm12 = vweird.f32 %v3489_v28  ;;  %v3460_v27 = vld [vmem:[%s5425_s7 + $0x3] ss:$0 sm:$0xff] }
 0x1b7   :  { %3490 = vrsqrt.f32 %v332_v29  ;;  %v414_v34 = vpack.c.bf16 %v409_v16, %v408_v30  ;;  %vm372_vm14 = vmor %vm370_vm13, %vm371_vm12  ;;  %vm380_vm0 = vweird.f32 %v332_v29 }
 0x1b8   :  { %v366_v36 = vmul.f32 %v3489_v28, %v365_v33  ;;  %v363_v39 = vsel %vm362_vm11, %v3487_v9, %v359_v32 }
 0x1b9   :  { %3118 = vmatmul.msk.bf16.vlgmr.msra.gmra.mxu2 %vm260_vm1, %v414_v34  ;;  %3133 = vmatmul.msk.bf16.vlgmr.msra.gmra.mxu3 %vm260_vm1, %v414_v34  ;;  %v396_v48 = vmul.f32 %v363_v39, %v3972_v21 }
 0x1ba   :  { %v367_v41 = vmul.f32 0.5, %v366_v36  ;;  %v321_v42 = vpop.xlane.xlu2 %320 }
 0x1bb   :  { %v327_v43 = vmul.f32 %v321_v42, %v3954_v8  ;;  %v403_v56 = vmul.f32 %v4018_v13, %v396_v48 }
 0x1bc   :  { %v368_v45 = vsub.f32 1.5, %v367_v41  ;;  %v37_v41 = vlaneseq }
 0x1bd   :  { %v3491_v47 = vpop.eup %3490  ;;  %v333_v49 = vadd.f32 1e-06, %v327_v43  ;;  %v410_v21 = vadd.f32 %v4025_v11, %v403_v56 }
 0x1be   :  { %v369_v50 = vmul.f32 %v3489_v28, %v368_v45  ;;  %v375_v51 = vmul.f32 %v3491_v47, %v332_v29  ;;  %vm381_vm15 = vweird.f32 %v3491_v47  ;;  %v4068_v45 = vand.u32 127, %v37_v41 }
 0x1bf   :  { %3492 = vrsqrt.f32 %v333_v49  ;;  %vm382_vm2 = vmor %vm380_vm0, %vm381_vm15  ;;  %vm390_vm4 = vweird.f32 %v333_v49  ;;  %vm610_vm0 = vcmask 392192  }
 0x1c0   :  { %v373_v53 = vsel %vm372_vm14, %v3489_v28, %v369_v50  ;;  %v376_v54 = vmul.f32 %v3491_v47, %v375_v51  ;;  %vm42_vm6 = vcmp.ge.s32.totalorder %v4068_v45, 8  ;;  %vm43_vm7 = vcmp.lt.s32.totalorder %v4068_v45, 16 }
 0x1c1   :  { %v397_v55 = vmul.f32 %v373_v53, %v3979_v26  ;;  %vm40_vm8 = vcmp.lt.s32.totalorder %v4068_v45, 8  ;;  %vm4081_vm9 = vmand %vm42_vm6, %vm43_vm7  ;;  %vm45_vm10 = vcmp.ge.s32.totalorder %v4068_v45, 16  ;;  %vm46_vm11 = vcmp.lt.s32.totalorder %v4068_v45, 24 }
 0x1c2   :  { %v377_v57 = vmul.f32 0.5, %v376_v54  ;;  %vm48_vm12 = vcmp.ge.s32.totalorder %v4068_v45, 24  ;;  %vm49_vm13 = vcmp.lt.s32.totalorder %v4068_v45, 32  ;;  %vm4136_vm14 = vmand %vm45_vm10, %vm46_vm11 }
 0x1c3   :  { %v404_v59 = vmul.f32 %v4018_v13, %v397_v55  ;;  %vm4140_vm15 = vmand %vm48_vm12, %vm49_vm13 }
 0x1c4   :  { %v378_v60 = vsub.f32 1.5, %v377_v57 }
 0x1c5   :  { %v3493_v61 = vpop.eup %3492  ;;  %v411_v62 = vadd.f32 %v4025_v11, %v404_v59 }
 0x1c6   :  { %v379_v63 = vmul.f32 %v3491_v47, %v378_v60  ;;  %v385_v1 = vmul.f32 %v3493_v61, %v333_v49  ;;  %vm391_vm3 = vweird.f32 %v3493_v61  ;;  %v3459_v49 = vld [vmem:[%s5425_s7 + $0x2] ss:$0 sm:$0xff] }
 0x1c7   :  { %v415_v2 = vpack.c.bf16 %v411_v62, %v410_v21  ;;  %vm392_vm5 = vmor %vm390_vm4, %vm391_vm3 }
 0x1c8   :  { %v386_v3 = vmul.f32 %v3493_v61, %v385_v1  ;;  %v383_v26 = vsel %vm382_vm2, %v3491_v47, %v379_v63 }
 0x1c9   :  { %3119 = vmatmul.msk.bf16.gmra.mxu2 %vm260_vm1, %v415_v2  ;;  %3134 = vmatmul.msk.bf16.gmra.mxu3 %vm260_vm1, %v415_v2  ;;  %v398_v6 = vmul.f32 %v383_v26, %v3986_v31 }
 0x1ca   :  { %v387_v4 = vmul.f32 0.5, %v386_v3 }
 0x1cb   :  { %v405_v12 = vmul.f32 %v4018_v13, %v398_v6 }
 0x1cc   :  { %v388_v5 = vsub.f32 1.5, %v387_v4 }
 0x1cd   :  { %v412_v15 = vadd.f32 %v4025_v11, %v405_v12 }
 0x1ce   :  { %v389_v7 = vmul.f32 %v3493_v61, %v388_v5 }
 0x1d0   :  { %v393_v9 = vsel %vm392_vm5, %v3493_v61, %v389_v7 }
 0x1d1   :  { %v399_v10 = vmul.f32 %v393_v9, %v3993_v37  ;;  %v3461_v9 = vld [vmem:[%s5425_s7 + $0x4] ss:$0 sm:$0xff] }
 0x1d3   :  { %v406_v14 = vmul.f32 %v4018_v13, %v399_v10 }
 0x1d5   :  { %v413_v17 = vadd.f32 %v4025_v11, %v406_v14 }
 0x1d7   :  { %v416_v18 = vpack.c.bf16 %v413_v17, %v412_v15 }
 0x1d9   :  { %3120 = vmatmul.msk.bf16.gmra.mxu2 %vm260_vm1, %v416_v18  ;;  %3135 = vmatmul.msk.bf16.gmra.mxu3 %vm260_vm1, %v416_v18 }
 0x1e9   :  { %3148 = vmatmul.msk.bf16.vlgmr.msrb.gmra.mxu2 %vm260_vm1, %v414_v34 }
 0x1f9   :  { %3149 = vmatmul.msk.bf16.gmra.mxu2 %vm260_vm1, %v415_v2 }
 0x209   :  { %3150 = vmatmul.msk.bf16.gmra.mxu2 %vm260_vm1, %v416_v18 }
 0x23c   :  { %v452_v31 = vpop.f32.mrf.mxu2  ;;  %v494_v37 = vpop.f32.mrf.mxu3 }
 0x23d   :  { %v495_v44 = vadd.f32 %v3460_v27, %v494_v37  ;;  %v4078_v53 = vadd.f32 %v3459_v49, %v452_v31 }
 0x23f   :  { %v559_v59 = vsel %vm40_vm8, %v4078_v53, 0.0  ;;  %v727_v60 = vsel %vm4081_vm9, %v4078_v53, 0.0 }
 0x244   :  { %v454_v19 = vpop.f32.mrf.mxu2  ;;  %v496_v20 = vpop.f32.mrf.mxu3 }
 0x245   :  { %v497_v42 = vadd.f32 %v3460_v27, %v496_v20  ;;  %v4073_v50 = vadd.f32 %v3459_v49, %v454_v19 }
 0x247   :  { %v551_v48 = vpack.c.bf16 %v497_v42, %v495_v44  ;;  %v560_v56 = vsel %vm40_vm8, %v4073_v50, 0.0  ;;  %v728_v57 = vsel %vm4081_vm9, %v4073_v50, 0.0 }
 0x248   :  { %v565_v61 = vpack.c.bf16 %v560_v56, %v559_v59  ;;  %v733_v21 = vpack.c.bf16 %v728_v57, %v727_v60  ;;  %v51_v56 = vld [vmem:[%s5421_s3] sm:$0xff] }
 0x249   :  { %v578_v51 = vsel %vm260_vm1, %v551_v48, 0 }
 0x24c   :  { %v457_v13 = vpop.f32.mrf.mxu2  ;;  %v499_v22 = vpop.f32.mrf.mxu3 }
 0x24d   :  { %v500_v36 = vadd.f32 %v3460_v27, %v499_v22  ;;  %v4101_v1 = vadd.f32 %v3459_v49, %v457_v13 }
 0x24f   :  { %v561_v4 = vsel %vm40_vm8, %v4101_v1, 0.0  ;;  %v729_v5 = vsel %vm4081_vm9, %v4101_v1, 0.0  ;;  %v887_v42 = vsel %vm4136_vm14, %v4101_v1, 0.0  ;;  %v1045_v44 = vsel %vm4140_vm15, %v4101_v1, 0.0 }
 0x254   :  { %v459_v23 = vpop.f32.mrf.mxu2  ;;  %v501_v24 = vpop.f32.mrf.mxu3 }
 0x255   :  { %v502_v33 = vadd.f32 %v3460_v27, %v501_v24  ;;  %v4099_v63 = vadd.f32 %v3459_v49, %v459_v23 }
 0x257   :  { %v552_v39 = vpack.c.bf16 %v502_v33, %v500_v36  ;;  %v562_v3 = vsel %vm40_vm8, %v4099_v63, 0.0  ;;  %v730_v26 = vsel %vm4081_vm9, %v4099_v63, 0.0  ;;  %v885_v33 = vsel %vm4136_vm14, %v4078_v53, 0.0 }
 0x258   :  { %v566_v6 = vpack.c.bf16 %v562_v3, %v561_v4  ;;  %v734_v7 = vpack.c.bf16 %v730_v26, %v729_v5  ;;  %v1046_v41 = vsel %vm4140_vm15, %v4099_v63, 0.0  ;;  %v4203_v4 = vld [vmem:[%s5421_s3 + $0x10] sm:$0xff] }
 0x259   :  { %v581_v43 = vsel %vm260_vm1, %v552_v39, 0  ;;  %v888_v39 = vsel %vm4136_vm14, %v4099_v63, 0.0 }
 0x25c   :  { %v4059_v11 = vpop.f32.mrf.mxu2  ;;  %v504_v25 = vpop.f32.mrf.mxu3 }
 0x25d   :  { %v505_v30 = vadd.f32 %v3460_v27, %v504_v25  ;;  %v463_v37 = vadd.f32 %v3459_v49, %v4059_v11 }
 0x25f   :  { %v563_v24 = vsel %vm40_vm8, %v463_v37, 0.0 }
 0x264   :  { %v4064_v28 = vpop.f32.mrf.mxu2  ;;  %v506_v29 = vpop.f32.mrf.mxu3 }
 0x265   :  { %v507_v16 = vadd.f32 %v3460_v27, %v506_v29  ;;  %v465_v18 = vadd.f32 %v3459_v49, %v4064_v28  ;;  %v731_v28 = vsel %vm4081_vm9, %v463_v37, 0.0 }
 0x267   :  { %v553_v32 = vpack.c.bf16 %v507_v16, %v505_v30  ;;  %v564_v13 = vsel %vm40_vm8, %v465_v18, 0.0  ;;  %v732_v23 = vsel %vm4081_vm9, %v465_v18, 0.0  ;;  %v886_v16 = vsel %vm4136_vm14, %v4073_v50, 0.0 }
 0x268   :  { %v567_v27 = vpack.c.bf16 %v564_v13, %v563_v24  ;;  %v735_v11 = vpack.c.bf16 %v732_v23, %v731_v28  ;;  %v891_v36 = vpack.c.bf16 %v886_v16, %v885_v33  ;;  %v890_v48 = vsel %vm4136_vm14, %v465_v18, 0.0  ;;  %v4231_v13 = vld [vmem:[%s5421_s3 + $0x20] sm:$0xff] }
 0x269   :  { %v584_v34 = vsel %vm260_vm1, %v553_v32, 0  ;;  %v1044_v32 = vsel %vm4140_vm15, %v4073_v50, 0.0  ;;  %v1048_v49 = vsel %vm4140_vm15, %v465_v18, 0.0  ;;  %v889_v50 = vsel %vm4136_vm14, %v463_v37, 0.0 }
 0x26a   :  { %591 = vmatpush.bf16.xpose.msrb.mxu3 %v584_v34  ;;  %750 = vmatpush.bf16.xpose.msrb.mxu0 %v584_v34 }
 0x26c   :  { %v536_v38 = vpop.f32.mrf.mxu2 }
 0x26d   :  { %v537_v22 = vadd.f32 %v3461_v9, %v536_v38 }
 0x272   :  { %592 = vmatpush.bf16.xpose.msrb.mxu3 %v581_v43  ;;  %751 = vmatpush.bf16.xpose.msrb.mxu0 %v581_v43 }
 0x274   :  { %v538_v47 = vpop.f32.mrf.mxu2 }
 0x275   :  { %v539_v19 = vadd.f32 %v3461_v9, %v538_v47  ;;  %v1050_v47 = vpack.c.bf16 %v1046_v41, %v1045_v44 }
 0x277   :  { %v554_v25 = vpack.c.bf16 %v539_v19, %v537_v22 }
 0x27a   :  { %593 = vmatpush.bf16.xpose.msrb.mxu3 %v578_v51  ;;  %752 = vmatpush.bf16.xpose.msrb.mxu0 %v578_v51 }
 0x27c   :  { %v541_v55 = vpop.f32.mrf.mxu2 }
 0x27d   :  { %v542_v31 = vadd.f32 %v3461_v9, %v541_v55 }
 0x281   :  { %3151 = vmatmul.msk.bf16.vlgmr.msrb.gmra.mxu3 %vm260_vm1, %v565_v61  ;;  %3157 = vmatmul.msk.bf16.vlgmr.msrb.gmra.mxu0 %vm260_vm1, %v733_v21  ;;  %v52_v21 = vld [vmem:[%s5421_s3 + $0x8] sm:$0xff] }
 0x282   :  { %908 = vmatpush.bf16.xpose.msra.mxu3 %v584_v34  ;;  %1066 = vmatpush.bf16.xpose.msra.mxu0 %v584_v34  ;;  %v1043_v34 = vsel %vm4140_vm15, %v4078_v53, 0.0  ;;  %v1047_v53 = vsel %vm4140_vm15, %v463_v37, 0.0 }
 0x283   :  { %v1049_v38 = vpack.c.bf16 %v1044_v32, %v1043_v34  ;;  %v1051_v55 = vpack.c.bf16 %v1048_v49, %v1047_v53 }
 0x284   :  { %v543_v62 = vpop.f32.mrf.mxu2 }
 0x285   :  { %v544_v15 = vadd.f32 %v3461_v9, %v543_v62 }
 0x287   :  { %v555_v20 = vpack.c.bf16 %v544_v15, %v542_v31 }
 0x28a   :  { %909 = vmatpush.bf16.xpose.msra.mxu3 %v581_v43  ;;  %1067 = vmatpush.bf16.xpose.msra.mxu0 %v581_v43  ;;  %v892_v43 = vpack.c.bf16 %v888_v39, %v887_v42 }
 0x28c   :  { %v546_v2 = vpop.f32.mrf.mxu2 }
 0x28d   :  { %v547_v12 = vadd.f32 %v3461_v9, %v546_v2 }
 0x291   :  { %3152 = vmatmul.msk.bf16.gmra.mxu3 %vm260_vm1, %v566_v6  ;;  %3158 = vmatmul.msk.bf16.gmra.mxu0 %vm260_vm1, %v734_v7 }
 0x292   :  { %910 = vmatpush.bf16.xpose.msra.mxu3 %v578_v51  ;;  %1068 = vmatpush.bf16.xpose.msra.mxu0 %v578_v51  ;;  %v893_v51 = vpack.c.bf16 %v890_v48, %v889_v50 }
 0x294   :  { %v548_v10 = vpop.f32.mrf.mxu2 }
 0x295   :  { %v549_v14 = vadd.f32 %v3461_v9, %v548_v10 }
 0x297   :  { %v556_v17 = vpack.c.bf16 %v549_v14, %v547_v12  ;;  %v54_v14 = vld [vmem:[%s5421_s3 + $0x18] sm:$0xff] }
 0x299   :  { %694 = vmatpush.bf16.msrb.mxu1 %v556_v17  ;;  %852 = vmatpush.bf16.msra.mxu2 %v556_v17 }
 0x29d   :  { %695 = vmatpush.bf16.msrb.mxu1 %v555_v20  ;;  %853 = vmatpush.bf16.msra.mxu2 %v555_v20 }
 0x2a1   :  { %3153 = vmatmul.msk.bf16.gmra.mxu3 %vm260_vm1, %v567_v27  ;;  %696 = vmatpush.bf16.msrb.mxu1 %v554_v25 }
 0x2a2   :  { %3159 = vmatmul.msk.bf16.gmra.mxu0 %vm260_vm1, %v735_v11  ;;  %854 = vmatpush.bf16.msra.mxu2 %v554_v25  ;;  %v4246_v11 = vld [vmem:[%s5421_s3 + $0x28] sm:$0xff] }
 0x2a5   :  { %1010 = vmatpush.bf16.msra.mxu1 %v556_v17 }
 0x2a6   :  { %1168 = vmatpush.bf16.msrb.mxu2 %v556_v17 }
 0x2a9   :  { %1011 = vmatpush.bf16.msra.mxu1 %v555_v20 }
 0x2aa   :  { %1169 = vmatpush.bf16.msrb.mxu2 %v555_v20 }
 0x2ad   :  { %1012 = vmatpush.bf16.msra.mxu1 %v554_v25 }
 0x2ae   :  { %1170 = vmatpush.bf16.msrb.mxu2 %v554_v25 }
 0x2b1   :  { %3163 = vmatmul.msk.bf16.vlgmr.msra.gmra.mxu3 %vm260_vm1, %v891_v36 }
 0x2b2   :  { %3169 = vmatmul.msk.bf16.vlgmr.msra.gmra.mxu0 %vm260_vm1, %v1049_v38 }
 0x2c1   :  { %3164 = vmatmul.msk.bf16.gmra.mxu3 %vm260_vm1, %v892_v43 }
 0x2c2   :  { %3170 = vmatmul.msk.bf16.gmra.mxu0 %vm260_vm1, %v1050_v47 }
 0x2d1   :  { %3165 = vmatmul.msk.bf16.gmra.mxu3 %vm260_vm1, %v893_v51 }
 0x2d2   :  { %3171 = vmatmul.msk.bf16.gmra.mxu0 %vm260_vm1, %v1051_v55 }
 0x2fe   :  { %v754_v57 = vpop.f32.mrf.mxu0 }
 0x2ff   :  { %v4185_v59 = vadd.f32 %v754_v57, %v51_v56 }
 0x301   :  { %v769_v60 = vsel %vm610_vm0, %v4185_v59, -inf }
 0x302   :  { %770 = vmax.xlane.f32.xlu0 %v769_v60 }
 0x304   :  { %v595_v61 = vpop.f32.mrf.mxu3 }
 0x305   :  { %v4192_v62 = vadd.f32 %v595_v61, %v51_v56 }
 0x306   :  { %v756_v63 = vpop.f32.mrf.mxu0 }
 0x307   :  { %v4194_v1 = vadd.f32 %v756_v63, %v52_v21  ;;  %v611_v2 = vsel %vm610_vm0, %v4192_v62, -inf }
 0x308   :  { %612 = vmax.xlane.f32.xlu2 %v611_v2 }
 0x309   :  { %v772_v3 = vsel %vm610_vm0, %v4194_v1, -inf }
 0x30a   :  { %773 = vmax.xlane.f32.xlu1 %v772_v3 }
 0x30c   :  { %v597_v26 = vpop.f32.mrf.mxu3 }
 0x30d   :  { %v4205_v5 = vadd.f32 %v597_v26, %v52_v21 }
 0x30e   :  { %v759_v6 = vpop.f32.mrf.mxu0 }
 0x30f   :  { %v4208_v7 = vadd.f32 %v759_v6, %v4203_v4  ;;  %v614_v9 = vsel %vm610_vm0, %v4205_v5, -inf }
 0x310   :  { %615 = vmax.xlane.f32.xlu0 %v614_v9 }
 0x311   :  { %v775_v10 = vsel %vm610_vm0, %v4208_v7, -inf }
 0x312   :  { %776 = vmax.xlane.f32.xlu1 %v775_v10 }
 0x314   :  { %v600_v12 = vpop.f32.mrf.mxu3 }
 0x315   :  { %v4218_v15 = vadd.f32 %v600_v12, %v4203_v4 }
 0x316   :  { %v761_v17 = vpop.f32.mrf.mxu0 }
 0x317   :  { %v4220_v18 = vadd.f32 %v761_v17, %v54_v14  ;;  %v617_v31 = vsel %vm610_vm0, %v4218_v15, -inf }
 0x318   :  { %618 = vmax.xlane.f32.xlu0 %v617_v31 }
 0x319   :  { %v778_v37 = vsel %vm610_vm0, %v4220_v18, -inf }
 0x31a   :  { %779 = vmax.xlane.f32.xlu2 %v778_v37 }
 0x31c   :  { %v602_v19 = vpop.f32.mrf.mxu3 }
 0x31d   :  { %v4226_v20 = vadd.f32 %v602_v19, %v54_v14 }
 0x31f   :  { %v764_v22 = vpop.f32.mrf.mxu0  ;;  %v620_v23 = vsel %vm610_vm0, %v4226_v20, -inf }
 0x320   :  { %v4236_v24 = vadd.f32 %v764_v22, %v4231_v13  ;;  %621 = vmax.xlane.f32.xlu1 %v620_v23 }
 0x322   :  { %v781_v25 = vsel %vm610_vm0, %v4236_v24, -inf }
 0x323   :  { %782 = vmax.xlane.f32.xlu2 %v781_v25 }
 0x324   :  { %v605_v27 = vpop.f32.mrf.mxu3 }
 0x325   :  { %v4241_v28 = vadd.f32 %v605_v27, %v4231_v13 }
 0x327   :  { %v766_v16 = vpop.f32.mrf.mxu0  ;;  %v623_v32 = vsel %vm610_vm0, %v4241_v28, -inf }
 0x328   :  { %v4251_v33 = vadd.f32 %v766_v16, %v4246_v11  ;;  %624 = vmax.xlane.f32.xlu1 %v623_v32 }
 0x32a   :  { %v784_v34 = vsel %vm610_vm0, %v4251_v33, -inf }
 0x32b   :  { %785 = vmax.xlane.f32.xlu0 %v784_v34 }
 0x32c   :  { %v607_v36 = vpop.f32.mrf.mxu3 }
 0x32d   :  { %v4256_v38 = vadd.f32 %v607_v36, %v4246_v11 }
 0x32f   :  { %v1070_v39 = vpop.f32.mrf.mxu0  ;;  %v626_v41 = vsel %vm610_vm0, %v4256_v38, -inf }
 0x330   :  { %v4260_v42 = vadd.f32 %v1070_v39, %v51_v56  ;;  %627 = vmax.xlane.f32.xlu2 %v626_v41 }
 0x332   :  { %v1085_v43 = vsel %vm610_vm0, %v4260_v42, -inf }
 0x333   :  { %1086 = vmax.xlane.f32.xlu0 %v1085_v43 }
 0x334   :  { %v912_v44 = vpop.f32.mrf.mxu3 }
 0x335   :  { %v4264_v47 = vadd.f32 %v912_v44, %v51_v56 }
 0x337   :  { %v1072_v48 = vpop.f32.mrf.mxu0  ;;  %v927_v49 = vsel %vm610_vm0, %v4264_v47, -inf }
 0x338   :  { %928 = vmax.xlane.f32.xlu1 %v927_v49  ;;  %v4268_v50 = vadd.f32 %v1072_v48, %v52_v21 }
 0x33a   :  { %v1088_v57 = vsel %vm610_vm0, %v4268_v50, -inf }
 0x33c   :  { %v914_v51 = vpop.f32.mrf.mxu3 }
 0x33d   :  { %v4270_v53 = vadd.f32 %v914_v51, %v52_v21 }
 0x33f   :  { %v1075_v55 = vpop.f32.mrf.mxu0  ;;  %v930_v60 = vsel %vm610_vm0, %v4270_v53, -inf }
 0x340   :  { %1089 = vmax.xlane.f32.xlu1 %v1088_v57  ;;  %931 = vmax.xlane.f32.xlu2 %v930_v60  ;;  %v4277_v56 = vadd.f32 %v1075_v55, %v4203_v4 }
 0x342   :  { %v1091_v2 = vsel %vm610_vm0, %v4277_v56, -inf }
 0x344   :  { %v917_v61 = vpop.f32.mrf.mxu3 }
 0x347   :  { %v1077_v63 = vpop.f32.mrf.mxu0 }
 0x348   :  { %v4281_v3 = vadd.f32 %v1077_v63, %v54_v14  ;;  %1092 = vmax.xlane.f32.xlu2 %v1091_v2 }
 0x34a   :  { %v1094_v21 = vsel %vm610_vm0, %v4281_v3, -inf }
 0x34b   :  { %1095 = vmax.xlane.f32.xlu0 %v1094_v21 }
 0x34c   :  { %v919_v26 = vpop.f32.mrf.mxu3 }
 0x34d   :  { %v4285_v6 = vadd.f32 %v919_v26, %v54_v14 }
 0x34f   :  { %v936_v9 = vsel %vm610_vm0, %v4285_v6, -inf }
 0x350   :  { %937 = vmax.xlane.f32.xlu1 %v936_v9 }
 0x375   :  { %v771_v10 = vpop.xlane.xlu0 %770 }
 0x376   :  { %v787_v12 = vsub.f32 %v4185_v59, %v771_v10 }
 0x378   :  { %v793_v17 = vmul.f32 1.442695, %v787_v12 }
 0x37a   :  { %3494 = vpow2.f32 %v793_v17 }
 0x37b   :  { %v613_v31 = vpop.xlane.xlu2 %612 }
 0x37c   :  { %v629_v37 = vsub.f32 %v4192_v62, %v613_v31 }
 0x37d   :  { %v774_v19 = vpop.xlane.xlu1 %773 }
 0x37e   :  { %v635_v22 = vmul.f32 1.442695, %v629_v37  ;;  %v788_v23 = vsub.f32 %v4194_v1, %v774_v19 }
 0x380   :  { %v4292_v25 = vpop.eup %3494  ;;  %3496 = vpow2.f32 %v635_v22  ;;  %v795_v27 = vmul.f32 1.442695, %v788_v23  ;;  %v922_v23 = vpop.f32.mrf.mxu3 }
 0x381   :  { %v805_v14 = vsel %vm610_vm0, %v4292_v25, 0.0 }
 0x382   :  { %806 = vadd.xlane.f32.xlu2 %v805_v14  ;;  %3498 = vpow2.f32 %v795_v27 }
 0x383   :  { %v616_v16 = vpop.xlane.xlu0 %615 }
 0x384   :  { %v630_v59 = vsub.f32 %v4205_v5, %v616_v16 }
 0x385   :  { %v777_v32 = vpop.xlane.xlu1 %776 }
 0x386   :  { %v4297_v34 = vpop.eup %3496  ;;  %v637_v62 = vmul.f32 1.442695, %v630_v59  ;;  %v789_v36 = vsub.f32 %v4208_v7, %v777_v32 }
 0x387   :  { %v647_v1 = vsel %vm610_vm0, %v4297_v34, 0.0 }
 0x388   :  { %3500 = vpow2.f32 %v637_v62  ;;  %648 = vadd.xlane.f32.xlu0 %v647_v1  ;;  %v797_v39 = vmul.f32 1.442695, %v789_v36  ;;  %v4302_v43 = vpop.eup %3498 }
 0x389   :  { %v808_v55 = vsel %vm610_vm0, %v4302_v43, 0.0 }
 0x38a   :  { %3502 = vpow2.f32 %v797_v39 }
 0x38b   :  { %v619_v41 = vpop.xlane.xlu0 %618 }
 0x38c   :  { %v631_v44 = vsub.f32 %v4218_v15, %v619_v41  ;;  %v4315_v15 = vadd.f32 %v917_v61, %v4203_v4 }
 0x38d   :  { %v780_v48 = vpop.xlane.xlu2 %779 }
 0x38e   :  { %v4305_v5 = vpop.eup %3500  ;;  %v639_v49 = vmul.f32 1.442695, %v631_v44  ;;  %v790_v51 = vsub.f32 %v4220_v18, %v780_v48  ;;  %v1080_v18 = vpop.f32.mrf.mxu0  ;;  %v933_v4 = vsel %vm610_vm0, %v4315_v15, -inf }
 0x38f   :  { %v650_v7 = vsel %vm610_vm0, %v4305_v5, 0.0 }
 0x390   :  { %3504 = vpow2.f32 %v639_v49  ;;  %651 = vadd.xlane.f32.xlu1 %v650_v7  ;;  %809 = vadd.xlane.f32.xlu0 %v808_v55  ;;  %v799_v57 = vmul.f32 1.442695, %v790_v51  ;;  %v4312_v63 = vpop.eup %3502  ;;  %v924_v7 = vpop.f32.mrf.mxu3 }
 0x391   :  { %v811_v12 = vsel %vm610_vm0, %v4312_v63, 0.0 }
 0x392   :  { %3506 = vpow2.f32 %v799_v57 }
 0x393   :  { %v622_v60 = vpop.xlane.xlu1 %621 }
 0x394   :  { %v632_v2 = vsub.f32 %v4226_v20, %v622_v60  ;;  %v4328_v20 = vadd.f32 %v1080_v18, %v4231_v13 }
 0x396   :  { %v4318_v21 = vpop.eup %3504  ;;  %v641_v26 = vmul.f32 1.442695, %v632_v2  ;;  %v783_v9 = vpop.xlane.xlu2 %782  ;;  %v1097_v22 = vsel %vm610_vm0, %v4328_v20, -inf  ;;  %v4361_v2 = vadd.f32 %v924_v7, %v4246_v11 }
 0x397   :  { %v791_v10 = vsub.f32 %v4236_v24, %v783_v9  ;;  %v653_v17 = vsel %vm610_vm0, %v4318_v21, 0.0  ;;  %v1082_v59 = vpop.f32.mrf.mxu0 }
 0x398   :  { %3508 = vpow2.f32 %v641_v26  ;;  %812 = vadd.xlane.f32.xlu1 %v811_v12  ;;  %654 = vadd.xlane.f32.xlu2 %v653_v17  ;;  %v4330_v31 = vpop.eup %3506  ;;  %v4343_v36 = vadd.f32 %v1082_v59, %v4246_v11 }
 0x399   :  { %934 = vmax.xlane.f32.xlu0 %v933_v4  ;;  %v801_v61 = vmul.f32 1.442695, %v791_v10  ;;  %v814_v16 = vsel %vm610_vm0, %v4330_v31, 0.0 }
 0x39a   :  { %v1100_v49 = vsel %vm610_vm0, %v4343_v36, -inf }
 0x39b   :  { %v625_v37 = vpop.xlane.xlu1 %624  ;;  %3510 = vpow2.f32 %v801_v61 }
 0x39c   :  { %v633_v32 = vsub.f32 %v4241_v28, %v625_v37 }
 0x39e   :  { %v4332_v24 = vpop.eup %3508  ;;  %v786_v19 = vpop.xlane.xlu0 %785 }
 0x39f   :  { %v792_v14 = vsub.f32 %v4251_v33, %v786_v19  ;;  %v656_v27 = vsel %vm610_vm0, %v4332_v24, 0.0  ;;  %v643_v33 = vmul.f32 1.442695, %v633_v32 }
 0x3a0   :  { %1098 = vmax.xlane.f32.xlu1 %v1097_v22  ;;  %815 = vadd.xlane.f32.xlu2 %v814_v16 }
 0x3a1   :  { %v803_v62 = vmul.f32 1.442695, %v792_v14  ;;  %657 = vadd.xlane.f32.xlu0 %v656_v27  ;;  %v4345_v39 = vpop.eup %3510 }
 0x3a2   :  { %v817_v28 = vsel %vm610_vm0, %v4345_v39, 0.0 }
 0x3a3   :  { %3512 = vpow2.f32 %v803_v62  ;;  %v628_v1 = vpop.xlane.xlu2 %627 }
 0x3a4   :  { %v634_v41 = vsub.f32 %v4256_v38, %v628_v1  ;;  %3514 = vpow2.f32 %v643_v33  ;;  %v4358_v38 = vadd.f32 %v922_v23, %v4231_v13  ;;  %v942_v13 = vsel %vm610_vm0, %v4361_v2, -inf }
 0x3a6   :  { %v1087_v44 = vpop.xlane.xlu0 %1086  ;;  %v645_v55 = vmul.f32 1.442695, %v634_v41  ;;  %v939_v9 = vsel %vm610_vm0, %v4358_v38, -inf }
 0x3a7   :  { %v1103_v48 = vsub.f32 %v4260_v42, %v1087_v44 }
 0x3a8   :  { %1101 = vmax.xlane.f32.xlu2 %v1100_v49  ;;  %3516 = vpow2.f32 %v645_v55 }
 0x3a9   :  { %v4353_v51 = vpop.eup %3512  ;;  %818 = vadd.xlane.f32.xlu0 %v817_v28  ;;  %v1109_v42 = vmul.f32 1.442695, %v1103_v48 }
 0x3aa   :  { %v820_v57 = vsel %vm610_vm0, %v4353_v51, 0.0  ;;  %v4364_v26 = vpop.eup %3514 }
 0x3ab   :  { %821 = vadd.xlane.f32.xlu1 %v820_v57  ;;  %v929_v60 = vpop.xlane.xlu1 %928  ;;  %3518 = vpow2.f32 %v1109_v42  ;;  %v659_v12 = vsel %vm610_vm0, %v4364_v26, 0.0 }
 0x3ac   :  { %v945_v18 = vsub.f32 %v4264_v47, %v929_v60 }
 0x3ae   :  { %v951_v10 = vmul.f32 1.442695, %v945_v18  ;;  %v4372_v4 = vpop.eup %3516 }
 0x3af   :  { %v662_v23 = vsel %vm610_vm0, %v4372_v4, 0.0 }
 0x3b0   :  { %940 = vmax.xlane.f32.xlu2 %v939_v9  ;;  %3520 = vpow2.f32 %v951_v10 }
 0x3b1   :  { %943 = vmax.xlane.f32.xlu0 %v942_v13  ;;  %v4376_v37 = vpop.eup %3518 }
 0x3b2   :  { %v1121_v14 = vsel %vm610_vm0, %v4376_v37, 0.0 }
 0x3b3   :  { %660 = vadd.xlane.f32.xlu1 %v659_v12  ;;  %v1090_v11 = vpop.xlane.xlu1 %1089  ;;  %v932_v17 = vpop.xlane.xlu2 %931 }
 0x3b4   :  { %v1104_v47 = vsub.f32 %v4268_v50, %v1090_v11  ;;  %v946_v61 = vsub.f32 %v4270_v53, %v932_v17 }
 0x3b6   :  { %v1111_v19 = vmul.f32 1.442695, %v1104_v47  ;;  %v953_v22 = vmul.f32 1.442695, %v946_v61  ;;  %v4382_v16 = vpop.eup %3520 }
 0x3b7   :  { %v963_v41 = vsel %vm610_vm0, %v4382_v16, 0.0 }
 0x3b8   :  { %3522 = vpow2.f32 %v1111_v19  ;;  %663 = vadd.xlane.f32.xlu2 %v662_v23 }
 0x3b9   :  { %3524 = vpow2.f32 %v953_v22  ;;  %1122 = vadd.xlane.f32.xlu0 %v1121_v14 }
 0x3bb   :  { %v1093_v27 = vpop.xlane.xlu2 %1092 }
 0x3bc   :  { %v1105_v50 = vsub.f32 %v4277_v56, %v1093_v27 }
 0x3be   :  { %v4385_v53 = vpop.eup %3522  ;;  %v1113_v59 = vmul.f32 1.442695, %v1105_v50  ;;  %v1096_v32 = vpop.xlane.xlu0 %1095 }
 0x3bf   :  { %v4387_v62 = vpop.eup %3524  ;;  %v1106_v1 = vsub.f32 %v4281_v3, %v1096_v32  ;;  %v1124_v33 = vsel %vm610_vm0, %v4385_v53, 0.0 }
 0x3c0   :  { %3526 = vpow2.f32 %v1113_v59  ;;  %1125 = vadd.xlane.f32.xlu1 %v1124_v33  ;;  %964 = vadd.xlane.f32.xlu2 %v963_v41  ;;  %v966_v56 = vsel %vm610_vm0, %v4387_v62, 0.0 }
 0x3c1   :  { %v1115_v44 = vmul.f32 1.442695, %v1106_v1  ;;  %967 = vadd.xlane.f32.xlu0 %v966_v56 }
 0x3c3   :  { %3528 = vpow2.f32 %v1115_v44  ;;  %v938_v48 = vpop.xlane.xlu1 %937 }
 0x3c4   :  { %v948_v49 = vsub.f32 %v4285_v6, %v938_v48 }
 0x3c6   :  { %v4397_v28 = vpop.eup %3526  ;;  %v957_v3 = vmul.f32 1.442695, %v948_v49 }
 0x3c7   :  { %v1127_v7 = vsel %vm610_vm0, %v4397_v28, 0.0 }
 0x3c8   :  { %3530 = vpow2.f32 %v957_v3  ;;  %1128 = vadd.xlane.f32.xlu1 %v1127_v7 }
 0x3c9   :  { %v4401_v55 = vpop.eup %3528 }
 0x3ca   :  { %v1130_v57 = vsel %vm610_vm0, %v4401_v55, 0.0 }
 0x3cb   :  { %1131 = vadd.xlane.f32.xlu2 %v1130_v57 }
 0x3ce   :  { %v4405_v42 = vpop.eup %3530 }
 0x3cf   :  { %v972_v60 = vsel %vm610_vm0, %v4405_v42, 0.0 }
 0x3d0   :  { %973 = vadd.xlane.f32.xlu1 %v972_v60 }
 0x3f5   :  { %v807_v18 = vpop.xlane.xlu2 %806 }
 0x3fb   :  { %v649_v6 = vpop.xlane.xlu0 %648 }
 0x3fc   :  { %3532 = vrcp.f32 %v649_v6 }
 0x3fd   :  { %3534 = vrcp.f32 %v807_v18 }
 0x402   :  { %v3533_v10 = vpop.eup %3532 }
 0x403   :  { %v652_v9 = vpop.xlane.xlu1 %651  ;;  %v810_v13 = vpop.xlane.xlu0 %809  ;;  %v671_v47 = vmul.f32 %v3533_v10, %v4297_v34 }
 0x404   :  { %3536 = vrcp.f32 %v652_v9  ;;  %v3535_v12 = vpop.eup %3534 }
 0x405   :  { %3538 = vrcp.f32 %v810_v13  ;;  %v829_v23 = vmul.f32 %v3535_v12, %v4292_v25 }
 0x40a   :  { %v3537_v11 = vpop.eup %3536 }
 0x40b   :  { %v3539_v17 = vpop.eup %3538  ;;  %v672_v61 = vmul.f32 %v3537_v11, %v4305_v5  ;;  %v813_v19 = vpop.xlane.xlu1 %812 }
 0x40c   :  { %v655_v22 = vpop.xlane.xlu2 %654  ;;  %v830_v14 = vmul.f32 %v3539_v17, %v4302_v43  ;;  %v935_v27 = vpop.xlane.xlu0 %934 }
 0x40d   :  { %v947_v50 = vsub.f32 %v4315_v15, %v935_v27  ;;  %v677_v59 = vpack.c.bf16 %v672_v61, %v671_v47 }
 0x40e   :  { %v835_v32 = vpack.c.bf16 %v830_v14, %v829_v23 }
 0x40f   :  { %v955_v1 = vmul.f32 1.442695, %v947_v50  ;;  %3154 = vmatmul.msk.bf16.vlgmr.msrb.gmra.mxu1 %vm610_vm0, %v677_v59 }
 0x410   :  { %3160 = vmatmul.msk.bf16.vlgmr.msra.gmra.mxu2 %vm610_vm0, %v835_v32 }
 0x411   :  { %3540 = vpow2.f32 %v955_v1 }
 0x412   :  { %3542 = vrcp.f32 %v813_v19 }
 0x413   :  { %3544 = vrcp.f32 %v655_v22  ;;  %v1099_v34 = vpop.xlane.xlu1 %1098 }
 0x414   :  { %v816_v5 = vpop.xlane.xlu2 %815  ;;  %v1107_v33 = vsub.f32 %v4328_v20, %v1099_v34  ;;  %v658_v25 = vpop.xlane.xlu0 %657 }
 0x415   :  { %3546 = vrcp.f32 %v816_v5 }
 0x416   :  { %3548 = vrcp.f32 %v658_v25  ;;  %v1117_v43 = vmul.f32 1.442695, %v1107_v33 }
 0x417   :  { %v4417_v41 = vpop.eup %3540 }
 0x418   :  { %v3543_v15 = vpop.eup %3542  ;;  %3550 = vpow2.f32 %v1117_v43  ;;  %v969_v56 = vsel %vm610_vm0, %v4417_v41, 0.0 }
 0x419   :  { %v3545_v44 = vpop.eup %3544  ;;  %970 = vadd.xlane.f32.xlu0 %v969_v56  ;;  %v831_v7 = vmul.f32 %v3543_v15, %v4312_v63 }
 0x41a   :  { %v673_v6 = vmul.f32 %v3545_v44, %v4318_v21 }
 0x41b   :  { %v3547_v48 = vpop.eup %3546 }
 0x41c   :  { %v3549_v49 = vpop.eup %3548  ;;  %v1102_v3 = vpop.xlane.xlu2 %1101  ;;  %v832_v20 = vmul.f32 %v3547_v48, %v4330_v31 }
 0x41d   :  { %v819_v57 = vpop.xlane.xlu0 %818  ;;  %v1108_v60 = vsub.f32 %v4343_v36, %v1102_v3  ;;  %v674_v18 = vmul.f32 %v3549_v49, %v4332_v24 }
 0x41e   :  { %v836_v9 = vpack.c.bf16 %v832_v20, %v831_v7  ;;  %v4426_v13 = vpop.eup %3550  ;;  %v822_v12 = vpop.xlane.xlu1 %821 }
 0x41f   :  { %v1119_v10 = vmul.f32 1.442695, %v1108_v60  ;;  %v678_v11 = vpack.c.bf16 %v674_v18, %v673_v6  ;;  %v1133_v17 = vsel %vm610_vm0, %v4426_v13, 0.0 }
 0x420   :  { %3161 = vmatmul.msk.bf16.gmra.mxu2 %vm610_vm0, %v836_v9  ;;  %1134 = vadd.xlane.f32.xlu2 %v1133_v17 }
 0x421   :  { %3552 = vpow2.f32 %v1119_v10  ;;  %3155 = vmatmul.msk.bf16.gmra.mxu1 %vm610_vm0, %v678_v11 }
 0x422   :  { %3554 = vrcp.f32 %v822_v12 }
 0x423   :  { %3556 = vrcp.f32 %v819_v57 }
 0x424   :  { %v941_v63 = vpop.xlane.xlu2 %940 }
 0x425   :  { %v944_v21 = vpop.xlane.xlu0 %943  ;;  %v949_v31 = vsub.f32 %v4358_v38, %v941_v63 }
 0x426   :  { %v950_v24 = vsub.f32 %v4361_v2, %v944_v21  ;;  %v661_v22 = vpop.xlane.xlu1 %660 }
 0x427   :  { %v4434_v36 = vpop.eup %3552  ;;  %v959_v47 = vmul.f32 1.442695, %v949_v31 }
 0x428   :  { %v3555_v61 = vpop.eup %3554  ;;  %v961_v19 = vmul.f32 1.442695, %v950_v24  ;;  %v1136_v23 = vsel %vm610_vm0, %v4434_v36, 0.0 }
 0x429   :  { %3558 = vpow2.f32 %v959_v47  ;;  %1137 = vadd.xlane.f32.xlu0 %v1136_v23  ;;  %v3557_v14 = vpop.eup %3556  ;;  %v834_v27 = vmul.f32 %v3555_v61, %v4353_v51 }
 0x42a   :  { %3560 = vpow2.f32 %v961_v19  ;;  %v833_v2 = vmul.f32 %v3557_v14, %v4345_v39 }
 0x42b   :  { %3562 = vrcp.f32 %v661_v22 }
 0x42c   :  { %v664_v50 = vpop.xlane.xlu2 %663  ;;  %v837_v32 = vpack.c.bf16 %v834_v27, %v833_v2 }
 0x42d   :  { %v1123_v38 = vpop.xlane.xlu0 %1122  ;;  %3564 = vrcp.f32 %v664_v50 }
 0x42e   :  { %3566 = vrcp.f32 %v1123_v38 }
 0x42f   :  { %v4440_v59 = vpop.eup %3558 }
 0x430   :  { %v4442_v1 = vpop.eup %3560  ;;  %v975_v34 = vsel %vm610_vm0, %v4440_v59, 0.0  ;;  %3162 = vmatmul.msk.bf16.gmra.mxu2 %vm610_vm0, %v837_v32 }
 0x431   :  { %v3563_v5 = vpop.eup %3562  ;;  %v978_v33 = vsel %vm610_vm0, %v4442_v1, 0.0  ;;  %976 = vadd.xlane.f32.xlu1 %v975_v34 }
 0x432   :  { %979 = vadd.xlane.f32.xlu2 %v978_v33  ;;  %v675_v39 = vmul.f32 %v3563_v5, %v4364_v26 }
 0x433   :  { %v3565_v51 = vpop.eup %3564  ;;  %v1126_v25 = vpop.xlane.xlu1 %1125 }
 0x434   :  { %v676_v43 = vmul.f32 %v3565_v51, %v4372_v4  ;;  %3568 = vrcp.f32 %v1126_v25  ;;  %v965_v56 = vpop.xlane.xlu2 %964  ;;  %v3567_v48 = vpop.eup %3566 }
 0x435   :  { %v968_v15 = vpop.xlane.xlu0 %967  ;;  %v1145_v3 = vmul.f32 %v3567_v48, %v4376_v37 }
 0x436   :  { %v679_v44 = vpack.c.bf16 %v676_v43, %v675_v39  ;;  %3570 = vrcp.f32 %v968_v15  ;;  %v3424_v15 = vld [vmem:[%s5422_s4 + $0x38] sm:$0xff] }
 0x437   :  { %3572 = vrcp.f32 %v965_v56  ;;  %1235 = vmatpush.bf16.msrb.mxu3 %v3424_v15 }
 0x438   :  { %3156 = vmatmul.msk.bf16.gmra.mxu1 %vm610_vm0, %v679_v44  ;;  %v3423_v44 = vld [vmem:[%s5422_s4 + $0x30] sm:$0xff] }
 0x43a   :  { %v3569_v49 = vpop.eup %3568 }
 0x43b   :  { %v1146_v7 = vmul.f32 %v3569_v49, %v4385_v53  ;;  %v1129_v6 = vpop.xlane.xlu1 %1128  ;;  %1236 = vmatpush.bf16.msrb.mxu3 %v3423_v44 }
 0x43c   :  { %v3571_v20 = vpop.eup %3570 }
 0x43d   :  { %v1151_v57 = vpack.c.bf16 %v1146_v7, %v1145_v3  ;;  %v3573_v60 = vpop.eup %3572  ;;  %v988_v4 = vmul.f32 %v3571_v20, %v4387_v62 }
 0x43e   :  { %v1132_v26 = vpop.xlane.xlu2 %1131  ;;  %v987_v18 = vmul.f32 %v3573_v60, %v4382_v16 }
 0x43f   :  { %3574 = vrcp.f32 %v1132_v26 }
 0x440   :  { %3172 = vmatmul.msk.bf16.vlgmr.msrb.gmra.mxu2 %vm610_vm0, %v1151_v57  ;;  %3576 = vrcp.f32 %v1129_v6  ;;  %v993_v9 = vpack.c.bf16 %v988_v4, %v987_v18 }
 0x443   :  { %v974_v17 = vpop.xlane.xlu1 %973 }
 0x444   :  { %3578 = vrcp.f32 %v974_v17 }
 0x445   :  { %v3575_v10 = vpop.eup %3574 }
 0x446   :  { %v3577_v37 = vpop.eup %3576  ;;  %v1148_v53 = vmul.f32 %v3575_v10, %v4401_v55 }
 0x447   :  { %v1147_v12 = vmul.f32 %v3577_v37, %v4397_v28 }
 0x448   :  { %3166 = vmatmul.msk.bf16.vlgmr.msra.gmra.mxu1 %vm610_vm0, %v993_v9 }
 0x449   :  { %v1152_v11 = vpack.c.bf16 %v1148_v53, %v1147_v12 }
 0x44a   :  { %v3579_v16 = vpop.eup %3578 }
 0x44b   :  { %v990_v47 = vmul.f32 %v3579_v16, %v4405_v42 }
 0x450   :  { %3173 = vmatmul.msk.bf16.gmra.mxu2 %vm610_vm0, %v1152_v11 }
 0x48c   :  { %v971_v63 = vpop.xlane.xlu0 %970  ;;  %v698_v62 = vpop.f32.mrf.mxu1 }
 0x48d   :  { %3580 = vrcp.f32 %v971_v63  ;;  %v713_v6 = vsel %vm40_vm8, %v698_v62, 0.0 }
 0x493   :  { %v3581_v21 = vpop.eup %3580  ;;  %v856_v31 = vpop.f32.mrf.mxu2 }
 0x494   :  { %v989_v24 = vmul.f32 %v3581_v21, %v4417_v41  ;;  %v1135_v19 = vpop.xlane.xlu2 %1134  ;;  %v700_v55 = vpop.f32.mrf.mxu1  ;;  %v871_v26 = vsel %vm4081_vm9, %v856_v31, 0.0 }
 0x495   :  { %3582 = vrcp.f32 %v1135_v19  ;;  %v877_v9 = vadd.f32 %v871_v26, %v713_v6  ;;  %v714_v10 = vsel %vm40_vm8, %v700_v55, 0.0 }
 0x496   :  { %v994_v61 = vpack.c.bf16 %v990_v47, %v989_v24 }
 0x498   :  { %3167 = vmatmul.msk.bf16.gmra.mxu1 %vm610_vm0, %v994_v61 }
 0x49b   :  { %v858_v28 = vpop.f32.mrf.mxu2  ;;  %v3583_v23 = vpop.eup %3582 }
 0x49c   :  { %v1138_v22 = vpop.xlane.xlu0 %1137  ;;  %v1149_v2 = vmul.f32 %v3583_v23, %v4426_v13  ;;  %v872_v4 = vsel %vm4081_vm9, %v858_v28, 0.0 }
 0x49d   :  { %3584 = vrcp.f32 %v1138_v22  ;;  %v878_v37 = vadd.f32 %v872_v4, %v714_v10 }
 0x49e   :  { %v703_v14 = vpop.f32.mrf.mxu1 }
 0x49f   :  { %v715_v42 = vsel %vm40_vm8, %v703_v14, 0.0 }
 0x4a3   :  { %v3585_v27 = vpop.eup %3584  ;;  %v861_v50 = vpop.f32.mrf.mxu2 }
 0x4a4   :  { %v977_v38 = vpop.xlane.xlu1 %976  ;;  %v1150_v41 = vmul.f32 %v3585_v27, %v4434_v36  ;;  %v873_v32 = vsel %vm4081_vm9, %v861_v50, 0.0 }
 0x4a5   :  { %3586 = vrcp.f32 %v977_v38  ;;  %v980_v34 = vpop.xlane.xlu2 %979  ;;  %v879_v5 = vadd.f32 %v873_v32, %v715_v42 }
 0x4a6   :  { %3588 = vrcp.f32 %v980_v34  ;;  %v1153_v33 = vpack.c.bf16 %v1150_v41, %v1149_v2  ;;  %v705_v43 = vpop.f32.mrf.mxu1 }
 0x4a7   :  { %v716_v28 = vsel %vm40_vm8, %v705_v43, 0.0 }
 0x4a8   :  { %3174 = vmatmul.msk.bf16.gmra.mxu2 %vm610_vm0, %v1153_v33 }
 0x4ab   :  { %v3587_v51 = vpop.eup %3586  ;;  %v863_v39 = vpop.f32.mrf.mxu2 }
 0x4ac   :  { %v3589_v25 = vpop.eup %3588  ;;  %v991_v13 = vmul.f32 %v3587_v51, %v4440_v59  ;;  %v874_v19 = vsel %vm4081_vm9, %v863_v39, 0.0 }
 0x4ad   :  { %v992_v36 = vmul.f32 %v3589_v25, %v4442_v1  ;;  %v880_v22 = vadd.f32 %v874_v19, %v716_v28 }
 0x4af   :  { %v995_v56 = vpack.c.bf16 %v992_v36, %v991_v13 }
 0x4b1   :  { %3168 = vmatmul.msk.bf16.gmra.mxu1 %vm610_vm0, %v995_v56 }
 0x4b3   :  { %v866_v48 = vpop.f32.mrf.mxu2 }
 0x4b4   :  { %v875_v59 = vsel %vm4081_vm9, %v866_v48, 0.0 }
 0x4b5   :  { %v708_v49 = vpop.f32.mrf.mxu1 }
 0x4b6   :  { %v717_v1 = vsel %vm40_vm8, %v708_v49, 0.0 }
 0x4b7   :  { %v881_v3 = vadd.f32 %v875_v59, %v717_v1 }
 0x4bb   :  { %v868_v7 = vpop.f32.mrf.mxu2 }
 0x4bc   :  { %v876_v39 = vsel %vm4081_vm9, %v868_v7, 0.0 }
 0x4bd   :  { %v710_v20 = vpop.f32.mrf.mxu1 }
 0x4c3   :  { %v1172_v57 = vpop.f32.mrf.mxu2 }
 0x4c4   :  { %v1187_v62 = vsel %vm4140_vm15, %v1172_v57, 0.0 }
 0x4c5   :  { %v1014_v60 = vpop.f32.mrf.mxu1 }
 0x4c6   :  { %v1029_v18 = vsel %vm4136_vm14, %v1014_v60, 0.0 }
 0x4c7   :  { %v1035_v53 = vadd.f32 %v1029_v18, %v877_v9 }
 0x4c9   :  { %v1193_v21 = vadd.f32 %v1187_v62, %v1035_v53 }
 0x4cb   :  { %v1174_v12 = vpop.f32.mrf.mxu2 }
 0x4cc   :  { %v1188_v16 = vsel %vm4140_vm15, %v1174_v12, 0.0 }
 0x4cd   :  { %v1016_v11 = vpop.f32.mrf.mxu1 }
 0x4ce   :  { %v1030_v17 = vsel %vm4136_vm14, %v1016_v11, 0.0 }
 0x4cf   :  { %v1036_v63 = vadd.f32 %v1030_v17, %v878_v37 }
 0x4d1   :  { %v1194_v31 = vadd.f32 %v1188_v16, %v1036_v63 }
 0x4d3   :  { %v1199_v24 = vpack.c.bf16 %v1194_v31, %v1193_v21  ;;  %v1177_v47 = vpop.f32.mrf.mxu2 }
 0x4d4   :  { %v1189_v2 = vsel %vm4140_vm15, %v1177_v47, 0.0 }
 0x4d5   :  { %3187 = vmatmul.msk.bf16.vlgmr.msrb.gmra.mxu3 %vm260_vm1, %v1199_v24 }
 0x4db   :  { %v1179_v23 = vpop.f32.mrf.mxu2 }
 0x4dc   :  { %v1190_v41 = vsel %vm4140_vm15, %v1179_v23, 0.0 }
 0x515   :  { %v1019_v61 = vpop.f32.mrf.mxu1 }
 0x516   :  { %v1031_v55 = vsel %vm4136_vm14, %v1019_v61, 0.0 }
 0x517   :  { %v1037_v14 = vadd.f32 %v1031_v55, %v879_v5  ;;  %v718_v5 = vsel %vm40_vm8, %v710_v20, 0.0 }
 0x518   :  { %v882_v13 = vadd.f32 %v876_v39, %v718_v5 }
 0x519   :  { %v1195_v42 = vadd.f32 %v1189_v2, %v1037_v14 }
 0x51d   :  { %v1021_v27 = vpop.f32.mrf.mxu1 }
 0x51e   :  { %v1032_v50 = vsel %vm4136_vm14, %v1021_v27, 0.0 }
 0x51f   :  { %v1038_v38 = vadd.f32 %v1032_v50, %v880_v22 }
 0x521   :  { %v1196_v32 = vadd.f32 %v1190_v41, %v1038_v38 }
 0x523   :  { %v1200_v34 = vpack.c.bf16 %v1196_v32, %v1195_v42 }
 0x525   :  { %3188 = vmatmul.msk.bf16.gmra.mxu3 %vm260_vm1, %v1200_v34 }
 0x52b   :  { %v1182_v33 = vpop.f32.mrf.mxu2 }
 0x52c   :  { %v1191_v48 = vsel %vm4140_vm15, %v1182_v33, 0.0 }
 0x52e   :  { %v1024_v51 = vpop.f32.mrf.mxu1 }
 0x52f   :  { %v1033_v25 = vsel %vm4136_vm14, %v1024_v51, 0.0 }
 0x530   :  { %v1039_v43 = vadd.f32 %v1033_v25, %v881_v3  ;;  %v3462_v3 = vld [vmem:[%s5425_s7 + $0x5] ss:$0 sm:$0xff] }
 0x532   :  { %v1197_v59 = vadd.f32 %v1191_v48, %v1039_v43 }
 0x533   :  { %v1184_v36 = vpop.f32.mrf.mxu2 }
 0x534   :  { %v1192_v49 = vsel %vm4140_vm15, %v1184_v36, 0.0 }
 0x536   :  { %v1026_v15 = vpop.f32.mrf.mxu1 }
 0x537   :  { %v1034_v56 = vsel %vm4136_vm14, %v1026_v15, 0.0 }
 0x538   :  { %v1040_v44 = vadd.f32 %v1034_v56, %v882_v13 }
 0x53a   :  { %v1198_v1 = vadd.f32 %v1192_v49, %v1040_v44 }
 0x53c   :  { %v1201_v20 = vpack.c.bf16 %v1198_v1, %v1197_v59  ;;  %v3426_v59 = vld [vmem:[%s5423_s5 + $0x8] sm:$0xff] }
 0x53d   :  { %1440 = vmatpush.bf16.msrb.mxu1 %v3426_v59 }
 0x53e   :  { %3189 = vmatmul.msk.bf16.gmra.mxu3 %vm260_vm1, %v1201_v20 }
 0x558   :  { %v1238_v7 = vpop.f32.mrf.mxu3 }
 0x559   :  { %v1239_v57 = vadd.f32 %v3462_v3, %v1238_v7 }
 0x55b   :  { %v4531_v60 = vadd.f32 %v1239_v57, %v3915_v35 }
 0x55d   :  { %v1259_v26 = vsel %vm260_vm1, %v4531_v60, 0.0 }
 0x55e   :  { %1260 = vadd.xlane.f32.xlu0 %v1259_v26 }
 0x560   :  { %v1240_v6 = vpop.f32.mrf.mxu3 }
 0x561   :  { %v1241_v4 = vadd.f32 %v3462_v3, %v1240_v6 }
 0x563   :  { %v4536_v18 = vadd.f32 %v1241_v4, %v3922_v40 }
 0x565   :  { %v1262_v9 = vsel %vm260_vm1, %v4536_v18, 0.0 }
 0x566   :  { %1263 = vadd.xlane.f32.xlu1 %v1262_v9 }
 0x5a8   :  { %v1243_v10 = vpop.f32.mrf.mxu3 }
 0x5a9   :  { %v1244_v37 = vadd.f32 %v3462_v3, %v1243_v10 }
 0x5ab   :  { %v4541_v53 = vadd.f32 %v1244_v37, %v3929_v46 }
 0x5ad   :  { %v1265_v35 = vsel %vm260_vm1, %v4541_v53, 0.0 }
 0x5ae   :  { %1266 = vadd.xlane.f32.xlu2 %v1265_v35 }
 0x5b0   :  { %v1245_v12 = vpop.f32.mrf.mxu3 }
 0x5b1   :  { %v1246_v11 = vadd.f32 %v3462_v3, %v1245_v12 }
 0x5b3   :  { %v4546_v17 = vadd.f32 %v1246_v11, %v3936_v52 }
 0x5b5   :  { %v1268_v40 = vsel %vm260_vm1, %v4546_v17, 0.0 }
 0x5b6   :  { %1269 = vadd.xlane.f32.xlu0 %v1268_v40 }
 0x5c1   :  { %v1248_v63 = vpop.f32.mrf.mxu3 }
 0x5c2   :  { %v1249_v62 = vadd.f32 %v3462_v3, %v1248_v63 }
 0x5c4   :  { %v4551_v16 = vadd.f32 %v1249_v62, %v3943_v58 }
 0x5c6   :  { %v1271_v46 = vsel %vm260_vm1, %v4551_v16, 0.0 }
 0x5c7   :  { %1272 = vadd.xlane.f32.xlu1 %v1271_v46 }
 0x5c9   :  { %v1250_v21 = vpop.f32.mrf.mxu3 }
 0x5ca   :  { %v1251_v31 = vadd.f32 %v3462_v3, %v1250_v21  ;;  %v3425_v3 = vld [vmem:[%s5423_s5] sm:$0xff] }
 0x5cb   :  { %1441 = vmatpush.bf16.msrb.mxu1 %v3425_v3  ;;  %v4613_v21 = vld [vmem:[%s5425_s7 + $0x6] ss:$0 sm:$0xff] }
 0x5cc   :  { %v4556_v24 = vadd.f32 %v1251_v31, %v3950_v0 }
 0x5ce   :  { %v1274_v52 = vsel %vm260_vm1, %v4556_v24, 0.0 }
 0x5cf   :  { %1275 = vadd.xlane.f32.xlu2 %v1274_v52 }
 0x5d1   :  { %v1261_v47 = vpop.xlane.xlu0 %1260 }
 0x5d2   :  { %v1277_v61 = vmul.f32 %v1261_v47, %v3954_v8 }
 0x5d4   :  { %v4562_v19 = vsub.f32 %v4531_v60, %v1277_v61  ;;  %v4619_v61 = vld [vmem:[%s5425_s7 + $0x7] ss:$0 sm:$0xff] }
 0x5d6   :  { %v1289_v58 = vmul.f32 %v4562_v19, %v4562_v19 }
 0x5d8   :  { %v1295_v55 = vsel %vm260_vm1, %v1289_v58, 0.0 }
 0x5d9   :  { %v1264_v28 = vpop.xlane.xlu1 %1263  ;;  %1296 = vadd.xlane.f32.xlu0 %v1295_v55 }
 0x5da   :  { %v1278_v0 = vmul.f32 %v1264_v28, %v3954_v8 }
 0x5dc   :  { %v4569_v22 = vsub.f32 %v4536_v18, %v1278_v0 }
 0x5de   :  { %v1290_v23 = vmul.f32 %v4569_v22, %v4569_v22 }
 0x5e0   :  { %v1298_v14 = vsel %vm260_vm1, %v1290_v23, 0.0 }
 0x5e1   :  { %1299 = vadd.xlane.f32.xlu1 %v1298_v14 }
 0x621   :  { %v1267_v27 = vpop.xlane.xlu2 %1266 }
 0x622   :  { %v1279_v50 = vmul.f32 %v1267_v27, %v3954_v8 }
 0x624   :  { %v4576_v38 = vsub.f32 %v4541_v53, %v1279_v50 }
 0x626   :  { %v1291_v2 = vmul.f32 %v4576_v38, %v4576_v38 }
 0x628   :  { %v1301_v41 = vsel %vm260_vm1, %v1291_v2, 0.0 }
 0x629   :  { %v1270_v42 = vpop.xlane.xlu0 %1269  ;;  %1302 = vadd.xlane.f32.xlu2 %v1301_v41 }
 0x62a   :  { %v1280_v32 = vmul.f32 %v1270_v42, %v3954_v8 }
 0x62c   :  { %v4583_v34 = vsub.f32 %v4546_v17, %v1280_v32 }
 0x62e   :  { %v1292_v33 = vmul.f32 %v4583_v34, %v4583_v34 }
 0x630   :  { %v1304_v51 = vsel %vm260_vm1, %v1292_v33, 0.0 }
 0x631   :  { %1305 = vadd.xlane.f32.xlu0 %v1304_v51 }
 0x63a   :  { %v1273_v5 = vpop.xlane.xlu1 %1272 }
 0x63b   :  { %v1281_v25 = vmul.f32 %v1273_v5, %v3954_v8 }
 0x63d   :  { %v4590_v39 = vsub.f32 %v4551_v16, %v1281_v25 }
 0x63f   :  { %v1293_v13 = vmul.f32 %v4590_v39, %v4590_v39 }
 0x641   :  { %v1307_v43 = vsel %vm260_vm1, %v1293_v13, 0.0 }
 0x642   :  { %1308 = vadd.xlane.f32.xlu1 %v1307_v43  ;;  %v1276_v36 = vpop.xlane.xlu2 %1275 }
 0x643   :  { %v1282_v15 = vmul.f32 %v1276_v36, %v3954_v8 }
 0x645   :  { %v4597_v56 = vsub.f32 %v4556_v24, %v1282_v15 }
 0x647   :  { %v1294_v44 = vmul.f32 %v4597_v56, %v4597_v56 }
 0x649   :  { %v1310_v48 = vsel %vm260_vm1, %v1294_v44, 0.0 }
 0x64a   :  { %1311 = vadd.xlane.f32.xlu2 %v1310_v48 }
 0x64c   :  { %v1297_v49 = vpop.xlane.xlu0 %1296 }
 0x64d   :  { %v1313_v1 = vmul.f32 %v1297_v49, %v3954_v8 }
 0x64f   :  { %v1319_v20 = vadd.f32 1e-06, %v1313_v1 }
 0x651   :  { %3590 = vrsqrt.f32 %v1319_v20  ;;  %vm1331_vm3 = vweird.f32 %v1319_v20 }
 0x654   :  { %v1300_v7 = vpop.xlane.xlu1 %1299 }
 0x655   :  { %v1314_v57 = vmul.f32 %v1300_v7, %v3954_v8 }
 0x657   :  { %v3591_v26 = vpop.eup %3590  ;;  %v1320_v6 = vadd.f32 1e-06, %v1314_v57 }
 0x658   :  { %v1326_v4 = vmul.f32 %v3591_v26, %v1319_v20  ;;  %vm1332_vm2 = vweird.f32 %v3591_v26 }
 0x659   :  { %3592 = vrsqrt.f32 %v1320_v6  ;;  %vm1333_vm4 = vmor %vm1331_vm3, %vm1332_vm2  ;;  %vm1341_vm6 = vweird.f32 %v1320_v6 }
 0x65a   :  { %v1327_v9 = vmul.f32 %v3591_v26, %v1326_v4 }
 0x65c   :  { %v1328_v10 = vmul.f32 0.5, %v1327_v9 }
 0x65e   :  { %v1329_v37 = vsub.f32 1.5, %v1328_v10 }
 0x65f   :  { %v3593_v35 = vpop.eup %3592 }
 0x660   :  { %v1330_v12 = vmul.f32 %v3591_v26, %v1329_v37  ;;  %v1336_v11 = vmul.f32 %v3593_v35, %v1320_v6  ;;  %vm1342_vm5 = vweird.f32 %v3593_v35 }
 0x661   :  { %vm1343_vm7 = vmor %vm1341_vm6, %vm1342_vm5 }
 0x662   :  { %v1337_v40 = vmul.f32 %v3593_v35, %v1336_v11  ;;  %v1334_v63 = vsel %vm1333_vm4, %v3591_v26, %v1330_v12 }
 0x663   :  { %v1385_v31 = vmul.f32 %v1334_v63, %v4562_v19 }
 0x664   :  { %v1338_v62 = vmul.f32 0.5, %v1337_v40 }
 0x665   :  { %v1392_v58 = vmul.f32 %v4613_v21, %v1385_v31 }
 0x666   :  { %v1339_v46 = vsub.f32 1.5, %v1338_v62 }
 0x667   :  { %v1399_v0 = vadd.f32 %v4619_v61, %v1392_v58 }
 0x668   :  { %v1340_v52 = vmul.f32 %v3593_v35, %v1339_v46 }
 0x66a   :  { %v1344_v47 = vsel %vm1343_vm7, %v3593_v35, %v1340_v52 }
 0x66b   :  { %v1386_v55 = vmul.f32 %v1344_v47, %v4569_v22 }
 0x66d   :  { %v1393_v28 = vmul.f32 %v4613_v21, %v1386_v55 }
 0x66f   :  { %v1400_v23 = vadd.f32 %v4619_v61, %v1393_v28 }
 0x671   :  { %v1405_v19 = vpack.c.bf16 %v1400_v23, %v1399_v0 }
 0x673   :  { %3198 = vmatmul.msk.bf16.vlgmr.msrb.gmra.mxu1 %vm260_vm1, %v1405_v19 }
 0x69c   :  { %v1303_v14 = vpop.xlane.xlu2 %1302 }
 0x69d   :  { %v1315_v27 = vmul.f32 %v1303_v14, %v3954_v8 }
 0x69f   :  { %v1321_v50 = vadd.f32 1e-06, %v1315_v27  ;;  %v3434_v27 = vld [vmem:[%s5424_s6 + $0x38] sm:$0xff] }
 0x6a0   :  { %1580 = vmatpush.bf16.msrb.mxu0 %v3434_v27 }
 0x6a1   :  { %3594 = vrsqrt.f32 %v1321_v50  ;;  %vm1351_vm11 = vweird.f32 %v1321_v50 }
 0x6a4   :  { %v1306_v2 = vpop.xlane.xlu0 %1305 }
 0x6a5   :  { %v1316_v41 = vmul.f32 %v1306_v2, %v3954_v8 }
 0x6a7   :  { %v3595_v42 = vpop.eup %3594  ;;  %v1322_v32 = vadd.f32 1e-06, %v1316_v41 }
 0x6a8   :  { %v1346_v22 = vmul.f32 %v3595_v42, %v1321_v50  ;;  %vm1352_vm10 = vweird.f32 %v3595_v42 }
 0x6a9   :  { %3596 = vrsqrt.f32 %v1322_v32  ;;  %vm1353_vm12 = vmor %vm1351_vm11, %vm1352_vm10  ;;  %vm1361_vm2 = vweird.f32 %v1322_v32 }
 0x6aa   :  { %v1347_v33 = vmul.f32 %v3595_v42, %v1346_v22  ;;  %v3428_v22 = vld [vmem:[%s5424_s6 + $0x8] sm:$0xff] }
 0x6ac   :  { %v1348_v51 = vmul.f32 0.5, %v1347_v33  ;;  %v3465_v33 = vld [vmem:[%s5425_s7 + $0x8] ss:$0 sm:$0xff] }
 0x6ae   :  { %v1349_v5 = vsub.f32 1.5, %v1348_v51  ;;  %v3427_v51 = vld [vmem:[%s5424_s6] sm:$0xff] }
 0x6af   :  { %v3597_v25 = vpop.eup %3596 }
 0x6b0   :  { %v1350_v13 = vmul.f32 %v3595_v42, %v1349_v5  ;;  %v1356_v43 = vmul.f32 %v3597_v25, %v1322_v32  ;;  %vm1362_vm13 = vweird.f32 %v3597_v25  ;;  %v3429_v32 = vld [vmem:[%s5424_s6 + $0x10] sm:$0xff] }
 0x6b1   :  { %vm1363_vm3 = vmor %vm1361_vm2, %vm1362_vm13 }
 0x6b2   :  { %v1357_v36 = vmul.f32 %v3597_v25, %v1356_v43  ;;  %v1354_v15 = vsel %vm1353_vm12, %v3595_v42, %v1350_v13 }
 0x6b3   :  { %v1387_v1 = vmul.f32 %v1354_v15, %v4576_v38 }
 0x6b4   :  { %v1358_v44 = vmul.f32 0.5, %v1357_v36 }
 0x6b5   :  { %v1309_v48 = vpop.xlane.xlu1 %1308  ;;  %v1394_v26 = vmul.f32 %v4613_v21, %v1387_v1 }
 0x6b6   :  { %v1317_v49 = vmul.f32 %v1309_v48, %v3954_v8  ;;  %v1359_v59 = vsub.f32 1.5, %v1358_v44 }
 0x6b7   :  { %v1401_v35 = vadd.f32 %v4619_v61, %v1394_v26 }
 0x6b8   :  { %v1323_v20 = vadd.f32 1e-06, %v1317_v49  ;;  %v1360_v3 = vmul.f32 %v3597_v25, %v1359_v59 }
 0x6ba   :  { %3598 = vrsqrt.f32 %v1323_v20  ;;  %v1364_v7 = vsel %vm1363_vm3, %v3597_v25, %v1360_v3  ;;  %vm1371_vm5 = vweird.f32 %v1323_v20 }
 0x6bb   :  { %v1388_v57 = vmul.f32 %v1364_v7, %v4583_v34 }
 0x6bd   :  { %v1312_v6 = vpop.xlane.xlu2 %1311  ;;  %v1395_v9 = vmul.f32 %v4613_v21, %v1388_v57 }
 0x6be   :  { %v1318_v4 = vmul.f32 %v1312_v6, %v3954_v8 }
 0x6bf   :  { %v1402_v38 = vadd.f32 %v4619_v61, %v1395_v9 }
 0x6c0   :  { %v3599_v10 = vpop.eup %3598  ;;  %v1324_v37 = vadd.f32 1e-06, %v1318_v4 }
 0x6c1   :  { %v1366_v12 = vmul.f32 %v3599_v10, %v1323_v20  ;;  %v1406_v11 = vpack.c.bf16 %v1402_v38, %v1401_v35  ;;  %vm1372_vm4 = vweird.f32 %v3599_v10 }
 0x6c2   :  { %3600 = vrsqrt.f32 %v1324_v37  ;;  %vm1373_vm6 = vmor %vm1371_vm5, %vm1372_vm4  ;;  %vm1381_vm10 = vweird.f32 %v1324_v37 }
 0x6c3   :  { %v1367_v40 = vmul.f32 %v3599_v10, %v1366_v12  ;;  %3199 = vmatmul.msk.bf16.gmra.mxu1 %vm260_vm1, %v1406_v11 }
 0x6c5   :  { %v1368_v34 = vmul.f32 0.5, %v1367_v40 }
 0x6c7   :  { %v1369_v63 = vsub.f32 1.5, %v1368_v34 }
 0x6c8   :  { %v3601_v62 = vpop.eup %3600 }
 0x6c9   :  { %v1370_v46 = vmul.f32 %v3599_v10, %v1369_v63  ;;  %v1376_v31 = vmul.f32 %v3601_v62, %v1324_v37  ;;  %vm1382_vm7 = vweird.f32 %v3601_v62 }
 0x6ca   :  { %vm1383_vm11 = vmor %vm1381_vm10, %vm1382_vm7 }
 0x6cb   :  { %v1377_v52 = vmul.f32 %v3601_v62, %v1376_v31  ;;  %v1374_v47 = vsel %vm1373_vm6, %v3599_v10, %v1370_v46 }
 0x6cc   :  { %v1389_v28 = vmul.f32 %v1374_v47, %v4590_v39  ;;  %v3433_v39 = vld [vmem:[%s5424_s6 + $0x30] sm:$0xff] }
 0x6cd   :  { %v1378_v58 = vmul.f32 0.5, %v1377_v52  ;;  %1581 = vmatpush.bf16.msrb.mxu0 %v3433_v39 }
 0x6ce   :  { %v1396_v14 = vmul.f32 %v4613_v21, %v1389_v28 }
 0x6cf   :  { %v1379_v55 = vsub.f32 1.5, %v1378_v58 }
 0x6d0   :  { %v1403_v2 = vadd.f32 %v4619_v61, %v1396_v14 }
 0x6d1   :  { %v1380_v0 = vmul.f32 %v3601_v62, %v1379_v55 }
 0x6d3   :  { %v1384_v23 = vsel %vm1383_vm11, %v3601_v62, %v1380_v0 }
 0x6d4   :  { %v1390_v19 = vmul.f32 %v1384_v23, %v4597_v56  ;;  %v3432_v56 = vld [vmem:[%s5424_s6 + $0x28] sm:$0xff] }
 0x6d5   :  { %1582 = vmatpush.bf16.msrb.mxu0 %v3432_v56 }
 0x6d6   :  { %v1397_v50 = vmul.f32 %v4613_v21, %v1390_v19  ;;  %v3431_v21 = vld [vmem:[%s5424_s6 + $0x20] sm:$0xff] }
 0x6d8   :  { %v1404_v41 = vadd.f32 %v4619_v61, %v1397_v50  ;;  %v3430_v61 = vld [vmem:[%s5424_s6 + $0x18] sm:$0xff] }
 0x6d9   :  { %1583 = vmatpush.bf16.msrb.mxu0 %v3431_v21 }
 0x6da   :  { %v1407_v42 = vpack.c.bf16 %v1404_v41, %v1403_v2 }
 0x6dc   :  { %3200 = vmatmul.msk.bf16.gmra.mxu1 %vm260_vm1, %v1407_v42 }
 0x6dd   :  { %1584 = vmatpush.bf16.msrb.mxu0 %v3430_v61 }
 0x6e1   :  { %1585 = vmatpush.bf16.msrb.mxu0 %v3429_v32 }
 0x6e5   :  { %1586 = vmatpush.bf16.msrb.mxu0 %v3428_v22 }
 0x6e9   :  { %1587 = vmatpush.bf16.msrb.mxu0 %v3427_v51 }
 0x6f0   :  { %v1443_v5 = vpop.f32.mrf.mxu1 }
 0x6f1   :  { %v1444_v25 = vadd.f32 %v3465_v33, %v1443_v5 }
 0x6f3   :  { %v1458_v13 = vmul.f32 %v1444_v25, %v1444_v25 }
 0x6f5   :  { %v1464_v43 = vmul.f32 %v1458_v13, %v1444_v25 }
 0x6f7   :  { %v1470_v36 = vmul.f32 0.044715, %v1464_v43 }
 0x6f8   :  { %v1445_v15 = vpop.f32.mrf.mxu1 }
 0x6f9   :  { %v1476_v44 = vadd.f32 %v1470_v36, %v1444_v25  ;;  %v1446_v48 = vadd.f32 %v3465_v33, %v1445_v15 }
 0x6fb   :  { %v1482_v49 = vmul.f32 0.7978846, %v1476_v44  ;;  %v1459_v59 = vmul.f32 %v1446_v48, %v1446_v48 }
 0x6fd   :  { %v1465_v1 = vmul.f32 %v1459_v59, %v1446_v48  ;;  %3602 = vtanh.f32 %v1482_v49 }
 0x6ff   :  { %v1471_v20 = vmul.f32 0.044715, %v1465_v1 }
 0x701   :  { %v1477_v3 = vadd.f32 %v1471_v20, %v1446_v48 }
 0x703   :  { %v1483_v7 = vmul.f32 0.7978846, %v1477_v3  ;;  %v3603_v57 = vpop.eup %3602 }
 0x704   :  { %v1494_v26 = vadd.f32 1.0, %v3603_v57 }
 0x705   :  { %3604 = vtanh.f32 %v1483_v7 }
 0x706   :  { %v1500_v4 = vmul.f32 0.5, %v1494_v26 }
 0x708   :  { %v1506_v37 = vmul.f32 %v1500_v4, %v1444_v25 }
 0x70b   :  { %v3605_v6 = vpop.eup %3604 }
 0x70c   :  { %v1495_v9 = vadd.f32 1.0, %v3605_v6 }
 0x70e   :  { %v1501_v10 = vmul.f32 0.5, %v1495_v9 }
 0x710   :  { %v1507_v35 = vmul.f32 %v1501_v10, %v1446_v48 }
 0x712   :  { %v1512_v38 = vpack.c.bf16 %v1507_v35, %v1506_v37 }
 0x714   :  { %1588 = vmatmul.bf16.vlgmr.msrb.gmra.mxu0 %v1512_v38 }
 0x740   :  { %v1448_v12 = vpop.f32.mrf.mxu1 }
 0x741   :  { %v1449_v11 = vadd.f32 %v3465_v33, %v1448_v12 }
 0x743   :  { %v1460_v40 = vmul.f32 %v1449_v11, %v1449_v11 }
 0x745   :  { %v1466_v34 = vmul.f32 %v1460_v40, %v1449_v11 }
 0x747   :  { %v1472_v63 = vmul.f32 0.044715, %v1466_v34 }
 0x748   :  { %v1450_v62 = vpop.f32.mrf.mxu1 }
 0x749   :  { %v1478_v46 = vadd.f32 %v1472_v63, %v1449_v11  ;;  %v1451_v31 = vadd.f32 %v3465_v33, %v1450_v62 }
 0x74b   :  { %v1461_v52 = vmul.f32 %v1451_v31, %v1451_v31  ;;  %v1484_v47 = vmul.f32 0.7978846, %v1478_v46 }
 0x74d   :  { %v1467_v58 = vmul.f32 %v1461_v52, %v1451_v31  ;;  %3606 = vtanh.f32 %v1484_v47 }
 0x74f   :  { %v1473_v55 = vmul.f32 0.044715, %v1467_v58 }
 0x751   :  { %v1479_v28 = vadd.f32 %v1473_v55, %v1451_v31 }
 0x753   :  { %v1485_v0 = vmul.f32 0.7978846, %v1479_v28  ;;  %v3607_v23 = vpop.eup %3606 }
 0x754   :  { %v1496_v14 = vadd.f32 1.0, %v3607_v23 }
 0x755   :  { %3608 = vtanh.f32 %v1485_v0 }
 0x756   :  { %v1502_v39 = vmul.f32 0.5, %v1496_v14 }
 0x758   :  { %v1508_v32 = vmul.f32 %v1502_v39, %v1449_v11 }
 0x759   :  { %v1453_v19 = vpop.f32.mrf.mxu1 }
 0x75a   :  { %v1454_v27 = vadd.f32 %v3465_v33, %v1453_v19 }
 0x75b   :  { %v3609_v50 = vpop.eup %3608 }
 0x75c   :  { %v1462_v2 = vmul.f32 %v1454_v27, %v1454_v27  ;;  %v1497_v41 = vadd.f32 1.0, %v3609_v50 }
 0x75e   :  { %v1468_v42 = vmul.f32 %v1462_v2, %v1454_v27  ;;  %v1503_v56 = vmul.f32 0.5, %v1497_v41 }
 0x760   :  { %v1474_v21 = vmul.f32 0.044715, %v1468_v42  ;;  %v1509_v22 = vmul.f32 %v1503_v56, %v1451_v31 }
 0x761   :  { %v1455_v61 = vpop.f32.mrf.mxu1 }
 0x762   :  { %v1480_v51 = vadd.f32 %v1474_v21, %v1454_v27  ;;  %v1456_v5 = vadd.f32 %v3465_v33, %v1455_v61  ;;  %v1513_v25 = vpack.c.bf16 %v1509_v22, %v1508_v32  ;;  %v3466_v33 = vld [vmem:[%s5425_s7 + $0x9] ss:$0 sm:$0xff] }
 0x764   :  { %v1463_v13 = vmul.f32 %v1456_v5, %v1456_v5  ;;  %v1486_v43 = vmul.f32 0.7978846, %v1480_v51  ;;  %1593 = vmatmul.bf16.gmra.mxu0 %v1513_v25 }
 0x766   :  { %v1469_v36 = vmul.f32 %v1463_v13, %v1456_v5  ;;  %3610 = vtanh.f32 %v1486_v43 }
 0x768   :  { %v1475_v15 = vmul.f32 0.044715, %v1469_v36 }
 0x76a   :  { %v1481_v44 = vadd.f32 %v1475_v15, %v1456_v5 }
 0x76c   :  { %v1487_v48 = vmul.f32 0.7978846, %v1481_v44  ;;  %v3611_v49 = vpop.eup %3610 }
 0x76d   :  { %v1498_v59 = vadd.f32 1.0, %v3611_v49 }
 0x76e   :  { %3612 = vtanh.f32 %v1487_v48 }
 0x76f   :  { %v1504_v3 = vmul.f32 0.5, %v1498_v59 }
 0x771   :  { %v1510_v57 = vmul.f32 %v1504_v3, %v1454_v27 }
 0x774   :  { %v3613_v1 = vpop.eup %3612 }
 0x775   :  { %v1499_v20 = vadd.f32 1.0, %v3613_v1 }
 0x777   :  { %v1505_v7 = vmul.f32 0.5, %v1499_v20 }
 0x779   :  { %v1511_v26 = vmul.f32 %v1505_v7, %v1456_v5 }
 0x77b   :  { %v1514_v6 = vpack.c.bf16 %v1511_v26, %v1510_v57  ;;  %v3436_v57 = vld [vmem:[%s5422_s4 + $0x48] sm:$0xff]  ;;  %v3438_v26 = vld [vmem:[%s5422_s4 + $0x58] sm:$0xff] }
 0x77c   :  { %1803 = vmatpush.bf16.msra.mxu2 %v3436_v57  ;;  %1845 = vmatpush.bf16.msra.mxu3 %v3438_v26 }
 0x77d   :  { %1598 = vmatmul.bf16.gmra.mxu0 %v1514_v6  ;;  %v3440_v6 = vld [vmem:[%s5422_s4 + $0x68] sm:$0xff] }
 0x77e   :  { %1887 = vmatpush.bf16.msra.mxu1 %v3440_v6 }
 0x791   :  { %v1589_v4 = vpop.f32.mrf.mxu0 }
 0x792   :  { %v1590_v9 = vadd.f32 %v3466_v33, %v1589_v4 }
 0x794   :  { %v4676_v10 = vadd.f32 %v1590_v9, %v4531_v60  ;;  %v3435_v9 = vld [vmem:[%s5422_s4 + $0x40] sm:$0xff] }
 0x795   :  { %1804 = vmatpush.bf16.msra.mxu2 %v3435_v9 }
 0x796   :  { %v1621_v37 = vsel %vm260_vm1, %v4676_v10, 0.0 }
 0x797   :  { %1622 = vadd.xlane.f32.xlu0 %v1621_v37  ;;  %v3437_v37 = vld [vmem:[%s5422_s4 + $0x50] sm:$0xff] }
 0x798   :  { %1846 = vmatpush.bf16.msra.mxu3 %v3437_v37 }
 0x799   :  { %v1591_v35 = vpop.f32.mrf.mxu0 }
 0x79a   :  { %v1592_v38 = vadd.f32 %v3466_v33, %v1591_v35  ;;  %v3439_v35 = vld [vmem:[%s5422_s4 + $0x60] sm:$0xff] }
 0x79b   :  { %1888 = vmatpush.bf16.msra.mxu1 %v3439_v35 }
 0x79c   :  { %v4681_v12 = vadd.f32 %v1592_v38, %v4536_v18 }
 0x79e   :  { %v1624_v11 = vsel %vm260_vm1, %v4681_v12, 0.0 }
 0x79f   :  { %1625 = vadd.xlane.f32.xlu1 %v1624_v11 }
 0x7e1   :  { %v1594_v40 = vpop.f32.mrf.mxu0 }
 0x7e2   :  { %v1595_v34 = vadd.f32 %v3466_v33, %v1594_v40 }
 0x7e4   :  { %v4686_v63 = vadd.f32 %v1595_v34, %v4541_v53 }
 0x7e6   :  { %v1627_v60 = vsel %vm260_vm1, %v4686_v63, 0.0 }
 0x7e7   :  { %1628 = vadd.xlane.f32.xlu2 %v1627_v60 }
 0x7e9   :  { %v1596_v62 = vpop.f32.mrf.mxu0 }
 0x7ea   :  { %v1597_v46 = vadd.f32 %v3466_v33, %v1596_v62 }
 0x7ec   :  { %v4691_v31 = vadd.f32 %v1597_v46, %v4546_v17 }
 0x7ee   :  { %v1630_v18 = vsel %vm260_vm1, %v4691_v31, 0.0 }
 0x7ef   :  { %1631 = vadd.xlane.f32.xlu0 %v1630_v18 }
 0x7fa   :  { %v1599_v52 = vpop.f32.mrf.mxu0 }
 0x7fb   :  { %v1600_v47 = vadd.f32 %v3466_v33, %v1599_v52 }
 0x7fd   :  { %v4696_v58 = vadd.f32 %v1600_v47, %v4551_v16 }
 0x7ff   :  { %v1633_v53 = vsel %vm260_vm1, %v4696_v58, 0.0 }
 0x800   :  { %1634 = vadd.xlane.f32.xlu1 %v1633_v53 }
 0x802   :  { %v1601_v55 = vpop.f32.mrf.mxu0 }
 0x803   :  { %v1602_v28 = vadd.f32 %v3466_v33, %v1601_v55 }
 0x805   :  { %v4701_v0 = vadd.f32 %v1602_v28, %v4556_v24 }
 0x807   :  { %v1636_v17 = vsel %vm260_vm1, %v4701_v0, 0.0 }
 0x808   :  { %1637 = vadd.xlane.f32.xlu2 %v1636_v17 }
 0x80a   :  { %v1623_v23 = vpop.xlane.xlu0 %1622 }
 0x80b   :  { %v1639_v19 = vmul.f32 %v1623_v23, %v3954_v8 }
 0x80d   :  { %v4707_v14 = vsub.f32 %v4676_v10, %v1639_v19  ;;  %v4770_v19 = vld [vmem:[%s5425_s7 + $0x10] ss:$0 sm:$0xff] }
 0x80f   :  { %v1651_v16 = vmul.f32 %v4707_v14, %v4707_v14 }
 0x811   :  { %v1657_v27 = vsel %vm260_vm1, %v1651_v16, 0.0 }
 0x812   :  { %v1626_v50 = vpop.xlane.xlu1 %1625  ;;  %1658 = vadd.xlane.f32.xlu0 %v1657_v27 }
 0x813   :  { %v1640_v24 = vmul.f32 %v1626_v50, %v3954_v8 }
 0x815   :  { %v4714_v2 = vsub.f32 %v4681_v12, %v1640_v24  ;;  %v4776_v24 = vld [vmem:[%s5425_s7 + $0x11] ss:$0 sm:$0xff] }
 0x817   :  { %v1652_v41 = vmul.f32 %v4714_v2, %v4714_v2 }
 0x819   :  { %v1660_v39 = vsel %vm260_vm1, %v1652_v41, 0.0 }
 0x81a   :  { %1661 = vadd.xlane.f32.xlu1 %v1660_v39 }
 0x85a   :  { %v1629_v42 = vpop.xlane.xlu2 %1628 }
 0x85b   :  { %v1641_v56 = vmul.f32 %v1629_v42, %v3954_v8 }
 0x85d   :  { %v4721_v21 = vsub.f32 %v4686_v63, %v1641_v56 }
 0x85f   :  { %v1653_v61 = vmul.f32 %v4721_v21, %v4721_v21 }
 0x861   :  { %v1663_v32 = vsel %vm260_vm1, %v1653_v61, 0.0 }
 0x862   :  { %v1632_v22 = vpop.xlane.xlu0 %1631  ;;  %1664 = vadd.xlane.f32.xlu2 %v1663_v32 }
 0x863   :  { %v1642_v51 = vmul.f32 %v1632_v22, %v3954_v8 }
 0x865   :  { %v4728_v5 = vsub.f32 %v4691_v31, %v1642_v51 }
 0x867   :  { %v1654_v25 = vmul.f32 %v4728_v5, %v4728_v5 }
 0x869   :  { %v1666_v13 = vsel %vm260_vm1, %v1654_v25, 0.0 }
 0x86a   :  { %1667 = vadd.xlane.f32.xlu0 %v1666_v13 }
 0x873   :  { %v1635_v43 = vpop.xlane.xlu1 %1634 }
 0x874   :  { %v1643_v36 = vmul.f32 %v1635_v43, %v3954_v8 }
 0x876   :  { %v4735_v15 = vsub.f32 %v4696_v58, %v1643_v36 }
 0x878   :  { %v1655_v44 = vmul.f32 %v4735_v15, %v4735_v15 }
 0x87a   :  { %v1669_v48 = vsel %vm260_vm1, %v1655_v44, 0.0 }
 0x87b   :  { %1670 = vadd.xlane.f32.xlu1 %v1669_v48  ;;  %v1638_v49 = vpop.xlane.xlu2 %1637 }
 0x87c   :  { %v1644_v59 = vmul.f32 %v1638_v49, %v3954_v8 }
 0x87e   :  { %v4742_v1 = vsub.f32 %v4701_v0, %v1644_v59 }
 0x880   :  { %v1656_v20 = vmul.f32 %v4742_v1, %v4742_v1 }
 0x882   :  { %v1672_v3 = vsel %vm260_vm1, %v1656_v20, 0.0 }
 0x883   :  { %1673 = vadd.xlane.f32.xlu2 %v1672_v3 }
 0x885   :  { %v1659_v7 = vpop.xlane.xlu0 %1658 }
 0x886   :  { %v1675_v33 = vmul.f32 %v1659_v7, %v3954_v8 }
 0x888   :  { %v1681_v4 = vadd.f32 1e-06, %v1675_v33 }
 0x88a   :  { %3614 = vrsqrt.f32 %v1681_v4  ;;  %vm1693_vm13 = vweird.f32 %v1681_v4 }
 0x88d   :  { %v1662_v38 = vpop.xlane.xlu1 %1661 }
 0x88e   :  { %v1676_v11 = vmul.f32 %v1662_v38, %v3954_v8 }
 0x890   :  { %v3615_v40 = vpop.eup %3614  ;;  %v1682_v34 = vadd.f32 1e-06, %v1676_v11 }
 0x891   :  { %v1688_v60 = vmul.f32 %v3615_v40, %v1681_v4  ;;  %vm1694_vm12 = vweird.f32 %v3615_v40 }
 0x892   :  { %3616 = vrsqrt.f32 %v1682_v34  ;;  %vm1695_vm2 = vmor %vm1693_vm13, %vm1694_vm12  ;;  %vm1703_vm4 = vweird.f32 %v1682_v34 }
 0x893   :  { %v1689_v62 = vmul.f32 %v3615_v40, %v1688_v60 }
 0x895   :  { %v1690_v46 = vmul.f32 0.5, %v1689_v62 }
 0x897   :  { %v1691_v18 = vsub.f32 1.5, %v1690_v46 }
 0x898   :  { %v3617_v52 = vpop.eup %3616 }
 0x899   :  { %v1692_v47 = vmul.f32 %v3615_v40, %v1691_v18  ;;  %v1698_v53 = vmul.f32 %v3617_v52, %v1682_v34  ;;  %vm1704_vm3 = vweird.f32 %v3617_v52 }
 0x89a   :  { %vm1705_vm5 = vmor %vm1703_vm4, %vm1704_vm3 }
 0x89b   :  { %v1699_v55 = vmul.f32 %v3617_v52, %v1698_v53  ;;  %v1696_v28 = vsel %vm1695_vm2, %v3615_v40, %v1692_v47 }
 0x89c   :  { %v1747_v16 = vmul.f32 %v1696_v28, %v4707_v14 }
 0x89d   :  { %v1700_v17 = vmul.f32 0.5, %v1699_v55 }
 0x89e   :  { %v1754_v41 = vmul.f32 %v4770_v19, %v1747_v16 }
 0x89f   :  { %v1701_v23 = vsub.f32 1.5, %v1700_v17 }
 0x8a0   :  { %v1761_v56 = vadd.f32 %v4776_v24, %v1754_v41 }
 0x8a1   :  { %v1702_v27 = vmul.f32 %v3617_v52, %v1701_v23 }
 0x8a3   :  { %v1706_v50 = vsel %vm1705_vm5, %v3617_v52, %v1702_v27 }
 0x8a4   :  { %v1748_v39 = vmul.f32 %v1706_v50, %v4714_v2 }
 0x8a6   :  { %v1755_v42 = vmul.f32 %v4770_v19, %v1748_v39 }
 0x8a8   :  { %v1762_v61 = vadd.f32 %v4776_v24, %v1755_v42 }
 0x8aa   :  { %v1767_v14 = vpack.c.bf16 %v1762_v61, %v1761_v56 }
 0x8ac   :  { %3255 = vmatmul.msk.bf16.vlgmr.msra.gmra.mxu2 %vm260_vm1, %v1767_v14  ;;  %3270 = vmatmul.msk.bf16.vlgmr.msra.gmra.mxu3 %vm260_vm1, %v1767_v14 }
 0x8ad   :  { %3285 = vmatmul.msk.bf16.vlgmr.msra.gmra.mxu1 %vm260_vm1, %v1767_v14 }
 0x8d5   :  { %v1665_v32 = vpop.xlane.xlu2 %1664 }
 0x8d6   :  { %v1677_v22 = vmul.f32 %v1665_v32, %v3954_v8 }
 0x8d8   :  { %v1683_v51 = vadd.f32 1e-06, %v1677_v22 }
 0x8da   :  { %3618 = vrsqrt.f32 %v1683_v51  ;;  %vm1713_vm7 = vweird.f32 %v1683_v51 }
 0x8dd   :  { %v1668_v25 = vpop.xlane.xlu0 %1667 }
 0x8de   :  { %v1678_v2 = vmul.f32 %v1668_v25, %v3954_v8 }
 0x8e0   :  { %v3619_v13 = vpop.eup %3618  ;;  %v1684_v43 = vadd.f32 1e-06, %v1678_v2 }
 0x8e1   :  { %v1708_v36 = vmul.f32 %v3619_v13, %v1683_v51  ;;  %vm1714_vm6 = vweird.f32 %v3619_v13 }
 0x8e2   :  { %3620 = vrsqrt.f32 %v1684_v43  ;;  %vm1715_vm10 = vmor %vm1713_vm7, %vm1714_vm6  ;;  %vm1723_vm12 = vweird.f32 %v1684_v43 }
 0x8e3   :  { %v1709_v44 = vmul.f32 %v3619_v13, %v1708_v36 }
 0x8e5   :  { %v1710_v48 = vmul.f32 0.5, %v1709_v44 }
 0x8e7   :  { %v1711_v49 = vsub.f32 1.5, %v1710_v48 }
 0x8e8   :  { %v3621_v59 = vpop.eup %3620 }
 0x8e9   :  { %v1712_v20 = vmul.f32 %v3619_v13, %v1711_v49  ;;  %v1718_v3 = vmul.f32 %v3621_v59, %v1684_v43  ;;  %vm1724_vm11 = vweird.f32 %v3621_v59 }
 0x8ea   :  { %vm1725_vm13 = vmor %vm1723_vm12, %vm1724_vm11 }
 0x8eb   :  { %v1719_v7 = vmul.f32 %v3621_v59, %v1718_v3  ;;  %v1716_v57 = vsel %vm1715_vm10, %v3619_v13, %v1712_v20 }
 0x8ec   :  { %v1749_v9 = vmul.f32 %v1716_v57, %v4721_v21 }
 0x8ed   :  { %v1720_v26 = vmul.f32 0.5, %v1719_v7 }
 0x8ee   :  { %v1671_v6 = vpop.xlane.xlu1 %1670  ;;  %v1756_v40 = vmul.f32 %v4770_v19, %v1749_v9 }
 0x8ef   :  { %v1679_v33 = vmul.f32 %v1671_v6, %v3954_v8  ;;  %v1721_v4 = vsub.f32 1.5, %v1720_v26  ;;  %v3471_v6 = vld [vmem:[%s5425_s7 + $0x13] ss:$0 sm:$0xff] }
 0x8f0   :  { %v1763_v52 = vadd.f32 %v4776_v24, %v1756_v40 }
 0x8f1   :  { %v1685_v37 = vadd.f32 1e-06, %v1679_v33  ;;  %v1722_v35 = vmul.f32 %v3621_v59, %v1721_v4 }
 0x8f3   :  { %3622 = vrsqrt.f32 %v1685_v37  ;;  %v1726_v38 = vsel %vm1725_vm13, %v3621_v59, %v1722_v35  ;;  %vm1733_vm3 = vweird.f32 %v1685_v37 }
 0x8f4   :  { %v1750_v11 = vmul.f32 %v1726_v38, %v4728_v5 }
 0x8f6   :  { %v1674_v34 = vpop.xlane.xlu2 %1673  ;;  %v1757_v62 = vmul.f32 %v4770_v19, %v1750_v11 }
 0x8f7   :  { %v1680_v60 = vmul.f32 %v1674_v34, %v3954_v8 }
 0x8f8   :  { %v1764_v21 = vadd.f32 %v4776_v24, %v1757_v62 }
 0x8f9   :  { %v3623_v46 = vpop.eup %3622  ;;  %v1686_v18 = vadd.f32 1e-06, %v1680_v60 }
 0x8fa   :  { %v1728_v47 = vmul.f32 %v3623_v46, %v1685_v37  ;;  %v1768_v53 = vpack.c.bf16 %v1764_v21, %v1763_v52  ;;  %vm1734_vm2 = vweird.f32 %v3623_v46 }
 0x8fb   :  { %3624 = vrsqrt.f32 %v1686_v18  ;;  %vm1735_vm4 = vmor %vm1733_vm3, %vm1734_vm2  ;;  %vm1743_vm6 = vweird.f32 %v1686_v18 }
 0x8fc   :  { %v1729_v55 = vmul.f32 %v3623_v46, %v1728_v47  ;;  %3256 = vmatmul.msk.bf16.gmra.mxu2 %vm260_vm1, %v1768_v53  ;;  %3271 = vmatmul.msk.bf16.gmra.mxu3 %vm260_vm1, %v1768_v53 }
 0x8fd   :  { %3286 = vmatmul.msk.bf16.gmra.mxu1 %vm260_vm1, %v1768_v53 }
 0x8fe   :  { %v1730_v5 = vmul.f32 0.5, %v1729_v55 }
 0x900   :  { %v1731_v28 = vsub.f32 1.5, %v1730_v5 }
 0x901   :  { %v3625_v17 = vpop.eup %3624 }
 0x902   :  { %v1732_v23 = vmul.f32 %v3623_v46, %v1731_v28  ;;  %v1738_v16 = vmul.f32 %v3625_v17, %v1686_v18  ;;  %vm1744_vm5 = vweird.f32 %v3625_v17  ;;  %v3470_v28 = vld [vmem:[%s5425_s7 + $0x12] ss:$0 sm:$0xff] }
 0x903   :  { %vm1745_vm7 = vmor %vm1743_vm6, %vm1744_vm5 }
 0x904   :  { %v1739_v27 = vmul.f32 %v3625_v17, %v1738_v16  ;;  %v1736_v50 = vsel %vm1735_vm4, %v3623_v46, %v1732_v23 }
 0x905   :  { %v1751_v42 = vmul.f32 %v1736_v50, %v4735_v15 }
 0x906   :  { %v1740_v41 = vmul.f32 0.5, %v1739_v27 }
 0x907   :  { %v1758_v32 = vmul.f32 %v4770_v19, %v1751_v42 }
 0x908   :  { %v1741_v39 = vsub.f32 1.5, %v1740_v41 }
 0x909   :  { %v1765_v51 = vadd.f32 %v4776_v24, %v1758_v32 }
 0x90a   :  { %v1742_v56 = vmul.f32 %v3625_v17, %v1741_v39 }
 0x90c   :  { %v1746_v61 = vsel %vm1745_vm7, %v3625_v17, %v1742_v56 }
 0x90d   :  { %v1752_v14 = vmul.f32 %v1746_v61, %v4742_v1 }
 0x90f   :  { %v1759_v22 = vmul.f32 %v4770_v19, %v1752_v14 }
 0x911   :  { %v1766_v25 = vadd.f32 %v4776_v24, %v1759_v22  ;;  %v3469_v24 = vld [vmem:[%s5425_s7 + $0x14] ss:$0 sm:$0xff] }
 0x913   :  { %v1769_v2 = vpack.c.bf16 %v1766_v25, %v1765_v51 }
 0x915   :  { %3257 = vmatmul.msk.bf16.gmra.mxu2 %vm260_vm1, %v1769_v2  ;;  %3272 = vmatmul.msk.bf16.gmra.mxu3 %vm260_vm1, %v1769_v2 }
 0x916   :  { %3287 = vmatmul.msk.bf16.gmra.mxu1 %vm260_vm1, %v1769_v2 }
 0x92a   :  { %v1890_v15 = vpop.f32.mrf.mxu1 }
 0x92b   :  { %v1891_v34 = vadd.f32 %v3469_v24, %v1890_v15 }
 0x92f   :  { %v1848_v13 = vpop.f32.mrf.mxu3  ;;  %v1806_v11 = vpop.f32.mrf.mxu2 }
 0x930   :  { %v1849_v55 = vadd.f32 %v3471_v6, %v1848_v13  ;;  %v1807_v27 = vadd.f32 %v3470_v28, %v1806_v11 }
 0x932   :  { %v1892_v43 = vpop.f32.mrf.mxu1  ;;  %v1911_v39 = vsel %vm40_vm8, %v1807_v27, 0.0  ;;  %v2076_v42 = vsel %vm4081_vm9, %v1807_v27, 0.0 }
 0x933   :  { %v1893_v35 = vadd.f32 %v3469_v24, %v1892_v43 }
 0x935   :  { %v1908_v46 = vpack.c.bf16 %v1893_v35, %v1891_v34 }
 0x937   :  { %v1850_v36 = vpop.f32.mrf.mxu3  ;;  %v1808_v21 = vpop.f32.mrf.mxu2 }
 0x938   :  { %v1851_v47 = vadd.f32 %v3471_v6, %v1850_v36  ;;  %v1809_v17 = vadd.f32 %v3470_v28, %v1808_v21 }
 0x93a   :  { %v1905_v5 = vpack.c.bf16 %v1851_v47, %v1849_v55  ;;  %v1912_v50 = vsel %vm40_vm8, %v1809_v17, 0.0  ;;  %v2077_v41 = vsel %vm4081_vm9, %v1809_v17, 0.0  ;;  %v3748_v47 = vld [vmem:[%s5421_s3] sm:$0xff] }
 0x93b   :  { %v1917_v56 = vpack.c.bf16 %v1912_v50, %v1911_v39  ;;  %v2082_v61 = vpack.c.bf16 %v2077_v41, %v2076_v42 }
 0x93c   :  { %v1930_v16 = vsel %vm260_vm1, %v1905_v5, 0 }
 0x97a   :  { %v1895_v1 = vpop.f32.mrf.mxu1 }
 0x97b   :  { %v1896_v33 = vadd.f32 %v3469_v24, %v1895_v1 }
 0x97f   :  { %v1853_v44 = vpop.f32.mrf.mxu3  ;;  %v1811_v23 = vpop.f32.mrf.mxu2 }
 0x980   :  { %v1854_v18 = vadd.f32 %v3471_v6, %v1853_v44  ;;  %v1812_v22 = vadd.f32 %v3470_v28, %v1811_v23  ;;  %v3749_v23 = vld [vmem:[%s5421_s3 + $0x8] sm:$0xff] }
 0x982   :  { %v1897_v48 = vpop.f32.mrf.mxu1  ;;  %v1913_v15 = vsel %vm40_vm8, %v1812_v22, 0.0  ;;  %v2078_v13 = vsel %vm4081_vm9, %v1812_v22, 0.0  ;;  %v2234_v35 = vsel %vm4136_vm14, %v1812_v22, 0.0 }
 0x983   :  { %v1898_v57 = vadd.f32 %v3469_v24, %v1897_v48 }
 0x985   :  { %v1909_v38 = vpack.c.bf16 %v1898_v57, %v1896_v33  ;;  %v2389_v57 = vsel %vm4140_vm15, %v1809_v17, 0.0 }
 0x987   :  { %v1855_v49 = vpop.f32.mrf.mxu3  ;;  %v1813_v14 = vpop.f32.mrf.mxu2 }
 0x988   :  { %v1856_v60 = vadd.f32 %v3471_v6, %v1855_v49  ;;  %v1814_v32 = vadd.f32 %v3470_v28, %v1813_v14 }
 0x98a   :  { %v1906_v52 = vpack.c.bf16 %v1856_v60, %v1854_v18  ;;  %v1914_v25 = vsel %vm40_vm8, %v1814_v32, 0.0  ;;  %v2079_v2 = vsel %vm4081_vm9, %v1814_v32, 0.0 }
 0x98b   :  { %v1918_v43 = vpack.c.bf16 %v1914_v25, %v1913_v15  ;;  %v2083_v36 = vpack.c.bf16 %v2079_v2, %v2078_v13  ;;  %v4918_v2 = vld [vmem:[%s5421_s3 + $0x18] sm:$0xff] }
 0x98c   :  { %v1933_v53 = vsel %vm260_vm1, %v1906_v52, 0 }
 0x993   :  { %v1900_v19 = vpop.f32.mrf.mxu1 }
 0x994   :  { %v1901_v3 = vadd.f32 %v3469_v24, %v1900_v19 }
 0x998   :  { %v1858_v59 = vpop.f32.mrf.mxu3  ;;  %v1816_v51 = vpop.f32.mrf.mxu2 }
 0x999   :  { %v1859_v9 = vadd.f32 %v3471_v6, %v1858_v59  ;;  %v1817_v48 = vadd.f32 %v3470_v28, %v1816_v51 }
 0x99b   :  { %v1902_v20 = vpop.f32.mrf.mxu1  ;;  %v1915_v59 = vsel %vm40_vm8, %v1817_v48, 0.0 }
 0x99c   :  { %v1903_v7 = vadd.f32 %v3469_v24, %v1902_v20  ;;  %v2080_v24 = vsel %vm4081_vm9, %v1817_v48, 0.0 }
 0x99e   :  { %v1910_v26 = vpack.c.bf16 %v1903_v7, %v1901_v3  ;;  %v2233_v7 = vsel %vm4136_vm14, %v1809_v17, 0.0 }
 0x9a0   :  { %2045 = vmatpush.bf16.msrb.mxu2 %v1910_v26  ;;  %2201 = vmatpush.bf16.msrb.mxu1 %v1910_v26  ;;  %v1860_v4 = vpop.f32.mrf.mxu3  ;;  %v1818_v1 = vpop.f32.mrf.mxu2 }
 0x9a1   :  { %v1861_v37 = vadd.f32 %v3471_v6, %v1860_v4  ;;  %v1819_v44 = vadd.f32 %v3470_v28, %v1818_v1  ;;  %v2388_v6 = vsel %vm4140_vm15, %v1807_v27, 0.0 }
 0x9a2   :  { %v2394_v4 = vpack.c.bf16 %v2389_v57, %v2388_v6 }
 0x9a3   :  { %v1907_v40 = vpack.c.bf16 %v1861_v37, %v1859_v9  ;;  %v1916_v49 = vsel %vm40_vm8, %v1819_v44, 0.0  ;;  %v2081_v19 = vsel %vm4081_vm9, %v1819_v44, 0.0  ;;  %v2235_v9 = vsel %vm4136_vm14, %v1814_v32, 0.0 }
 0x9a4   :  { %2046 = vmatpush.bf16.msrb.mxu2 %v1909_v38  ;;  %2202 = vmatpush.bf16.msrb.mxu1 %v1909_v38  ;;  %v1919_v20 = vpack.c.bf16 %v1916_v49, %v1915_v59  ;;  %v2084_v3 = vpack.c.bf16 %v2081_v19, %v2080_v24  ;;  %v2391_v37 = vsel %vm4140_vm15, %v1814_v32, 0.0  ;;  %v2239_v11 = vpack.c.bf16 %v2235_v9, %v2234_v35 }
 0x9a5   :  { %v1936_v62 = vsel %vm260_vm1, %v1907_v40, 0  ;;  %v2237_v34 = vsel %vm4136_vm14, %v1819_v44, 0.0  ;;  %v2393_v60 = vsel %vm4140_vm15, %v1819_v44, 0.0 }
 0x9a6   :  { %1943 = vmatpush.bf16.xpose.msra.mxu0 %v1936_v62  ;;  %2099 = vmatpush.bf16.xpose.msrb.mxu3 %v1936_v62 }
 0x9a8   :  { %2047 = vmatpush.bf16.msrb.mxu2 %v1908_v46  ;;  %2203 = vmatpush.bf16.msrb.mxu1 %v1908_v46 }
 0x9ac   :  { %2357 = vmatpush.bf16.msra.mxu2 %v1910_v26  ;;  %2513 = vmatpush.bf16.msra.mxu1 %v1910_v26  ;;  %v2232_v26 = vsel %vm4136_vm14, %v1807_v27, 0.0 }
 0x9ad   :  { %v2238_v33 = vpack.c.bf16 %v2233_v7, %v2232_v26  ;;  %v4948_v7 = vld [vmem:[%s5421_s3 + $0x28] sm:$0xff] }
 0x9ae   :  { %1944 = vmatpush.bf16.xpose.msra.mxu0 %v1933_v53  ;;  %2100 = vmatpush.bf16.xpose.msrb.mxu3 %v1933_v53 }
 0x9b0   :  { %2358 = vmatpush.bf16.msra.mxu2 %v1909_v38  ;;  %2514 = vmatpush.bf16.msra.mxu1 %v1909_v38  ;;  %v2390_v38 = vsel %vm4140_vm15, %v1812_v22, 0.0 }
 0x9b1   :  { %v2395_v40 = vpack.c.bf16 %v2391_v37, %v2390_v38 }
 0x9b4   :  { %2359 = vmatpush.bf16.msra.mxu2 %v1908_v46  ;;  %2515 = vmatpush.bf16.msra.mxu1 %v1908_v46  ;;  %v2392_v46 = vsel %vm4140_vm15, %v1817_v48, 0.0 }
 0x9b5   :  { %v2396_v52 = vpack.c.bf16 %v2393_v60, %v2392_v46 }
 0x9b6   :  { %1945 = vmatpush.bf16.xpose.msra.mxu0 %v1930_v16  ;;  %2101 = vmatpush.bf16.xpose.msrb.mxu3 %v1930_v16 }
 0x9bd   :  { %3288 = vmatmul.msk.bf16.vlgmr.msra.gmra.mxu0 %vm260_vm1, %v1917_v56  ;;  %3294 = vmatmul.msk.bf16.vlgmr.msrb.gmra.mxu3 %vm260_vm1, %v2082_v61  ;;  %v4903_v56 = vld [vmem:[%s5421_s3 + $0x10] sm:$0xff] }
 0x9be   :  { %2255 = vmatpush.bf16.xpose.msrb.mxu0 %v1936_v62  ;;  %2411 = vmatpush.bf16.xpose.msra.mxu3 %v1936_v62  ;;  %v2236_v62 = vsel %vm4136_vm14, %v1817_v48, 0.0  ;;  %v4933_v48 = vld [vmem:[%s5421_s3 + $0x20] sm:$0xff] }
 0x9bf   :  { %v2240_v18 = vpack.c.bf16 %v2237_v34, %v2236_v62 }
 0x9c6   :  { %2256 = vmatpush.bf16.xpose.msrb.mxu0 %v1933_v53  ;;  %2412 = vmatpush.bf16.xpose.msra.mxu3 %v1933_v53 }
 0x9cd   :  { %3289 = vmatmul.msk.bf16.gmra.mxu0 %vm260_vm1, %v1918_v43  ;;  %3295 = vmatmul.msk.bf16.gmra.mxu3 %vm260_vm1, %v2083_v36 }
 0x9ce   :  { %2257 = vmatpush.bf16.xpose.msrb.mxu0 %v1930_v16  ;;  %2413 = vmatpush.bf16.xpose.msra.mxu3 %v1930_v16 }
 0x9dd   :  { %3290 = vmatmul.msk.bf16.gmra.mxu0 %vm260_vm1, %v1919_v20  ;;  %3296 = vmatmul.msk.bf16.gmra.mxu3 %vm260_vm1, %v2084_v3 }
 0x9ed   :  { %3300 = vmatmul.msk.bf16.vlgmr.msrb.gmra.mxu0 %vm260_vm1, %v2238_v33  ;;  %3306 = vmatmul.msk.bf16.vlgmr.msra.gmra.mxu3 %vm260_vm1, %v2394_v4 }
 0x9fd   :  { %3301 = vmatmul.msk.bf16.gmra.mxu0 %vm260_vm1, %v2239_v11  ;;  %3307 = vmatmul.msk.bf16.gmra.mxu3 %vm260_vm1, %v2395_v40 }
 0xa0d   :  { %3302 = vmatmul.msk.bf16.gmra.mxu0 %vm260_vm1, %v2240_v18  ;;  %3308 = vmatmul.msk.bf16.gmra.mxu3 %vm260_vm1, %v2396_v52 }
 0xa3a   :  { %v1947_v21 = vpop.f32.mrf.mxu0 }
 0xa3b   :  { %v4883_v53 = vadd.f32 %v3748_v47, %v1947_v21 }
 0xa3d   :  { %v1962_v55 = vsel %vm610_vm0, %v4883_v53, -inf }
 0xa3e   :  { %1963 = vmax.xlane.f32.xlu0 %v1962_v55 }
 0xa40   :  { %v2103_v5 = vpop.f32.mrf.mxu3 }
 0xa41   :  { %v4887_v28 = vadd.f32 %v3748_v47, %v2103_v5 }
 0xa42   :  { %v1949_v17 = vpop.f32.mrf.mxu0 }
 0xa43   :  { %v4892_v16 = vadd.f32 %v3749_v23, %v1949_v17  ;;  %v2118_v27 = vsel %vm610_vm0, %v4887_v28, -inf }
 0xa44   :  { %2119 = vmax.xlane.f32.xlu2 %v2118_v27 }
 0xa45   :  { %v1965_v50 = vsel %vm610_vm0, %v4892_v16, -inf }
 0xa46   :  { %1966 = vmax.xlane.f32.xlu1 %v1965_v50 }
 0xa48   :  { %v2105_v41 = vpop.f32.mrf.mxu3 }
 0xa49   :  { %v4898_v39 = vadd.f32 %v3749_v23, %v2105_v41 }
 0xa4a   :  { %v1952_v42 = vpop.f32.mrf.mxu0 }
 0xa4b   :  { %v4906_v61 = vadd.f32 %v4903_v56, %v1952_v42  ;;  %v2121_v14 = vsel %vm610_vm0, %v4898_v39, -inf }
 0xa4c   :  { %2122 = vmax.xlane.f32.xlu0 %v2121_v14 }
 0xa4d   :  { %v1968_v32 = vsel %vm610_vm0, %v4906_v61, -inf }
 0xa4e   :  { %1969 = vmax.xlane.f32.xlu1 %v1968_v32 }
 0xa50   :  { %v2108_v22 = vpop.f32.mrf.mxu3 }
 0xa51   :  { %v4913_v51 = vadd.f32 %v4903_v56, %v2108_v22 }
 0xa52   :  { %v1954_v25 = vpop.f32.mrf.mxu0 }
 0xa53   :  { %v4921_v15 = vadd.f32 %v4918_v2, %v1954_v25  ;;  %v2124_v13 = vsel %vm610_vm0, %v4913_v51, -inf }
 0xa54   :  { %2125 = vmax.xlane.f32.xlu0 %v2124_v13 }
 0xa55   :  { %v1971_v43 = vsel %vm610_vm0, %v4921_v15, -inf }
 0xa56   :  { %1972 = vmax.xlane.f32.xlu2 %v1971_v43 }
 0xa58   :  { %v2110_v36 = vpop.f32.mrf.mxu3 }
 0xa59   :  { %v4928_v1 = vadd.f32 %v4918_v2, %v2110_v36 }
 0xa5a   :  { %v1957_v44 = vpop.f32.mrf.mxu0 }
 0xa5b   :  { %v4936_v49 = vadd.f32 %v4933_v48, %v1957_v44  ;;  %v2127_v19 = vsel %vm610_vm0, %v4928_v1, -inf }
 0xa5c   :  { %2128 = vmax.xlane.f32.xlu1 %v2127_v19 }
 0xa5d   :  { %v1974_v59 = vsel %vm610_vm0, %v4936_v49, -inf }
 0xa5e   :  { %1975 = vmax.xlane.f32.xlu2 %v1974_v59 }
 0xa60   :  { %v2113_v24 = vpop.f32.mrf.mxu3 }
 0xa61   :  { %v4943_v20 = vadd.f32 %v4933_v48, %v2113_v24 }
 0xa62   :  { %v1959_v3 = vpop.f32.mrf.mxu0 }
 0xa63   :  { %v4951_v57 = vadd.f32 %v4948_v7, %v1959_v3  ;;  %v2130_v26 = vsel %vm610_vm0, %v4943_v20, -inf }
 0xa64   :  { %2131 = vmax.xlane.f32.xlu1 %v2130_v26 }
 0xa65   :  { %v1977_v6 = vsel %vm610_vm0, %v4951_v57, -inf }
 0xa66   :  { %1978 = vmax.xlane.f32.xlu0 %v1977_v6 }
 0xa68   :  { %v2115_v33 = vpop.f32.mrf.mxu3 }
 0xa69   :  { %v4958_v4 = vadd.f32 %v4948_v7, %v2115_v33 }
 0xa6a   :  { %v2259_v9 = vpop.f32.mrf.mxu0 }
 0xa6b   :  { %v4960_v37 = vadd.f32 %v3748_v47, %v2259_v9  ;;  %v2133_v35 = vsel %vm610_vm0, %v4958_v4, -inf }
 0xa6c   :  { %2134 = vmax.xlane.f32.xlu2 %v2133_v35 }
 0xa6d   :  { %v2274_v38 = vsel %vm610_vm0, %v4960_v37, -inf }
 0xa6e   :  { %2275 = vmax.xlane.f32.xlu0 %v2274_v38 }
 0xa70   :  { %v2415_v11 = vpop.f32.mrf.mxu3 }
 0xa71   :  { %v4966_v40 = vadd.f32 %v3748_v47, %v2415_v11 }
 0xa72   :  { %v2261_v60 = vpop.f32.mrf.mxu0 }
 0xa73   :  { %v2430_v34 = vsel %vm610_vm0, %v4966_v40, -inf  ;;  %v4970_v62 = vadd.f32 %v3749_v23, %v2261_v60 }
 0xa74   :  { %2431 = vmax.xlane.f32.xlu1 %v2430_v34 }
 0xa75   :  { %v2277_v52 = vsel %vm610_vm0, %v4970_v62, -inf }
 0xa78   :  { %v2417_v46 = vpop.f32.mrf.mxu3 }
 0xa79   :  { %v4972_v18 = vadd.f32 %v3749_v23, %v2417_v46 }
 0xa7a   :  { %v2264_v32 = vpop.f32.mrf.mxu0 }
 0xa7b   :  { %v2433_v21 = vsel %vm610_vm0, %v4972_v18, -inf  ;;  %v4987_v13 = vadd.f32 %v4903_v56, %v2264_v32 }
 0xa7c   :  { %2278 = vmax.xlane.f32.xlu1 %v2277_v52  ;;  %2434 = vmax.xlane.f32.xlu2 %v2433_v21 }
 0xa7d   :  { %v2280_v19 = vsel %vm610_vm0, %v4987_v13, -inf }
 0xa80   :  { %v2420_v6 = vpop.f32.mrf.mxu3 }
 0xa82   :  { %v2266_v35 = vpop.f32.mrf.mxu0 }
 0xa83   :  { %v5007_v34 = vadd.f32 %v4918_v2, %v2266_v35 }
 0xab1   :  { %v1964_v47 = vpop.xlane.xlu0 %1963 }
 0xab2   :  { %v1980_v55 = vsub.f32 %v4883_v53, %v1964_v47 }
 0xab4   :  { %v1986_v5 = vmul.f32 1.442695, %v1980_v55 }
 0xab6   :  { %3626 = vpow2.f32 %v1986_v5 }
 0xab7   :  { %v2120_v17 = vpop.xlane.xlu2 %2119 }
 0xab8   :  { %v2136_v27 = vsub.f32 %v4887_v28, %v2120_v17  ;;  %v2422_v17 = vpop.f32.mrf.mxu3 }
 0xab9   :  { %v1967_v50 = vpop.xlane.xlu1 %1966 }
 0xaba   :  { %v2142_v41 = vmul.f32 1.442695, %v2136_v27  ;;  %v1981_v23 = vsub.f32 %v4892_v16, %v1967_v50 }
 0xabc   :  { %v4981_v42 = vpop.eup %3626  ;;  %3628 = vpow2.f32 %v2142_v41  ;;  %v1988_v22 = vmul.f32 1.442695, %v1981_v23  ;;  %v5025_v41 = vadd.f32 %v4918_v2, %v2422_v17 }
 0xabd   :  { %v1998_v14 = vsel %vm610_vm0, %v4981_v42, 0.0 }
 0xabe   :  { %1999 = vadd.xlane.f32.xlu2 %v1998_v14  ;;  %3630 = vpow2.f32 %v1988_v22 }
 0xabf   :  { %v2123_v25 = vpop.xlane.xlu0 %2122 }
 0xac0   :  { %v2137_v53 = vsub.f32 %v4898_v39, %v2123_v25 }
 0xac1   :  { %v1970_v28 = vpop.xlane.xlu1 %1969 }
 0xac2   :  { %v4989_v43 = vpop.eup %3628  ;;  %v2144_v16 = vmul.f32 1.442695, %v2137_v53  ;;  %v1982_v36 = vsub.f32 %v4906_v61, %v1970_v28  ;;  %v2439_v53 = vsel %vm610_vm0, %v5025_v41, -inf }
 0xac3   :  { %v2154_v44 = vsel %vm610_vm0, %v4989_v43, 0.0 }
 0xac4   :  { %3632 = vpow2.f32 %v2144_v16  ;;  %2155 = vadd.xlane.f32.xlu0 %v2154_v44  ;;  %v1990_v59 = vmul.f32 1.442695, %v1982_v36  ;;  %v4996_v39 = vpop.eup %3630 }
 0xac5   :  { %v2001_v9 = vsel %vm610_vm0, %v4996_v39, 0.0 }
 0xac6   :  { %2281 = vmax.xlane.f32.xlu2 %v2280_v19  ;;  %3634 = vpow2.f32 %v1990_v59 }
 0xac7   :  { %v2126_v24 = vpop.xlane.xlu0 %2125 }
 0xac8   :  { %v2138_v38 = vsub.f32 %v4913_v51, %v2126_v24  ;;  %v2283_v51 = vsel %vm610_vm0, %v5007_v34, -inf }
 0xac9   :  { %v1973_v3 = vpop.xlane.xlu2 %1972 }
 0xaca   :  { %v4998_v26 = vpop.eup %3632  ;;  %v1983_v61 = vsub.f32 %v4921_v15, %v1973_v3  ;;  %v2146_v15 = vmul.f32 1.442695, %v2138_v38 }
 0xacb   :  { %v2157_v33 = vsel %vm610_vm0, %v4998_v26, 0.0 }
 0xacc   :  { %v1992_v11 = vmul.f32 1.442695, %v1983_v61  ;;  %2158 = vadd.xlane.f32.xlu1 %v2157_v33  ;;  %2002 = vadd.xlane.f32.xlu0 %v2001_v9  ;;  %v5009_v46 = vpop.eup %3634 }
 0xacd   :  { %v2004_v55 = vsel %vm610_vm0, %v5009_v46, 0.0 }
 0xace   :  { %3636 = vpow2.f32 %v1992_v11 }
 0xacf   :  { %v2129_v60 = vpop.xlane.xlu1 %2128  ;;  %3638 = vpow2.f32 %v2146_v15 }
 0xad0   :  { %v2139_v52 = vsub.f32 %v4928_v1, %v2129_v60 }
 0xad1   :  { %v1976_v21 = vpop.xlane.xlu2 %1975 }
 0xad2   :  { %v1984_v47 = vsub.f32 %v4936_v49, %v1976_v21  ;;  %v2148_v27 = vmul.f32 1.442695, %v2139_v52  ;;  %v5022_v49 = vadd.f32 %v4903_v56, %v2420_v6 }
 0xad4   :  { %v5017_v5 = vpop.eup %3636  ;;  %2005 = vadd.xlane.f32.xlu1 %v2004_v55  ;;  %2284 = vmax.xlane.f32.xlu0 %v2283_v51  ;;  %v1994_v1 = vmul.f32 1.442695, %v1984_v47  ;;  %3640 = vpow2.f32 %v2148_v27  ;;  %v2436_v56 = vsel %vm610_vm0, %v5022_v49, -inf }
 0xad5   :  { %v2007_v50 = vsel %vm610_vm0, %v5017_v5, 0.0  ;;  %v5027_v32 = vpop.eup %3638 }
 0xad6   :  { %2008 = vadd.xlane.f32.xlu2 %v2007_v50  ;;  %3642 = vpow2.f32 %v1994_v1  ;;  %v2160_v2 = vsel %vm610_vm0, %v5027_v32, 0.0 }
 0xad7   :  { %v2132_v23 = vpop.xlane.xlu1 %2131 }
 0xad8   :  { %v2140_v22 = vsub.f32 %v4943_v20, %v2132_v23 }
 0xad9   :  { %v1979_v14 = vpop.xlane.xlu0 %1978 }
 0xada   :  { %v1985_v25 = vsub.f32 %v4951_v57, %v1979_v14  ;;  %v2150_v16 = vmul.f32 1.442695, %v2140_v22  ;;  %v5037_v36 = vpop.eup %3640 }
 0xadb   :  { %v2163_v3 = vsel %vm610_vm0, %v5037_v36, 0.0 }
 0xadc   :  { %v1996_v28 = vmul.f32 1.442695, %v1985_v25  ;;  %2440 = vmax.xlane.f32.xlu1 %v2439_v53  ;;  %2437 = vmax.xlane.f32.xlu0 %v2436_v56  ;;  %v5039_v44 = vpop.eup %3642 }
 0xadd   :  { %v2010_v6 = vsel %vm610_vm0, %v5039_v44, 0.0 }
 0xade   :  { %3644 = vpow2.f32 %v1996_v28  ;;  %2161 = vadd.xlane.f32.xlu2 %v2160_v2 }
 0xadf   :  { %v2135_v20 = vpop.xlane.xlu2 %2134  ;;  %3646 = vpow2.f32 %v2150_v16 }
 0xae0   :  { %v2141_v57 = vsub.f32 %v4958_v4, %v2135_v20 }
 0xae1   :  { %v2276_v19 = vpop.xlane.xlu0 %2275 }
 0xae2   :  { %v2152_v59 = vmul.f32 1.442695, %v2141_v57  ;;  %v2292_v24 = vsub.f32 %v4960_v37, %v2276_v19 }
 0xae4   :  { %v5047_v61 = vpop.eup %3644  ;;  %3648 = vpow2.f32 %v2152_v59  ;;  %v2298_v33 = vmul.f32 1.442695, %v2292_v24  ;;  %2164 = vadd.xlane.f32.xlu0 %v2163_v3  ;;  %2011 = vadd.xlane.f32.xlu1 %v2010_v6 }
 0xae5   :  { %v2013_v4 = vsel %vm610_vm0, %v5047_v61, 0.0  ;;  %v5051_v35 = vpop.eup %3646 }
 0xae6   :  { %3650 = vpow2.f32 %v2298_v33  ;;  %2014 = vadd.xlane.f32.xlu2 %v2013_v4  ;;  %v2166_v60 = vsel %vm610_vm0, %v5051_v35, 0.0 }
 0xae7   :  { %v2432_v9 = vpop.xlane.xlu1 %2431 }
 0xae8   :  { %v2448_v37 = vsub.f32 %v4966_v40, %v2432_v9 }
 0xaea   :  { %v5054_v38 = vpop.eup %3648  ;;  %v2454_v11 = vmul.f32 1.442695, %v2448_v37 }
 0xaeb   :  { %v2169_v15 = vsel %vm610_vm0, %v5054_v38, 0.0 }
 0xaec   :  { %v5060_v52 = vpop.eup %3650  ;;  %3652 = vpow2.f32 %v2454_v11  ;;  %2167 = vadd.xlane.f32.xlu0 %v2166_v60  ;;  %2170 = vadd.xlane.f32.xlu1 %v2169_v15 }
 0xaed   :  { %v2310_v21 = vsel %vm610_vm0, %v5060_v52, 0.0 }
 0xaee   :  { %2311 = vadd.xlane.f32.xlu2 %v2310_v21 }
 0xaef   :  { %v2279_v47 = vpop.xlane.xlu1 %2278  ;;  %v2435_v40 = vpop.xlane.xlu2 %2434 }
 0xaf0   :  { %v2293_v55 = vsub.f32 %v4970_v62, %v2279_v47  ;;  %v2449_v51 = vsub.f32 %v4972_v18, %v2435_v40 }
 0xaf2   :  { %v5066_v17 = vpop.eup %3652  ;;  %v2300_v27 = vmul.f32 1.442695, %v2293_v55  ;;  %v2456_v50 = vmul.f32 1.442695, %v2449_v51 }
 0xaf3   :  { %v2466_v1 = vsel %vm610_vm0, %v5066_v17, 0.0 }
 0xaf4   :  { %3654 = vpow2.f32 %v2300_v27  ;;  %2467 = vadd.xlane.f32.xlu1 %v2466_v1  ;;  %v2269_v1 = vpop.f32.mrf.mxu0 }
 0xaf5   :  { %3656 = vpow2.f32 %v2456_v50 }
 0xafa   :  { %v5070_v23 = vpop.eup %3654 }
 0xafb   :  { %v5072_v14 = vpop.eup %3656  ;;  %v2313_v22 = vsel %vm610_vm0, %v5070_v23, 0.0 }
 0xafc   :  { %2314 = vadd.xlane.f32.xlu0 %v2313_v22  ;;  %v2469_v62 = vsel %vm610_vm0, %v5072_v14, 0.0 }
 0xafd   :  { %2470 = vadd.xlane.f32.xlu2 %v2469_v62 }
 0xb31   :  { %v2000_v18 = vpop.xlane.xlu2 %1999 }
 0xb37   :  { %v2156_v25 = vpop.xlane.xlu0 %2155 }
 0xb38   :  { %3658 = vrcp.f32 %v2156_v25 }
 0xb39   :  { %v2282_v53 = vpop.xlane.xlu2 %2281 }
 0xb3a   :  { %v2294_v56 = vsub.f32 %v4987_v13, %v2282_v53 }
 0xb3c   :  { %v2302_v28 = vmul.f32 1.442695, %v2294_v56 }
 0xb3e   :  { %3660 = vpow2.f32 %v2302_v28  ;;  %v3659_v20 = vpop.eup %3658 }
 0xb3f   :  { %3662 = vrcp.f32 %v2000_v18  ;;  %v2159_v2 = vpop.xlane.xlu1 %2158  ;;  %v2003_v16 = vpop.xlane.xlu0 %2002  ;;  %v2178_v13 = vmul.f32 %v3659_v20, %v4989_v43 }
 0xb40   :  { %3664 = vrcp.f32 %v2159_v2 }
 0xb41   :  { %3666 = vrcp.f32 %v2003_v16 }
 0xb44   :  { %v5079_v57 = vpop.eup %3660 }
 0xb45   :  { %v3663_v19 = vpop.eup %3662  ;;  %v2316_v59 = vsel %vm610_vm0, %v5079_v57, 0.0 }
 0xb46   :  { %v3665_v24 = vpop.eup %3664  ;;  %2317 = vadd.xlane.f32.xlu0 %v2316_v59  ;;  %v2022_v9 = vmul.f32 %v3663_v19, %v4981_v42 }
 0xb47   :  { %v3667_v3 = vpop.eup %3666  ;;  %v2179_v6 = vmul.f32 %v3665_v24, %v4998_v26  ;;  %v2006_v33 = vpop.xlane.xlu1 %2005 }
 0xb48   :  { %v2285_v4 = vpop.xlane.xlu0 %2284  ;;  %v2023_v37 = vmul.f32 %v3667_v3, %v4996_v39  ;;  %v2271_v24 = vpop.f32.mrf.mxu0 }
 0xb49   :  { %v2295_v11 = vsub.f32 %v5007_v34, %v2285_v4  ;;  %v2184_v60 = vpack.c.bf16 %v2179_v6, %v2178_v13  ;;  %v2009_v15 = vpop.xlane.xlu2 %2008  ;;  %v2425_v34 = vpop.f32.mrf.mxu3 }
 0xb4a   :  { %v2028_v21 = vpack.c.bf16 %v2023_v37, %v2022_v9  ;;  %v5118_v4 = vadd.f32 %v4933_v48, %v2425_v34  ;;  %v5121_v9 = vadd.f32 %v4948_v7, %v2271_v24 }
 0xb4b   :  { %v2304_v47 = vmul.f32 1.442695, %v2295_v11  ;;  %3297 = vmatmul.msk.bf16.vlgmr.msrb.gmra.mxu1 %vm610_vm0, %v2184_v60 }
 0xb4c   :  { %3291 = vmatmul.msk.bf16.vlgmr.msrb.gmra.mxu2 %vm610_vm0, %v2028_v21 }
 0xb4d   :  { %3668 = vpow2.f32 %v2304_v47 }
 0xb4e   :  { %3670 = vrcp.f32 %v2009_v15 }
 0xb4f   :  { %3672 = vrcp.f32 %v2006_v33  ;;  %v2441_v43 = vpop.xlane.xlu1 %2440 }
 0xb50   :  { %v2438_v26 = vpop.xlane.xlu0 %2437  ;;  %v2451_v40 = vsub.f32 %v5025_v41, %v2441_v43 }
 0xb51   :  { %v2450_v42 = vsub.f32 %v5022_v49, %v2438_v26  ;;  %v2162_v39 = vpop.xlane.xlu2 %2161  ;;  %v5098_v49 = vadd.f32 %v4933_v48, %v2269_v1  ;;  %v2427_v59 = vpop.f32.mrf.mxu3  ;;  %v2442_v48 = vsel %vm610_vm0, %v5118_v4, -inf }
 0xb52   :  { %v2460_v51 = vmul.f32 1.442695, %v2451_v40  ;;  %v5113_v13 = vadd.f32 %v4948_v7, %v2427_v59 }
 0xb53   :  { %v5092_v55 = vpop.eup %3668  ;;  %v2458_v27 = vmul.f32 1.442695, %v2450_v42  ;;  %v2286_v20 = vsel %vm610_vm0, %v5098_v49, -inf }
 0xb54   :  { %v3671_v50 = vpop.eup %3670  ;;  %v2319_v22 = vsel %vm610_vm0, %v5092_v55, 0.0  ;;  %3674 = vpow2.f32 %v2460_v51  ;;  %v2445_v21 = vsel %vm610_vm0, %v5113_v13, -inf }
 0xb55   :  { %2320 = vadd.xlane.f32.xlu1 %v2319_v22  ;;  %v3673_v62 = vpop.eup %3672  ;;  %3676 = vpow2.f32 %v2458_v27  ;;  %v2025_v18 = vmul.f32 %v3671_v50, %v5017_v5 }
 0xb56   :  { %3678 = vrcp.f32 %v2162_v39  ;;  %v2024_v53 = vmul.f32 %v3673_v62, %v5009_v46 }
 0xb57   :  { %v2012_v25 = vpop.xlane.xlu1 %2011 }
 0xb58   :  { %v2165_v41 = vpop.xlane.xlu0 %2164  ;;  %v2029_v2 = vpack.c.bf16 %v2025_v18, %v2024_v53 }
 0xb59   :  { %3680 = vrcp.f32 %v2165_v41  ;;  %v2015_v28 = vpop.xlane.xlu2 %2014 }
 0xb5a   :  { %v5101_v56 = vpop.eup %3674  ;;  %3682 = vrcp.f32 %v2015_v28 }
 0xb5b   :  { %v5103_v16 = vpop.eup %3676  ;;  %v2475_v5 = vsel %vm610_vm0, %v5101_v56, 0.0  ;;  %3684 = vrcp.f32 %v2012_v25 }
 0xb5c   :  { %v3679_v19 = vpop.eup %3678  ;;  %3292 = vmatmul.msk.bf16.gmra.mxu2 %vm610_vm0, %v2029_v2  ;;  %v2472_v46 = vsel %vm610_vm0, %v5103_v16, 0.0  ;;  %2476 = vadd.xlane.f32.xlu0 %v2475_v5 }
 0xb5d   :  { %2287 = vmax.xlane.f32.xlu1 %v2286_v20  ;;  %2473 = vadd.xlane.f32.xlu2 %v2472_v46  ;;  %v2180_v6 = vmul.f32 %v3679_v19, %v5027_v32  ;;  %v2289_v32 = vsel %vm610_vm0, %v5121_v9, -inf }
 0xb5f   :  { %v3681_v3 = vpop.eup %3680  ;;  %v2171_v11 = vpop.xlane.xlu1 %2170 }
 0xb60   :  { %v2181_v33 = vmul.f32 %v3681_v3, %v5037_v36  ;;  %v2168_v37 = vpop.xlane.xlu0 %2167  ;;  %v3683_v15 = vpop.eup %3682 }
 0xb61   :  { %3686 = vrcp.f32 %v2168_v37  ;;  %v3685_v7 = vpop.eup %3684  ;;  %v2027_v36 = vmul.f32 %v3683_v15, %v5047_v61  ;;  %v2312_v26 = vpop.xlane.xlu2 %2311 }
 0xb62   :  { %v2185_v60 = vpack.c.bf16 %v2181_v33, %v2180_v6  ;;  %3688 = vrcp.f32 %v2171_v11  ;;  %v2026_v47 = vmul.f32 %v3685_v7, %v5039_v44 }
 0xb63   :  { %3690 = vrcp.f32 %v2312_v26 }
 0xb64   :  { %3298 = vmatmul.msk.bf16.gmra.mxu1 %vm610_vm0, %v2185_v60  ;;  %2443 = vmax.xlane.f32.xlu0 %v2442_v48  ;;  %v2030_v42 = vpack.c.bf16 %v2027_v36, %v2026_v47 }
 0xb65   :  { %2446 = vmax.xlane.f32.xlu1 %v2445_v21  ;;  %2290 = vmax.xlane.f32.xlu2 %v2289_v32 }
 0xb67   :  { %v3687_v43 = vpop.eup %3686  ;;  %v2468_v1 = vpop.xlane.xlu1 %2467 }
 0xb68   :  { %v3689_v40 = vpop.eup %3688  ;;  %v2182_v39 = vmul.f32 %v3687_v43, %v5051_v35 }
 0xb69   :  { %v2183_v34 = vmul.f32 %v3689_v40, %v5054_v38  ;;  %v3691_v61 = vpop.eup %3690 }
 0xb6a   :  { %v2334_v22 = vmul.f32 %v3691_v61, %v5060_v52 }
 0xb6b   :  { %v2186_v50 = vpack.c.bf16 %v2183_v34, %v2182_v39 }
 0xb6c   :  { %3293 = vmatmul.msk.bf16.gmra.mxu2 %vm610_vm0, %v2030_v42 }
 0xb6f   :  { %v2315_v51 = vpop.xlane.xlu0 %2314 }
 0xb70   :  { %3692 = vrcp.f32 %v2315_v51  ;;  %v2471_v27 = vpop.xlane.xlu2 %2470 }
 0xb71   :  { %3694 = vrcp.f32 %v2471_v27 }
 0xb72   :  { %3696 = vrcp.f32 %v2468_v1 }
 0xb74   :  { %3299 = vmatmul.msk.bf16.gmra.mxu1 %vm610_vm0, %v2186_v50 }
 0xb76   :  { %v3693_v44 = vpop.eup %3692 }
 0xb77   :  { %v2335_v62 = vmul.f32 %v3693_v44, %v5070_v23  ;;  %v3695_v35 = vpop.eup %3694  ;;  %v3442_v44 = vld [vmem:[%s5422_s4 + $0x78] sm:$0xff] }
 0xb78   :  { %v3697_v41 = vpop.eup %3696  ;;  %v2491_v38 = vmul.f32 %v3695_v35, %v5072_v14  ;;  %2580 = vmatpush.bf16.msra.mxu0 %v3442_v44 }
 0xb79   :  { %v2340_v18 = vpack.c.bf16 %v2335_v62, %v2334_v22  ;;  %v2490_v25 = vmul.f32 %v3697_v41, %v5066_v17  ;;  %v3441_v41 = vld [vmem:[%s5422_s4 + $0x70] sm:$0xff] }
 0xb7b   :  { %v2496_v53 = vpack.c.bf16 %v2491_v38, %v2490_v25 }
 0xb7c   :  { %3303 = vmatmul.msk.bf16.vlgmr.msra.gmra.mxu2 %vm610_vm0, %v2340_v18  ;;  %2581 = vmatpush.bf16.msra.mxu0 %v3441_v41 }
 0xb84   :  { %3309 = vmatmul.msk.bf16.vlgmr.msra.gmra.mxu1 %vm610_vm0, %v2496_v53 }
 0xbb9   :  { %v2318_v28 = vpop.xlane.xlu0 %2317 }
 0xbba   :  { %3698 = vrcp.f32 %v2318_v28 }
 0xbc0   :  { %v3699_v20 = vpop.eup %3698 }
 0xbc1   :  { %v2336_v5 = vmul.f32 %v3699_v20, %v5079_v57 }
 0xbc8   :  { %v2321_v2 = vpop.xlane.xlu1 %2320  ;;  %v5142_v52 = vpop.f32.mrf.mxu1 }
 0xbc9   :  { %3700 = vrcp.f32 %v2321_v2 }
 0xbcf   :  { %v3701_v23 = vpop.eup %3700  ;;  %v5146_v59 = vpop.f32.mrf.mxu2 }
 0xbd0   :  { %v2337_v19 = vmul.f32 %v3701_v23, %v5092_v55  ;;  %v2288_v14 = vpop.xlane.xlu1 %2287  ;;  %v2477_v46 = vpop.xlane.xlu0 %2476 }
 0xbd1   :  { %v2296_v17 = vsub.f32 %v5098_v49, %v2288_v14  ;;  %v2474_v24 = vpop.xlane.xlu2 %2473  ;;  %3702 = vrcp.f32 %v2477_v46  ;;  %v5150_v33 = vpop.f32.mrf.mxu1 }
 0xbd2   :  { %v2341_v3 = vpack.c.bf16 %v2337_v19, %v2336_v5  ;;  %3704 = vrcp.f32 %v2474_v24  ;;  %v2064_v24 = vsel %vm40_vm8, %v5146_v59, 0.0 }
 0xbd3   :  { %v2306_v6 = vmul.f32 1.442695, %v2296_v17 }
 0xbd4   :  { %3304 = vmatmul.msk.bf16.gmra.mxu2 %vm610_vm0, %v2341_v3  ;;  %v2220_v3 = vsel %vm4081_vm9, %v5142_v52, 0.0 }
 0xbd5   :  { %3706 = vpow2.f32 %v2306_v6 }
 0xbd7   :  { %v3703_v37 = vpop.eup %3702  ;;  %v2051_v57 = vpop.f32.mrf.mxu2 }
 0xbd8   :  { %v2447_v11 = vpop.xlane.xlu1 %2446  ;;  %v3705_v55 = vpop.eup %3704  ;;  %v2493_v60 = vmul.f32 %v3703_v37, %v5101_v56  ;;  %v2065_v6 = vsel %vm40_vm8, %v2051_v57, 0.0 }
 0xbd9   :  { %v2453_v15 = vsub.f32 %v5113_v13, %v2447_v11  ;;  %v2444_v49 = vpop.xlane.xlu0 %2443  ;;  %v2291_v21 = vpop.xlane.xlu2 %2290  ;;  %v2492_v32 = vmul.f32 %v3705_v55, %v5103_v16  ;;  %v2226_v11 = vadd.f32 %v2220_v3, %v2064_v24  ;;  %v2221_v55 = vsel %vm4081_vm9, %v5150_v33, 0.0 }
 0xbda   :  { %v2452_v48 = vsub.f32 %v5118_v4, %v2444_v49  ;;  %v2297_v7 = vsub.f32 %v5121_v9, %v2291_v21 }
 0xbdb   :  { %v5157_v36 = vpop.eup %3706  ;;  %v2464_v47 = vmul.f32 1.442695, %v2453_v15  ;;  %v2497_v40 = vpack.c.bf16 %v2493_v60, %v2492_v32  ;;  %v2227_v60 = vadd.f32 %v2221_v55, %v2065_v6 }
 0xbdc   :  { %v2462_v43 = vmul.f32 1.442695, %v2452_v48  ;;  %v2308_v26 = vmul.f32 1.442695, %v2297_v7  ;;  %v2322_v42 = vsel %vm610_vm0, %v5157_v36, 0.0 }
 0xbdd   :  { %3708 = vpow2.f32 %v2464_v47  ;;  %2323 = vadd.xlane.f32.xlu2 %v2322_v42  ;;  %3310 = vmatmul.msk.bf16.gmra.mxu1 %vm610_vm0, %v2497_v40 }
 0xbde   :  { %3710 = vpow2.f32 %v2462_v43 }
 0xbdf   :  { %3712 = vpow2.f32 %v2308_v26  ;;  %v2054_v56 = vpop.f32.mrf.mxu2 }
 0xbe0   :  { %v2066_v13 = vsel %vm40_vm8, %v2054_v56, 0.0 }
 0xbe1   :  { %v2210_v16 = vpop.f32.mrf.mxu1 }
 0xbe2   :  { %v2222_v4 = vsel %vm4081_vm9, %v2210_v16, 0.0 }
 0xbe3   :  { %v5166_v9 = vpop.eup %3708  ;;  %v5168_v39 = vadd.f32 %v2222_v4, %v2066_v13 }
 0xbe4   :  { %v5170_v34 = vpop.eup %3710  ;;  %v2481_v51 = vsel %vm610_vm0, %v5166_v9, 0.0 }
 0xbe5   :  { %v5174_v27 = vpop.eup %3712  ;;  %2482 = vadd.xlane.f32.xlu2 %v2481_v51  ;;  %v2478_v50 = vsel %vm610_vm0, %v5170_v34, 0.0 }
 0xbe6   :  { %2479 = vadd.xlane.f32.xlu1 %v2478_v50  ;;  %v2325_v1 = vsel %vm610_vm0, %v5174_v27, 0.0 }
 0xbe7   :  { %2326 = vadd.xlane.f32.xlu0 %v2325_v1  ;;  %v2056_v61 = vpop.f32.mrf.mxu2 }
 0xbe8   :  { %v2067_v62 = vsel %vm40_vm8, %v2056_v61, 0.0 }
 0xbe9   :  { %v2212_v22 = vpop.f32.mrf.mxu1 }
 0xbea   :  { %v2223_v18 = vsel %vm4081_vm9, %v2212_v22, 0.0 }
 0xbeb   :  { %v2229_v35 = vadd.f32 %v2223_v18, %v2067_v62 }
 0xbef   :  { %v2059_v38 = vpop.f32.mrf.mxu2 }
 0xbf0   :  { %v2068_v53 = vsel %vm40_vm8, %v2059_v38, 0.0 }
 0xbf1   :  { %v2215_v25 = vpop.f32.mrf.mxu1 }
 0xbf2   :  { %v2224_v28 = vsel %vm4081_vm9, %v2215_v25, 0.0 }
 0xbf3   :  { %v5194_v2 = vadd.f32 %v2224_v28, %v2068_v53 }
 0xbf7   :  { %v2061_v20 = vpop.f32.mrf.mxu2 }
 0xbf8   :  { %v2069_v5 = vsel %vm40_vm8, %v2061_v20, 0.0 }
 0xbf9   :  { %v2217_v23 = vpop.f32.mrf.mxu1 }
 0xbfa   :  { %v2225_v19 = vsel %vm4081_vm9, %v2217_v23, 0.0 }
 0xbfb   :  { %v5200_v14 = vadd.f32 %v2225_v19, %v2069_v5 }
 0xbff   :  { %v2361_v17 = vpop.f32.mrf.mxu2 }
 0xc00   :  { %v2376_v37 = vsel %vm4136_vm14, %v2361_v17, 0.0 }
 0xc01   :  { %v2517_v46 = vpop.f32.mrf.mxu1  ;;  %v2382_v15 = vadd.f32 %v2376_v37, %v2226_v11 }
 0xc02   :  { %v2532_v59 = vsel %vm4140_vm15, %v2517_v46, 0.0 }
 0xc03   :  { %v2538_v32 = vadd.f32 %v2532_v59, %v2382_v15 }
 0xc07   :  { %v2363_v49 = vpop.f32.mrf.mxu2 }
 0xc08   :  { %v2377_v52 = vsel %vm4136_vm14, %v2363_v49, 0.0 }
 0xc09   :  { %v2519_v21 = vpop.f32.mrf.mxu1  ;;  %v2383_v45 = vadd.f32 %v2377_v52, %v2227_v60 }
 0xc0a   :  { %v2533_v57 = vsel %vm4140_vm15, %v2519_v21, 0.0 }
 0xc0b   :  { %v2539_v48 = vadd.f32 %v2533_v57, %v2383_v45 }
 0xc0d   :  { %v2544_v7 = vpack.c.bf16 %v2539_v48, %v2538_v32 }
 0xc0f   :  { %3324 = vmatmul.msk.bf16.vlgmr.msra.gmra.mxu0 %vm260_vm1, %v2544_v7 }
 0xc50   :  { %v2324_v54 = vpop.xlane.xlu2 %2323 }
 0xc51   :  { %3714 = vrcp.f32 %v2324_v54 }
 0xc57   :  { %v2366_v33 = vpop.f32.mrf.mxu2  ;;  %v3715_v42 = vpop.eup %3714 }
 0xc58   :  { %v2483_v47 = vpop.xlane.xlu2 %2482  ;;  %v2378_v56 = vsel %vm4136_vm14, %v2366_v33, 0.0  ;;  %v2338_v62 = vmul.f32 %v3715_v42, %v5157_v36  ;;  %v5241_v36 = vld [vmem:[%s5425_s7 + $0x15] ss:$0 sm:$0xff] }
 0xc59   :  { %v2480_v43 = vpop.xlane.xlu1 %2479  ;;  %3716 = vrcp.f32 %v2483_v47  ;;  %v2384_v61 = vadd.f32 %v2378_v56, %v5168_v39 }
 0xc5a   :  { %3718 = vrcp.f32 %v2480_v43  ;;  %v2327_v26 = vpop.xlane.xlu0 %2326  ;;  %v2522_v40 = vpop.f32.mrf.mxu1 }
 0xc5b   :  { %3720 = vrcp.f32 %v2327_v26  ;;  %v2534_v41 = vsel %vm4140_vm15, %v2522_v40, 0.0 }
 0xc5c   :  { %v2540_v28 = vadd.f32 %v2534_v41, %v2384_v61 }
 0xc5f   :  { %v3717_v16 = vpop.eup %3716  ;;  %v2368_v13 = vpop.f32.mrf.mxu2 }
 0xc60   :  { %v3719_v4 = vpop.eup %3718  ;;  %v2495_v51 = vmul.f32 %v3717_v16, %v5166_v9  ;;  %v2379_v50 = vsel %vm4136_vm14, %v2368_v13, 0.0 }
 0xc61   :  { %v3721_v1 = vpop.eup %3720  ;;  %v2494_v44 = vmul.f32 %v3719_v4, %v5170_v34  ;;  %v2385_v22 = vadd.f32 %v2379_v50, %v2229_v35 }
 0xc62   :  { %v2339_v18 = vmul.f32 %v3721_v1, %v5174_v27  ;;  %v2524_v38 = vpop.f32.mrf.mxu1 }
 0xc63   :  { %v2498_v25 = vpack.c.bf16 %v2495_v51, %v2494_v44  ;;  %v2535_v9 = vsel %vm4140_vm15, %v2524_v38, 0.0 }
 0xc64   :  { %v2342_v53 = vpack.c.bf16 %v2339_v18, %v2338_v62  ;;  %v2541_v20 = vadd.f32 %v2535_v9, %v2385_v22  ;;  %v3444_v9 = vld [vmem:[%s5423_s5 + $0x18] sm:$0xff] }
 0xc65   :  { %3311 = vmatmul.msk.bf16.gmra.mxu1 %vm610_vm0, %v2498_v25  ;;  %2786 = vmatpush.bf16.msrb.mxu2 %v3444_v9 }
 0xc66   :  { %3305 = vmatmul.msk.bf16.gmra.mxu2 %vm610_vm0, %v2342_v53  ;;  %v2545_v39 = vpack.c.bf16 %v2541_v20, %v2540_v28 }
 0xc68   :  { %3325 = vmatmul.msk.bf16.gmra.mxu0 %vm260_vm1, %v2545_v39 }
 0xc8c   :  { %v2583_v34 = vpop.f32.mrf.mxu0 }
 0xc8d   :  { %v2584_v27 = vadd.f32 %v5241_v36, %v2583_v34 }
 0xc8f   :  { %v5245_v35 = vadd.f32 %v2584_v27, %v4676_v10 }
 0xc91   :  { %v2604_v23 = vsel %vm260_vm1, %v5245_v35, 0.0 }
 0xc92   :  { %2605 = vadd.xlane.f32.xlu0 %v2604_v23 }
 0xc94   :  { %v2585_v5 = vpop.f32.mrf.mxu0 }
 0xc95   :  { %v2586_v19 = vadd.f32 %v5241_v36, %v2585_v5 }
 0xc97   :  { %v2599_v17 = vadd.f32 %v2586_v19, %v4681_v12 }
 0xc99   :  { %v2607_v46 = vsel %vm260_vm1, %v2599_v17, 0.0 }
 0xc9a   :  { %2608 = vadd.xlane.f32.xlu1 %v2607_v46 }
 0xce2   :  { %v2527_v3 = vpop.f32.mrf.mxu1 }
 0xce3   :  { %v2536_v57 = vsel %vm4140_vm15, %v2527_v3, 0.0 }
 0xce5   :  { %v2588_v24 = vpop.f32.mrf.mxu0 }
 0xce6   :  { %v2589_v6 = vadd.f32 %v5241_v36, %v2588_v24 }
 0xce8   :  { %v2600_v10 = vadd.f32 %v2589_v6, %v4686_v63 }
 0xce9   :  { %v2371_v37 = vpop.f32.mrf.mxu2 }
 0xcea   :  { %v2610_v11 = vsel %vm260_vm1, %v2600_v10, 0.0  ;;  %v2380_v55 = vsel %vm4136_vm14, %v2371_v37, 0.0  ;;  %v2529_v49 = vpop.f32.mrf.mxu1 }
 0xceb   :  { %2611 = vadd.xlane.f32.xlu2 %v2610_v11  ;;  %v2386_v12 = vadd.f32 %v2380_v55, %v5194_v2  ;;  %v2537_v32 = vsel %vm4140_vm15, %v2529_v49, 0.0 }
 0xced   :  { %v2590_v60 = vpop.f32.mrf.mxu0  ;;  %v2542_v2 = vadd.f32 %v2536_v57, %v2386_v12 }
 0xcee   :  { %v2591_v15 = vadd.f32 %v5241_v36, %v2590_v60  ;;  %v5313_v60 = vld [vmem:[%s5425_s7 + $0x16] ss:$0 sm:$0xff] }
 0xcf0   :  { %v5260_v59 = vadd.f32 %v2591_v15, %v4691_v31 }
 0xcf1   :  { %v2373_v52 = vpop.f32.mrf.mxu2 }
 0xcf2   :  { %v2381_v21 = vsel %vm4136_vm14, %v2373_v52, 0.0  ;;  %v2613_v45 = vsel %vm260_vm1, %v5260_v59, 0.0  ;;  %v5318_v52 = vld [vmem:[%s5425_s7 + $0x17] ss:$0 sm:$0xff] }
 0xcf3   :  { %v2387_v63 = vadd.f32 %v2381_v21, %v5200_v14  ;;  %2614 = vadd.xlane.f32.xlu0 %v2613_v45 }
 0xcf5   :  { %v2543_v48 = vadd.f32 %v2537_v32, %v2387_v63 }
 0xcf7   :  { %v2546_v31 = vpack.c.bf16 %v2543_v48, %v2542_v2 }
 0xcf9   :  { %3326 = vmatmul.msk.bf16.gmra.mxu0 %vm260_vm1, %v2546_v31 }
 0xd05   :  { %v2606_v7 = vpop.xlane.xlu0 %2605 }
 0xd06   :  { %v2622_v29 = vmul.f32 %v2606_v7, %v3954_v8 }
 0xd08   :  { %v2628_v14 = vsub.f32 %v5245_v35, %v2622_v29 }
 0xd0a   :  { %v2634_v54 = vmul.f32 %v2628_v14, %v2628_v14 }
 0xd0c   :  { %v2640_v33 = vsel %vm260_vm1, %v2634_v54, 0.0 }
 0xd0d   :  { %v2609_v47 = vpop.xlane.xlu1 %2608  ;;  %2641 = vadd.xlane.f32.xlu1 %v2640_v33 }
 0xd0e   :  { %v2623_v43 = vmul.f32 %v2609_v47, %v3954_v8 }
 0xd10   :  { %v2629_v30 = vsub.f32 %v2599_v17, %v2623_v43 }
 0xd12   :  { %v2635_v26 = vmul.f32 %v2629_v30, %v2629_v30 }
 0xd14   :  { %v2643_v40 = vsel %vm260_vm1, %v2635_v26, 0.0 }
 0xd15   :  { %2644 = vadd.xlane.f32.xlu2 %v2643_v40 }
 0xd5e   :  { %v2612_v42 = vpop.xlane.xlu2 %2611 }
 0xd5f   :  { %v2624_v56 = vmul.f32 %v2612_v42, %v3954_v8 }
 0xd61   :  { %v5278_v16 = vsub.f32 %v2600_v10, %v2624_v56 }
 0xd63   :  { %v2636_v13 = vmul.f32 %v5278_v16, %v5278_v16 }
 0xd65   :  { %v2646_v4 = vsel %vm260_vm1, %v2636_v13, 0.0 }
 0xd66   :  { %v2615_v51 = vpop.xlane.xlu0 %2614  ;;  %2647 = vadd.xlane.f32.xlu0 %v2646_v4 }
 0xd67   :  { %v2625_v50 = vmul.f32 %v2615_v51, %v3954_v8 }
 0xd69   :  { %v5285_v1 = vsub.f32 %v5260_v59, %v2625_v50 }
 0xd6b   :  { %v2637_v61 = vmul.f32 %v5285_v1, %v5285_v1 }
 0xd6d   :  { %v2649_v44 = vsel %vm260_vm1, %v2637_v61, 0.0 }
 0xd6e   :  { %2650 = vadd.xlane.f32.xlu1 %v2649_v44 }
 0xd76   :  { %v2593_v22 = vpop.f32.mrf.mxu0 }
 0xd77   :  { %v2594_v62 = vadd.f32 %v5241_v36, %v2593_v22 }
 0xd79   :  { %v5292_v18 = vadd.f32 %v2594_v62, %v4696_v58 }
 0xd7b   :  { %v2616_v41 = vsel %vm260_vm1, %v5292_v18, 0.0 }
 0xd7c   :  { %2617 = vadd.xlane.f32.xlu2 %v2616_v41 }
 0xd7e   :  { %v2595_v38 = vpop.f32.mrf.mxu0 }
 0xd7f   :  { %v2596_v25 = vadd.f32 %v5241_v36, %v2595_v38  ;;  %v3443_v36 = vld [vmem:[%s5423_s5 + $0x10] sm:$0xff] }
 0xd80   :  { %v2642_v53 = vpop.xlane.xlu1 %2641  ;;  %2787 = vmatpush.bf16.msrb.mxu2 %v3443_v36 }
 0xd81   :  { %v5301_v28 = vadd.f32 %v2596_v25, %v4701_v0  ;;  %v2658_v20 = vmul.f32 %v2642_v53, %v3954_v8 }
 0xd83   :  { %v2619_v58 = vsel %vm260_vm1, %v5301_v28, 0.0  ;;  %v2664_v39 = vadd.f32 1e-06, %v2658_v20 }
 0xd84   :  { %2620 = vadd.xlane.f32.xlu0 %v2619_v58 }
 0xd85   :  { %3722 = vrsqrt.f32 %v2664_v39  ;;  %vm2676_vm9 = vweird.f32 %v2664_v39 }
 0xd88   :  { %v2645_v34 = vpop.xlane.xlu2 %2644 }
 0xd89   :  { %v2659_v27 = vmul.f32 %v2645_v34, %v3954_v8 }
 0xd8b   :  { %v3723_v23 = vpop.eup %3722  ;;  %v2665_v0 = vadd.f32 1e-06, %v2659_v27 }
 0xd8c   :  { %v2671_v5 = vmul.f32 %v3723_v23, %v2664_v39  ;;  %vm2677_vm8 = vweird.f32 %v3723_v23 }
 0xd8d   :  { %3724 = vrsqrt.f32 %v2665_v0  ;;  %vm2678_vm14 = vmor %vm2676_vm9, %vm2677_vm8  ;;  %vm2686_vm0 = vweird.f32 %v2665_v0 }
 0xd8e   :  { %v2672_v19 = vmul.f32 %v3723_v23, %v2671_v5  ;;  %v3450_v5 = vld [vmem:[%s5424_s6 + $0x68] sm:$0xff] }
 0xd90   :  { %v2673_v17 = vmul.f32 0.5, %v2672_v19  ;;  %v3449_v19 = vld [vmem:[%s5424_s6 + $0x60] sm:$0xff] }
 0xd92   :  { %v2674_v46 = vsub.f32 1.5, %v2673_v17  ;;  %v3448_v17 = vld [vmem:[%s5424_s6 + $0x58] sm:$0xff] }
 0xd93   :  { %v3725_v24 = vpop.eup %3724 }
 0xd94   :  { %v2675_v3 = vmul.f32 %v3723_v23, %v2674_v46  ;;  %v2681_v6 = vmul.f32 %v3725_v24, %v2665_v0  ;;  %vm2687_vm15 = vweird.f32 %v3725_v24  ;;  %v3447_v46 = vld [vmem:[%s5424_s6 + $0x50] sm:$0xff] }
 0xd95   :  { %vm2688_vm10 = vmor %vm2686_vm0, %vm2687_vm15  ;;  %vm2952_vm15 = vcmask 1040384   ;;  %vm2957_vm0 = vcmask 254976  }
 0xd96   :  { %v2682_v37 = vmul.f32 %v3725_v24, %v2681_v6  ;;  %v2679_v10 = vsel %vm2678_vm14, %v3723_v23, %v2675_v3  ;;  %v5372_v3 = vld [vmem:[%s5425_s7 + $0x18] ss:$0 sm:$0xff] }
 0xd97   :  { %v2730_v15 = vmul.f32 %v2679_v10, %v2628_v14 }
 0xd98   :  { %v2683_v11 = vmul.f32 0.5, %v2682_v37  ;;  %v3445_v37 = vld [vmem:[%s5424_s6 + $0x40] sm:$0xff] }
 0xd99   :  { %v2737_v21 = vmul.f32 %v5313_v60, %v2730_v15 }
 0xd9a   :  { %v2684_v55 = vsub.f32 1.5, %v2683_v11 }
 0xd9b   :  { %v2744_v57 = vadd.f32 %v5318_v52, %v2737_v21 }
 0xd9c   :  { %v2685_v12 = vmul.f32 %v3725_v24, %v2684_v55 }
 0xd9e   :  { %v2689_v49 = vsel %vm2688_vm10, %v3725_v24, %v2685_v12  ;;  %v3446_v24 = vld [vmem:[%s5424_s6 + $0x48] sm:$0xff] }
 0xd9f   :  { %v2731_v63 = vmul.f32 %v2689_v49, %v2629_v30 }
 0xda1   :  { %v2738_v45 = vmul.f32 %v5313_v60, %v2731_v63 }
 0xda3   :  { %v2745_v32 = vadd.f32 %v5318_v52, %v2738_v45 }
 0xda5   :  { %v2750_v2 = vpack.c.bf16 %v2745_v32, %v2744_v57 }
 0xda7   :  { %3339 = vmatmul.msk.bf16.vlgmr.msrb.gmra.mxu2 %vm260_vm1, %v2750_v2 }
 0xdd9   :  { %v2648_v48 = vpop.xlane.xlu0 %2647 }
 0xdda   :  { %v2660_v31 = vmul.f32 %v2648_v48, %v3954_v8 }
 0xddc   :  { %v2666_v7 = vadd.f32 1e-06, %v2660_v31 }
 0xdde   :  { %3726 = vrsqrt.f32 %v2666_v7  ;;  %vm2696_vm12 = vweird.f32 %v2666_v7 }
 0xde1   :  { %v2651_v29 = vpop.xlane.xlu1 %2650 }
 0xde2   :  { %v2661_v14 = vmul.f32 %v2651_v29, %v3954_v8 }
 0xde4   :  { %v3727_v54 = vpop.eup %3726  ;;  %v2667_v33 = vadd.f32 1e-06, %v2661_v14 }
 0xde5   :  { %v2691_v47 = vmul.f32 %v3727_v54, %v2666_v7  ;;  %vm2697_vm11 = vweird.f32 %v3727_v54 }
 0xde6   :  { %3728 = vrsqrt.f32 %v2667_v33  ;;  %vm2698_vm13 = vmor %vm2696_vm12, %vm2697_vm11  ;;  %vm2706_vm3 = vweird.f32 %v2667_v33 }
 0xde7   :  { %v2692_v43 = vmul.f32 %v3727_v54, %v2691_v47 }
 0xde9   :  { %v2693_v30 = vmul.f32 0.5, %v2692_v43 }
 0xdeb   :  { %v2694_v26 = vsub.f32 1.5, %v2693_v30 }
 0xdec   :  { %v3729_v40 = vpop.eup %3728 }
 0xded   :  { %v2695_v42 = vmul.f32 %v3727_v54, %v2694_v26  ;;  %v2701_v56 = vmul.f32 %v3729_v40, %v2667_v33  ;;  %vm2707_vm2 = vweird.f32 %v3729_v40 }
 0xdee   :  { %vm2708_vm4 = vmor %vm2706_vm3, %vm2707_vm2 }
 0xdef   :  { %v2618_v13 = vpop.xlane.xlu2 %2617  ;;  %v2702_v4 = vmul.f32 %v3729_v40, %v2701_v56  ;;  %v2699_v50 = vsel %vm2698_vm13, %v3727_v54, %v2695_v42 }
 0xdf0   :  { %v2626_v51 = vmul.f32 %v2618_v13, %v3954_v8  ;;  %v2732_v41 = vmul.f32 %v2699_v50, %v5278_v16 }
 0xdf1   :  { %v2703_v61 = vmul.f32 0.5, %v2702_v4 }
 0xdf2   :  { %v5329_v44 = vsub.f32 %v5292_v18, %v2626_v51  ;;  %v2739_v58 = vmul.f32 %v5313_v60, %v2732_v41 }
 0xdf3   :  { %v2704_v22 = vsub.f32 1.5, %v2703_v61 }
 0xdf4   :  { %v2638_v62 = vmul.f32 %v5329_v44, %v5329_v44  ;;  %v2746_v34 = vadd.f32 %v5318_v52, %v2739_v58 }
 0xdf5   :  { %v2705_v38 = vmul.f32 %v3729_v40, %v2704_v22 }
 0xdf6   :  { %v2652_v25 = vsel %vm260_vm1, %v2638_v62, 0.0 }
 0xdf7   :  { %v2621_v9 = vpop.xlane.xlu0 %2620  ;;  %2653 = vadd.xlane.f32.xlu1 %v2652_v25  ;;  %v2709_v53 = vsel %vm2708_vm4, %v3729_v40, %v2705_v38 }
 0xdf8   :  { %v2627_v20 = vmul.f32 %v2621_v9, %v3954_v8  ;;  %v2733_v18 = vmul.f32 %v2709_v53, %v5285_v1  ;;  %v3452_v1 = vld [vmem:[%s5424_s6 + $0x78] sm:$0xff] }
 0xdf9   :  { %2927 = vmatpush.bf16.msrb.mxu3 %v3452_v1 }
 0xdfa   :  { %v5339_v39 = vsub.f32 %v5301_v28, %v2627_v20  ;;  %v2740_v36 = vmul.f32 %v5313_v60, %v2733_v18  ;;  %v3451_v28 = vld [vmem:[%s5424_s6 + $0x70] sm:$0xff] }
 0xdfc   :  { %v2639_v16 = vmul.f32 %v5339_v39, %v5339_v39  ;;  %v2747_v27 = vadd.f32 %v5318_v52, %v2740_v36 }
 0xdfd   :  { %2928 = vmatpush.bf16.msrb.mxu3 %v3451_v28 }
 0xdfe   :  { %v2655_v23 = vsel %vm260_vm1, %v2639_v16, 0.0  ;;  %v2751_v0 = vpack.c.bf16 %v2747_v27, %v2746_v34 }
 0xdff   :  { %2656 = vadd.xlane.f32.xlu2 %v2655_v23 }
 0xe00   :  { %3340 = vmatmul.msk.bf16.gmra.mxu2 %vm260_vm1, %v2751_v0 }
 0xe01   :  { %2929 = vmatpush.bf16.msrb.mxu3 %v3450_v5 }
 0xe05   :  { %2930 = vmatpush.bf16.msrb.mxu3 %v3449_v19 }
 0xe09   :  { %2931 = vmatpush.bf16.msrb.mxu3 %v3448_v17 }
 0xe0d   :  { %2932 = vmatpush.bf16.msrb.mxu3 %v3447_v46 }
 0xe11   :  { %2933 = vmatpush.bf16.msrb.mxu3 %v3446_v24 }
 0xe15   :  { %2934 = vmatpush.bf16.msrb.mxu3 %v3445_v37 }
 0xe2a   :  { %v2789_v6 = vpop.f32.mrf.mxu2 }
 0xe2b   :  { %v2790_v10 = vadd.f32 %v5372_v3, %v2789_v6 }
 0xe2d   :  { %v2804_v11 = vmul.f32 %v2790_v10, %v2790_v10 }
 0xe2f   :  { %v2810_v55 = vmul.f32 %v2804_v11, %v2790_v10 }
 0xe31   :  { %v2816_v15 = vmul.f32 0.044715, %v2810_v55 }
 0xe32   :  { %v2791_v12 = vpop.f32.mrf.mxu2 }
 0xe33   :  { %v2822_v49 = vadd.f32 %v2816_v15, %v2790_v10  ;;  %v2792_v21 = vadd.f32 %v5372_v3, %v2791_v12 }
 0xe35   :  { %v2828_v63 = vmul.f32 0.7978846, %v2822_v49  ;;  %v2805_v45 = vmul.f32 %v2792_v21, %v2792_v21 }
 0xe37   :  { %v2811_v57 = vmul.f32 %v2805_v45, %v2792_v21  ;;  %3730 = vtanh.f32 %v2828_v63 }
 0xe39   :  { %v2817_v32 = vmul.f32 0.044715, %v2811_v57 }
 0xe3b   :  { %v2823_v2 = vadd.f32 %v2817_v32, %v2792_v21 }
 0xe3d   :  { %v2829_v48 = vmul.f32 0.7978846, %v2823_v2  ;;  %v3731_v31 = vpop.eup %3730 }
 0xe3e   :  { %v2840_v7 = vadd.f32 1.0, %v3731_v31 }
 0xe3f   :  { %3732 = vtanh.f32 %v2829_v48 }
 0xe40   :  { %v2846_v14 = vmul.f32 0.5, %v2840_v7 }
 0xe42   :  { %v2852_v47 = vmul.f32 %v2846_v14, %v2790_v10 }
 0xe45   :  { %v3733_v29 = vpop.eup %3732 }
 0xe46   :  { %v2841_v54 = vadd.f32 1.0, %v3733_v29 }
 0xe48   :  { %v2847_v33 = vmul.f32 0.5, %v2841_v54 }
 0xe4a   :  { %v2853_v43 = vmul.f32 %v2847_v33, %v2792_v21 }
 0xe4c   :  { %v2858_v30 = vpack.c.bf16 %v2853_v43, %v2852_v47 }
 0xe4e   :  { %2935 = vmatmul.bf16.vlgmr.msrb.gmra.mxu3 %v2858_v30 }
 0xe6a   :  { %v2654_v26 = vpop.xlane.xlu1 %2653 }
 0xe6b   :  { %v2662_v40 = vmul.f32 %v2654_v26, %v3954_v8 }
 0xe6d   :  { %v2668_v42 = vadd.f32 1e-06, %v2662_v40 }
 0xe6f   :  { %3734 = vrsqrt.f32 %v2668_v42  ;;  %vm2716_vm6 = vweird.f32 %v2668_v42 }
 0xe72   :  { %v2657_v56 = vpop.xlane.xlu2 %2656 }
 0xe73   :  { %v2663_v13 = vmul.f32 %v2657_v56, %v3954_v8 }
 0xe75   :  { %v3735_v4 = vpop.eup %3734  ;;  %v2669_v51 = vadd.f32 1e-06, %v2663_v13 }
 0xe76   :  { %v2711_v50 = vmul.f32 %v3735_v4, %v2668_v42  ;;  %vm2717_vm5 = vweird.f32 %v3735_v4 }
 0xe77   :  { %3736 = vrsqrt.f32 %v2669_v51  ;;  %vm2718_vm7 = vmor %vm2716_vm6, %vm2717_vm5  ;;  %vm2726_vm9 = vweird.f32 %v2669_v51 }
 0xe78   :  { %v2712_v61 = vmul.f32 %v3735_v4, %v2711_v50 }
 0xe7a   :  { %v2713_v22 = vmul.f32 0.5, %v2712_v61 }
 0xe7c   :  { %v2714_v62 = vsub.f32 1.5, %v2713_v22 }
 0xe7d   :  { %v3737_v41 = vpop.eup %3736 }
 0xe7e   :  { %v2715_v38 = vmul.f32 %v3735_v4, %v2714_v62  ;;  %v2721_v25 = vmul.f32 %v3737_v41, %v2669_v51  ;;  %vm2727_vm8 = vweird.f32 %v3737_v41  ;;  %v3476_v62 = vld [vmem:[%s5425_s7 + $0x19] ss:$0 sm:$0xff] }
 0xe7f   :  { %vm2728_vm14 = vmor %vm2726_vm9, %vm2727_vm8 }
 0xe80   :  { %v2722_v9 = vmul.f32 %v3737_v41, %v2721_v25  ;;  %v2719_v53 = vsel %vm2718_vm7, %v3735_v4, %v2715_v38 }
 0xe81   :  { %v2734_v36 = vmul.f32 %v2719_v53, %v5329_v44 }
 0xe82   :  { %v2723_v20 = vmul.f32 0.5, %v2722_v9 }
 0xe83   :  { %v2794_v58 = vpop.f32.mrf.mxu2  ;;  %v2741_v28 = vmul.f32 %v5313_v60, %v2734_v36 }
 0xe84   :  { %v2724_v18 = vsub.f32 1.5, %v2723_v20  ;;  %v2795_v16 = vadd.f32 %v5372_v3, %v2794_v58 }
 0xe85   :  { %v2748_v44 = vadd.f32 %v5318_v52, %v2741_v28 }
 0xe86   :  { %v2725_v34 = vmul.f32 %v3737_v41, %v2724_v18  ;;  %v2806_v27 = vmul.f32 %v2795_v16, %v2795_v16 }
 0xe88   :  { %v2729_v23 = vsel %vm2728_vm14, %v3737_v41, %v2725_v34  ;;  %v2812_v1 = vmul.f32 %v2806_v27, %v2795_v16 }
 0xe89   :  { %v2735_v0 = vmul.f32 %v2729_v23, %v5339_v39 }
 0xe8a   :  { %v2818_v5 = vmul.f32 0.044715, %v2812_v1 }
 0xe8b   :  { %v2742_v19 = vmul.f32 %v5313_v60, %v2735_v0  ;;  %v2796_v17 = vpop.f32.mrf.mxu2 }
 0xe8c   :  { %v2824_v46 = vadd.f32 %v2818_v5, %v2795_v16  ;;  %v2797_v24 = vadd.f32 %v5372_v3, %v2796_v17 }
 0xe8d   :  { %v2749_v6 = vadd.f32 %v5318_v52, %v2742_v19 }
 0xe8e   :  { %v2830_v37 = vmul.f32 0.7978846, %v2824_v46  ;;  %v2807_v10 = vmul.f32 %v2797_v24, %v2797_v24 }
 0xe8f   :  { %v2752_v11 = vpack.c.bf16 %v2749_v6, %v2748_v44 }
 0xe90   :  { %v2813_v55 = vmul.f32 %v2807_v10, %v2797_v24  ;;  %3738 = vtanh.f32 %v2830_v37 }
 0xe91   :  { %3341 = vmatmul.msk.bf16.gmra.mxu2 %vm260_vm1, %v2752_v11 }
 0xe92   :  { %v2819_v39 = vmul.f32 0.044715, %v2813_v55 }
 0xe94   :  { %v2825_v15 = vadd.f32 %v2819_v39, %v2797_v24 }
 0xe96   :  { %v2831_v12 = vmul.f32 0.7978846, %v2825_v15  ;;  %v3739_v49 = vpop.eup %3738 }
 0xe97   :  { %v2842_v60 = vadd.f32 1.0, %v3739_v49 }
 0xe98   :  { %3740 = vtanh.f32 %v2831_v12  ;;  %v3477_v12 = vld [vmem:[%s5427_s9] ss:$0 sm:$0xff] }
 0xe99   :  { %v2848_v45 = vmul.f32 0.5, %v2842_v60 }
 0xe9b   :  { %v2854_v32 = vmul.f32 %v2848_v45, %v2795_v16 }
 0xe9e   :  { %v3741_v21 = vpop.eup %3740 }
 0xe9f   :  { %v2843_v63 = vadd.f32 1.0, %v3741_v21 }
 0xea1   :  { %v2849_v57 = vmul.f32 0.5, %v2843_v63 }
 0xea3   :  { %v2855_v2 = vmul.f32 %v2849_v57, %v2797_v24  ;;  %v3479_v57 = vld [vmem:[%s5427_s9 + $0x2] ss:$0 sm:$0xff] }
 0xea5   :  { %v2859_v52 = vpack.c.bf16 %v2855_v2, %v2854_v32 }
 0xea7   :  { %2939 = vmatmul.bf16.gmra.mxu3 %v2859_v52 }
 0xed1   :  { %v2936_v48 = vpop.f32.mrf.mxu3 }
 0xed2   :  { %v2937_v9 = vadd.f32 %v3476_v62, %v2936_v48 }
 0xed4   :  { %v2947_v16 = vadd.f32 %v2937_v9, %v5245_v35  ;;  %v3453_v35 = vld [vmem:[%s5426_s8] sm:$0xff] }
 0xed9   :  { %v2938_v31 = vpop.f32.mrf.mxu3 }
 0xf14   :  { %v2799_v7 = vpop.f32.mrf.mxu2 }
 0xf15   :  { %v2800_v29 = vadd.f32 %v5372_v3, %v2799_v7 }
 0xf17   :  { %v2808_v14 = vmul.f32 %v2800_v29, %v2800_v29 }
 0xf19   :  { %v2814_v54 = vmul.f32 %v2808_v14, %v2800_v29 }
 0xf1b   :  { %v2820_v33 = vmul.f32 0.044715, %v2814_v54 }
 0xf1c   :  { %v2801_v47 = vpop.f32.mrf.mxu2 }
 0xf1d   :  { %v2826_v43 = vadd.f32 %v2820_v33, %v2800_v29  ;;  %v2802_v30 = vadd.f32 %v5372_v3, %v2801_v47 }
 0xf1f   :  { %v2832_v26 = vmul.f32 0.7978846, %v2826_v43  ;;  %v2809_v40 = vmul.f32 %v2802_v30, %v2802_v30 }
 0xf21   :  { %v2815_v42 = vmul.f32 %v2809_v40, %v2802_v30  ;;  %3742 = vtanh.f32 %v2832_v26 }
 0xf23   :  { %v2821_v56 = vmul.f32 0.044715, %v2815_v42 }
 0xf25   :  { %v2827_v13 = vadd.f32 %v2821_v56, %v2802_v30 }
 0xf27   :  { %v2833_v4 = vmul.f32 0.7978846, %v2827_v13  ;;  %v3743_v51 = vpop.eup %3742 }
 0xf28   :  { %v2844_v61 = vadd.f32 1.0, %v3743_v51 }
 0xf29   :  { %3744 = vtanh.f32 %v2833_v4 }
 0xf2a   :  { %v2940_v50 = vpop.f32.mrf.mxu3  ;;  %v2850_v38 = vmul.f32 0.5, %v2844_v61 }
 0xf2c   :  { %v2856_v20 = vmul.f32 %v2850_v38, %v2800_v29 }
 0xf2f   :  { %v3745_v22 = vpop.eup %3744 }
 0xf30   :  { %v2845_v41 = vadd.f32 1.0, %v3745_v22 }
 0xf32   :  { %v2851_v25 = vmul.f32 0.5, %v2845_v41  ;;  %v2941_v3 = vpop.f32.mrf.mxu3 }
 0xf33   :  { %v2942_v53 = vadd.f32 %v3476_v62, %v2941_v3 }
 0xf34   :  { %v2857_v18 = vmul.f32 %v2851_v25, %v2802_v30 }
 0xf35   :  { %v2948_v58 = vadd.f32 %v2942_v53, %v5260_v59  ;;  %v3454_v59 = vld [vmem:[%s5426_s8 + $0x8] sm:$0xff] }
 0xf36   :  { %v2860_v36 = vpack.c.bf16 %v2857_v18, %v2856_v20  ;;  %3011 = vmatpush.bf16.msrb.mxu1 %v3454_v59 }
 0xf37   :  { %v2950_v34 = vrot.slane %v2948_v58, 7 }
 0xf38   :  { %2943 = vmatmul.bf16.gmra.mxu3 %v2860_v36 }
 0xf39   :  { %v2953_v27 = vsel %vm2952_vm15, %v2947_v16, %v2950_v34 }
 0xf3a   :  { %v2958_v23 = vsel %vm2957_vm0, %v2953_v27, 0.0  ;;  %3012 = vmatpush.bf16.msrb.mxu1 %v3453_v35 }
 0xf3b   :  { %2959 = vadd.xlane.f32.xlu0 %v2958_v23 }
 0xfae   :  { %v2960_v0 = vpop.xlane.xlu0 %2959 }
 0xfaf   :  { %v2961_v1 = vmul.f32 %v2960_v0, %v3954_v8 }
 0xfb1   :  { %v2962_v28 = vsub.f32 %v2953_v27, %v2961_v1 }
 0xfb3   :  { %v2963_v5 = vmul.f32 %v2962_v28, %v2962_v28 }
 0xfb5   :  { %v2964_v19 = vsel %vm2957_vm0, %v2963_v5, 0.0 }
 0xfb6   :  { %2965 = vadd.xlane.f32.xlu1 %v2964_v19 }
 0xfbb   :  { %v2944_v17 = vpop.f32.mrf.mxu3 }
 0xfc3   :  { %v2945_v46 = vpop.f32.mrf.mxu3 }
0x1029   :  { %v2966_v24 = vpop.xlane.xlu1 %2965 }
0x102a   :  { %v2967_v44 = vmul.f32 %v2966_v24, %v3954_v8  ;;  %v3478_v8 = vld [vmem:[%s5427_s9 + $0x1] ss:$0 sm:$0xff] }
0x102c   :  { %v2968_v6 = vadd.f32 1e-06, %v2967_v44 }
0x102e   :  { %3746 = vrsqrt.f32 %v2968_v6  ;;  %vm2975_vm11 = vweird.f32 %v2968_v6 }
0x1034   :  { %v3747_v37 = vpop.eup %3746 }
0x1035   :  { %v2970_v10 = vmul.f32 %v3747_v37, %v2968_v6  ;;  %vm2976_vm10 = vweird.f32 %v3747_v37 }
0x1036   :  { %vm2977_vm12 = vmor %vm2975_vm11, %vm2976_vm10 }
0x1037   :  { %v2971_v11 = vmul.f32 %v3747_v37, %v2970_v10 }
0x1039   :  { %v2972_v55 = vmul.f32 0.5, %v2971_v11 }
0x103b   :  { %v2973_v39 = vsub.f32 1.5, %v2972_v55 }
0x103d   :  { %v2974_v15 = vmul.f32 %v3747_v37, %v2973_v39 }
0x103f   :  { %v2978_v49 = vsel %vm2977_vm12, %v3747_v37, %v2974_v15 }
0x1040   :  { %v2979_v60 = vmul.f32 %v2978_v49, %v2962_v28 }
0x1042   :  { %v2981_v21 = vmul.f32 %v3477_v12, %v2979_v60 }
0x1044   :  { %v2983_v63 = vadd.f32 %v3478_v8, %v2981_v21 }
0x1046   :  { %v2984_v45 = vpack.c.bf16 %v2983_v63, %v2983_v63 }
0x1048   :  { %3398 = vmatmul.msk.bf16.vlgmr.msrb.gmra.mxu1 %vm260_vm1, %v2984_v45 }
0x10c5   :  { %v3014_v32 = vpop.f32.mrf.mxu1 }
0x10c6   :  { %v3015_v2 = vadd.f32 %v3479_v57, %v3014_v32 }
0x10c8   :  { %3018 = vst [vmem:[#allocation2] sm:$0x3] %v3015_v2 }
0x10c9   :  { %3029 = dma.vmem_to_hbm [thread:$0]  %s3025_s2, 32, %s3027_s12, [#allocation3]  }
0x10cd   :  { %v3016_v52 = vpop.f32.mrf.mxu1 }
0x10ce   :  { %3778 = dma.done.wait [#allocation3], 32  }
0x10cf   :  { %3779 = vsyncadd [#allocation3], 4294967264 }
0x10d0   :  { %3034 = vsyncpa [#allocation3], 1 }

</bundles_post_ra>
